<compile_context>
chip_gen: v7x
topology: tpu7x:2x2x1
jax: 0.10.0
libtpu: 0.0.40
codegen_flags: <defaults>
</compile_context>

<pallas_src>
import jax
import jax.numpy as jnp
from jax.experimental import pallas as pl
from jax.experimental.pallas import tpu as pltpu

B, C_IN, H, W = 2, 4, 16, 16
C_HID = 8
NUM_CLASSES = 10
KH = KW = 3


# ---------------------------------------------------------------------------
# Fused kernel: conv(3x3, same) + bias + ReLU + global mean pool + linear head
# ---------------------------------------------------------------------------
def _cascade_kernel(x_ref, wa_ref, ba_ref, wb_ref, bb_ref, o_ref, xpad_ref):
    # x_ref:    (B, C_IN, H, W)        float32, PyTorch NCHW layout (as given)
    # wa_ref:   (KH, KW, C_HID, C_IN)  conv weight, per-tap transposed
    # ba_ref:   (C_HID, 1)             conv bias (column)
    # wb_ref:   (C_HID, NUM_CLASSES)   linear weight
    # bb_ref:   (1, NUM_CLASSES)       linear bias (row)
    # o_ref:    (B, NUM_CLASSES)       logits
    # xpad_ref: VMEM scratch (B, C_IN, H+2, W+2) holding the "same" padding

    # padding=1 built inside VMEM (no wrapper-side jnp.pad / extra HBM pass).
    xpad_ref[...] = jnp.zeros_like(xpad_ref)
    xpad_ref[:, :, 1:H + 1, 1:W + 1] = x_ref[...]

    # Mean-pool weights: a (1, H*W) row of 1/(H*W).
    pool_w = jnp.full((1, H * W), 1.0 / float(H * W), jnp.float32)

    pooled_rows = []
    for b in range(B):                                   # B = 2, static unroll
        xp = xpad_ref[b]                                 # (C_IN, H+2, W+2)
        acc = jnp.zeros((C_HID, H * W), jnp.float32)     # lane-dense (8, 256)
        for dy in range(KH):                             # 9 static conv taps
            for dx in range(KW):
                patch = xp[:, dy:dy + H, dx:dx + W].reshape(C_IN, H * W)
                acc = acc + jnp.dot(wa_ref[dy, dx], patch,
                                    preferred_element_type=jnp.float32)
        h = jnp.maximum(acc + ba_ref[...], 0.0)          # bias bcast over lanes
        # Global average pool as a transposed matvec on the MXU:
        #   (1, H*W) . (C_HID, H*W)^T -> (1, C_HID)
        pooled_rows.append(
            jax.lax.dot_general(pool_w, h, (((1,), (1,)), ((), ())),
                                preferred_element_type=jnp.float32))

    pooled = jnp.concatenate(pooled_rows, axis=0)        # (B, C_HID)
    o_ref[...] = (jnp.dot(pooled, wb_ref[...],
                          preferred_element_type=jnp.float32) + bb_ref[...])


def cascade_forward(x_nchw, params):
    """forward(x) = modelB(modelA(x)) — CascadeModel semantics, one kernel."""
    wA, bA, wB, bB = params
    # Tiny one-time weight re-arrangements (~1 KB total) in the wrapper.
    wa_t = jnp.transpose(wA, (0, 1, 3, 2))               # (KH, KW, C_HID, C_IN)
    ba_c = bA.reshape(C_HID, 1)
    bb_r = bB.reshape(1, NUM_CLASSES)

    flops = 2 * B * H * W * KH * KW * C_IN * C_HID + 2 * B * C_HID * NUM_CLASSES
    bytes_accessed = 4 * (x_nchw.size + wa_t.size + ba_c.size + wB.size
                          + bb_r.size + B * NUM_CLASSES)

    return pl.pallas_call(
        _cascade_kernel,
        out_shape=jax.ShapeDtypeStruct((B, NUM_CLASSES), jnp.float32),
        grid=(1,),                                       # single fused step
        in_specs=[
            pl.BlockSpec((B, C_IN, H, W), lambda i: (0, 0, 0, 0)),
            pl.BlockSpec((KH, KW, C_HID, C_IN), lambda i: (0, 0, 0, 0)),
            pl.BlockSpec((C_HID, 1), lambda i: (0, 0)),
            pl.BlockSpec((C_HID, NUM_CLASSES), lambda i: (0, 0)),
            pl.BlockSpec((1, NUM_CLASSES), lambda i: (0, 0)),
        ],
        out_specs=pl.BlockSpec((B, NUM_CLASSES), lambda i: (0, 0)),
        scratch_shapes=[pltpu.VMEM((B, C_IN, H + 2, W + 2), jnp.float32)],
        compiler_params=pltpu.CompilerParams(
            dimension_semantics=("arbitrary",)),
        cost_estimate=pl.CostEstimate(
            flops=flops, transcendentals=0, bytes_accessed=bytes_accessed),
    )(x_nchw, wa_t, ba_c, wB, bb_r)


# ---------------------------------------------------------------------------
# Pure-JAX reference for correctness checking
# ---------------------------------------------------------------------------
def _reference_forward(x_nchw, params):
    wA, bA, wB, bB = params
    x = jnp.transpose(x_nchw, (0, 2, 3, 1))              # NCHW -> NHWC
    conv = jax.lax.conv_general_dilated(
        x, wA, window_strides=(1, 1), padding="SAME",
        dimension_numbers=("NHWC", "HWIO", "NHWC"))
    h = jnp.maximum(conv + bA.reshape(1, 1, 1, C_HID), 0.0)
    pooled = jnp.mean(h, axis=(1, 2))                    # (B, C_HID)
    return pooled @ wB + bB.reshape(1, NUM_CLASSES)


def init_params(key):
    kA, kB, kC, kD = jax.random.split(key, 4)
    wA = jax.random.normal(kA, (KH, KW, C_IN, C_HID), jnp.float32) * 0.1
    bA = jax.random.normal(kB, (C_HID,), jnp.float32) * 0.01
    wB = jax.random.normal(kC, (C_HID, NUM_CLASSES), jnp.float32) * 0.1
    bB = jax.random.normal(kD, (NUM_CLASSES,), jnp.float32) * 0.01
    return wA, bA, wB, bB


if __name__ == "__main__":
    key = jax.random.PRNGKey(0)
    kx, kp = jax.random.split(key)
    x = jax.random.normal(kx, (B, C_IN, H, W), jnp.float32)   # PyTorch NCHW
    params = init_params(kp)

    out = cascade_forward(x, params)
    out = jax.block_until_ready(out)

    ref = jax.block_until_ready(_reference_forward(x, params))
    assert out.shape == (B, NUM_CLASSES)
    assert jnp.allclose(out, ref, atol=1e-4, rtol=1e-4), (
        f"max abs err {jnp.max(jnp.abs(out - ref))}")

    print("KERNEL_OK")
</pallas_src>

<mosaic_0001>
module attributes {stable_mosaic.version = 11 : i64} {
  func.func @_cascade_kernel(%arg0: i32, %arg1: memref<2x4x16x16xf32, #tpu.memory_space<vmem>>, %arg2: memref<3x3x8x4xf32, #tpu.memory_space<vmem>>, %arg3: memref<8x1xf32, #tpu.memory_space<vmem>>, %arg4: memref<8x10xf32, #tpu.memory_space<vmem>>, %arg5: memref<1x10xf32, #tpu.memory_space<vmem>>, %arg6: memref<2x10xf32, #tpu.memory_space<vmem>>, %arg7: memref<2x4x18x18xf32, #tpu.memory_space<vmem>>) attributes {dimension_semantics = [#tpu.dimension_semantics<arbitrary>], iteration_bounds = array<i64: 1>, scalar_prefetch = 0 : i64, scratch_operands = 1 : i64, tpu.core_type = #tpu.core_type<tc>, window_params = [{pipeline_mode = #tpu.pipeline_mode<synchronous>, transform_indices = @transform_0, window_bounds = array<i64: 2, 4, 16, 16>}, {pipeline_mode = #tpu.pipeline_mode<synchronous>, transform_indices = @transform_1, window_bounds = array<i64: 3, 3, 8, 4>}, {pipeline_mode = #tpu.pipeline_mode<synchronous>, transform_indices = @transform_2, window_bounds = array<i64: 8, 1>}, {pipeline_mode = #tpu.pipeline_mode<synchronous>, transform_indices = @transform_3, window_bounds = array<i64: 8, 10>}, {pipeline_mode = #tpu.pipeline_mode<synchronous>, transform_indices = @transform_4, window_bounds = array<i64: 1, 10>}, {pipeline_mode = #tpu.pipeline_mode<synchronous>, transform_indices = @transform_5, window_bounds = array<i64: 2, 10>}]} {
    %cst = arith.constant 0.000000e+00 : f32
    %0 = vector.broadcast %cst : f32 to vector<2x4x18x18xf32>
    %c0 = arith.constant 0 : index
    %c0_0 = arith.constant 0 : index
    %c0_1 = arith.constant 0 : index
    %c0_2 = arith.constant 0 : index
    %1 = vector.load %arg7[%c0, %c0_0, %c0_1, %c0_2] : memref<2x4x18x18xf32, #tpu.memory_space<vmem>>, vector<2x4x18x18xf32>
    tpu.vector_store %arg7[%c0, %c0_0, %c0_1, %c0_2], %0 {strides = array<i32>} : memref<2x4x18x18xf32, #tpu.memory_space<vmem>>, vector<2x4x18x18xf32>,
    %c0_3 = arith.constant 0 : index
    %c0_4 = arith.constant 0 : index
    %c0_5 = arith.constant 0 : index
    %c0_6 = arith.constant 0 : index
    %2 = vector.load %arg1[%c0_3, %c0_4, %c0_5, %c0_6] : memref<2x4x16x16xf32, #tpu.memory_space<vmem>>, vector<2x4x16x16xf32>
    %c0_7 = arith.constant 0 : index
    %c0_8 = arith.constant 0 : index
    %c1 = arith.constant 1 : index
    %c1_9 = arith.constant 1 : index
    %3 = vector.load %arg7[%c0_7, %c0_8, %c1, %c1_9] : memref<2x4x18x18xf32, #tpu.memory_space<vmem>>, vector<2x4x16x16xf32>
    tpu.vector_store %arg7[%c0_7, %c0_8, %c1, %c1_9], %2 {strides = array<i32>} : memref<2x4x18x18xf32, #tpu.memory_space<vmem>>, vector<2x4x16x16xf32>,
    %cst_10 = arith.constant 3.906250e-03 : f32
    %4 = vector.broadcast %cst_10 : f32 to vector<1x256xf32>
    %c0_11 = arith.constant 0 : index
    %c0_12 = arith.constant 0 : index
    %c0_13 = arith.constant 0 : index
    %c0_14 = arith.constant 0 : index
    %5 = vector.load %arg7[%c0_11, %c0_12, %c0_13, %c0_14] : memref<2x4x18x18xf32, #tpu.memory_space<vmem>>, vector<1x4x18x18xf32>
    %6 = vector.shape_cast %5 : vector<1x4x18x18xf32> to vector<4x18x18xf32>
    %cst_15 = arith.constant 0.000000e+00 : f32
    %7 = vector.broadcast %cst_15 : f32 to vector<8x256xf32>
    %8 = vector.extract_strided_slice %6 {offsets = [0, 0, 0], sizes = [4, 16, 16], strides = [1, 1, 1]} : vector<4x18x18xf32> to vector<4x16x16xf32>
    %9 = vector.shape_cast %8 : vector<4x16x16xf32> to vector<4x256xf32>
    %c0_16 = arith.constant 0 : index
    %c0_17 = arith.constant 0 : index
    %c0_18 = arith.constant 0 : index
    %c0_19 = arith.constant 0 : index
    %10 = vector.load %arg2[%c0_16, %c0_17, %c0_18, %c0_19] : memref<3x3x8x4xf32, #tpu.memory_space<vmem>>, vector<1x1x8x4xf32>
    %11 = vector.shape_cast %10 : vector<1x1x8x4xf32> to vector<8x4xf32>
    %cst_20 = arith.constant dense<0.000000e+00> : vector<8x256xf32>
    %12 = tpu.matmul %11, %9, %cst_20 {dimension_numbers = #tpu.dot_dimension_numbers<[1], [0], [0], [1], [0, 0, 1, 1], [], []>} : vector<8x4xf32>, vector<4x256xf32>, vector<8x256xf32> -> vector<8x256xf32>
    %13 = arith.addf %7, %12 : vector<8x256xf32>
    %14 = vector.extract_strided_slice %6 {offsets = [0, 0, 1], sizes = [4, 16, 16], strides = [1, 1, 1]} : vector<4x18x18xf32> to vector<4x16x16xf32>
    %15 = vector.shape_cast %14 : vector<4x16x16xf32> to vector<4x256xf32>
    %c0_21 = arith.constant 0 : index
    %c1_22 = arith.constant 1 : index
    %c0_23 = arith.constant 0 : index
    %c0_24 = arith.constant 0 : index
    %16 = vector.load %arg2[%c0_21, %c1_22, %c0_23, %c0_24] : memref<3x3x8x4xf32, #tpu.memory_space<vmem>>, vector<1x1x8x4xf32>
    %17 = vector.shape_cast %16 : vector<1x1x8x4xf32> to vector<8x4xf32>
    %cst_25 = arith.constant dense<0.000000e+00> : vector<8x256xf32>
    %18 = tpu.matmul %17, %15, %cst_25 {dimension_numbers = #tpu.dot_dimension_numbers<[1], [0], [0], [1], [0, 0, 1, 1], [], []>} : vector<8x4xf32>, vector<4x256xf32>, vector<8x256xf32> -> vector<8x256xf32>
    %19 = arith.addf %13, %18 : vector<8x256xf32>
    %20 = vector.extract_strided_slice %6 {offsets = [0, 0, 2], sizes = [4, 16, 16], strides = [1, 1, 1]} : vector<4x18x18xf32> to vector<4x16x16xf32>
    %21 = vector.shape_cast %20 : vector<4x16x16xf32> to vector<4x256xf32>
    %c0_26 = arith.constant 0 : index
    %c2 = arith.constant 2 : index
    %c0_27 = arith.constant 0 : index
    %c0_28 = arith.constant 0 : index
    %22 = vector.load %arg2[%c0_26, %c2, %c0_27, %c0_28] : memref<3x3x8x4xf32, #tpu.memory_space<vmem>>, vector<1x1x8x4xf32>
    %23 = vector.shape_cast %22 : vector<1x1x8x4xf32> to vector<8x4xf32>
    %cst_29 = arith.constant dense<0.000000e+00> : vector<8x256xf32>
    %24 = tpu.matmul %23, %21, %cst_29 {dimension_numbers = #tpu.dot_dimension_numbers<[1], [0], [0], [1], [0, 0, 1, 1], [], []>} : vector<8x4xf32>, vector<4x256xf32>, vector<8x256xf32> -> vector<8x256xf32>
    %25 = arith.addf %19, %24 : vector<8x256xf32>
    %26 = vector.extract_strided_slice %6 {offsets = [0, 1, 0], sizes = [4, 16, 16], strides = [1, 1, 1]} : vector<4x18x18xf32> to vector<4x16x16xf32>
    %27 = vector.shape_cast %26 : vector<4x16x16xf32> to vector<4x256xf32>
    %c1_30 = arith.constant 1 : index
    %c0_31 = arith.constant 0 : index
    %c0_32 = arith.constant 0 : index
    %c0_33 = arith.constant 0 : index
    %28 = vector.load %arg2[%c1_30, %c0_31, %c0_32, %c0_33] : memref<3x3x8x4xf32, #tpu.memory_space<vmem>>, vector<1x1x8x4xf32>
    %29 = vector.shape_cast %28 : vector<1x1x8x4xf32> to vector<8x4xf32>
    %cst_34 = arith.constant dense<0.000000e+00> : vector<8x256xf32>
    %30 = tpu.matmul %29, %27, %cst_34 {dimension_numbers = #tpu.dot_dimension_numbers<[1], [0], [0], [1], [0, 0, 1, 1], [], []>} : vector<8x4xf32>, vector<4x256xf32>, vector<8x256xf32> -> vector<8x256xf32>
    %31 = arith.addf %25, %30 : vector<8x256xf32>
    %32 = vector.extract_strided_slice %6 {offsets = [0, 1, 1], sizes = [4, 16, 16], strides = [1, 1, 1]} : vector<4x18x18xf32> to vector<4x16x16xf32>
    %33 = vector.shape_cast %32 : vector<4x16x16xf32> to vector<4x256xf32>
    %c1_35 = arith.constant 1 : index
    %c1_36 = arith.constant 1 : index
    %c0_37 = arith.constant 0 : index
    %c0_38 = arith.constant 0 : index
    %34 = vector.load %arg2[%c1_35, %c1_36, %c0_37, %c0_38] : memref<3x3x8x4xf32, #tpu.memory_space<vmem>>, vector<1x1x8x4xf32>
    %35 = vector.shape_cast %34 : vector<1x1x8x4xf32> to vector<8x4xf32>
    %cst_39 = arith.constant dense<0.000000e+00> : vector<8x256xf32>
    %36 = tpu.matmul %35, %33, %cst_39 {dimension_numbers = #tpu.dot_dimension_numbers<[1], [0], [0], [1], [0, 0, 1, 1], [], []>} : vector<8x4xf32>, vector<4x256xf32>, vector<8x256xf32> -> vector<8x256xf32>
    %37 = arith.addf %31, %36 : vector<8x256xf32>
    %38 = vector.extract_strided_slice %6 {offsets = [0, 1, 2], sizes = [4, 16, 16], strides = [1, 1, 1]} : vector<4x18x18xf32> to vector<4x16x16xf32>
    %39 = vector.shape_cast %38 : vector<4x16x16xf32> to vector<4x256xf32>
    %c1_40 = arith.constant 1 : index
    %c2_41 = arith.constant 2 : index
    %c0_42 = arith.constant 0 : index
    %c0_43 = arith.constant 0 : index
    %40 = vector.load %arg2[%c1_40, %c2_41, %c0_42, %c0_43] : memref<3x3x8x4xf32, #tpu.memory_space<vmem>>, vector<1x1x8x4xf32>
    %41 = vector.shape_cast %40 : vector<1x1x8x4xf32> to vector<8x4xf32>
    %cst_44 = arith.constant dense<0.000000e+00> : vector<8x256xf32>
    %42 = tpu.matmul %41, %39, %cst_44 {dimension_numbers = #tpu.dot_dimension_numbers<[1], [0], [0], [1], [0, 0, 1, 1], [], []>} : vector<8x4xf32>, vector<4x256xf32>, vector<8x256xf32> -> vector<8x256xf32>
    %43 = arith.addf %37, %42 : vector<8x256xf32>
    %44 = vector.extract_strided_slice %6 {offsets = [0, 2, 0], sizes = [4, 16, 16], strides = [1, 1, 1]} : vector<4x18x18xf32> to vector<4x16x16xf32>
    %45 = vector.shape_cast %44 : vector<4x16x16xf32> to vector<4x256xf32>
    %c2_45 = arith.constant 2 : index
    %c0_46 = arith.constant 0 : index
    %c0_47 = arith.constant 0 : index
    %c0_48 = arith.constant 0 : index
    %46 = vector.load %arg2[%c2_45, %c0_46, %c0_47, %c0_48] : memref<3x3x8x4xf32, #tpu.memory_space<vmem>>, vector<1x1x8x4xf32>
    %47 = vector.shape_cast %46 : vector<1x1x8x4xf32> to vector<8x4xf32>
    %cst_49 = arith.constant dense<0.000000e+00> : vector<8x256xf32>
    %48 = tpu.matmul %47, %45, %cst_49 {dimension_numbers = #tpu.dot_dimension_numbers<[1], [0], [0], [1], [0, 0, 1, 1], [], []>} : vector<8x4xf32>, vector<4x256xf32>, vector<8x256xf32> -> vector<8x256xf32>
    %49 = arith.addf %43, %48 : vector<8x256xf32>
    %50 = vector.extract_strided_slice %6 {offsets = [0, 2, 1], sizes = [4, 16, 16], strides = [1, 1, 1]} : vector<4x18x18xf32> to vector<4x16x16xf32>
    %51 = vector.shape_cast %50 : vector<4x16x16xf32> to vector<4x256xf32>
    %c2_50 = arith.constant 2 : index
    %c1_51 = arith.constant 1 : index
    %c0_52 = arith.constant 0 : index
    %c0_53 = arith.constant 0 : index
    %52 = vector.load %arg2[%c2_50, %c1_51, %c0_52, %c0_53] : memref<3x3x8x4xf32, #tpu.memory_space<vmem>>, vector<1x1x8x4xf32>
    %53 = vector.shape_cast %52 : vector<1x1x8x4xf32> to vector<8x4xf32>
    %cst_54 = arith.constant dense<0.000000e+00> : vector<8x256xf32>
    %54 = tpu.matmul %53, %51, %cst_54 {dimension_numbers = #tpu.dot_dimension_numbers<[1], [0], [0], [1], [0, 0, 1, 1], [], []>} : vector<8x4xf32>, vector<4x256xf32>, vector<8x256xf32> -> vector<8x256xf32>
    %55 = arith.addf %49, %54 : vector<8x256xf32>
    %56 = vector.extract_strided_slice %6 {offsets = [0, 2, 2], sizes = [4, 16, 16], strides = [1, 1, 1]} : vector<4x18x18xf32> to vector<4x16x16xf32>
    %57 = vector.shape_cast %56 : vector<4x16x16xf32> to vector<4x256xf32>
    %c2_55 = arith.constant 2 : index
    %c2_56 = arith.constant 2 : index
    %c0_57 = arith.constant 0 : index
    %c0_58 = arith.constant 0 : index
    %58 = vector.load %arg2[%c2_55, %c2_56, %c0_57, %c0_58] : memref<3x3x8x4xf32, #tpu.memory_space<vmem>>, vector<1x1x8x4xf32>
    %59 = vector.shape_cast %58 : vector<1x1x8x4xf32> to vector<8x4xf32>
    %cst_59 = arith.constant dense<0.000000e+00> : vector<8x256xf32>
    %60 = tpu.matmul %59, %57, %cst_59 {dimension_numbers = #tpu.dot_dimension_numbers<[1], [0], [0], [1], [0, 0, 1, 1], [], []>} : vector<8x4xf32>, vector<4x256xf32>, vector<8x256xf32> -> vector<8x256xf32>
    %61 = arith.addf %55, %60 : vector<8x256xf32>
    %c0_60 = arith.constant 0 : index
    %c0_61 = arith.constant 0 : index
    %62 = vector.load %arg3[%c0_60, %c0_61] : memref<8x1xf32, #tpu.memory_space<vmem>>, vector<8x1xf32>
    %63 = vector.broadcast %62 : vector<8x1xf32> to vector<8x256xf32>
    %64 = arith.addf %61, %63 : vector<8x256xf32>
    %cst_62 = arith.constant 0.000000e+00 : f32
    %65 = vector.broadcast %cst_62 : f32 to vector<8x256xf32>
    %66 = arith.maximumf %64, %65 : vector<8x256xf32>
    %cst_63 = arith.constant dense<0.000000e+00> : vector<1x8xf32>
    %67 = tpu.matmul %4, %66, %cst_63 {dimension_numbers = #tpu.dot_dimension_numbers<[1], [1], [0], [0], [0, 0, 1, 0], [], []>} : vector<1x256xf32>, vector<8x256xf32>, vector<1x8xf32> -> vector<1x8xf32>
    %c1_64 = arith.constant 1 : index
    %c0_65 = arith.constant 0 : index
    %c0_66 = arith.constant 0 : index
    %c0_67 = arith.constant 0 : index
    %68 = vector.load %arg7[%c1_64, %c0_65, %c0_66, %c0_67] : memref<2x4x18x18xf32, #tpu.memory_space<vmem>>, vector<1x4x18x18xf32>
    %69 = vector.shape_cast %68 : vector<1x4x18x18xf32> to vector<4x18x18xf32>
    %cst_68 = arith.constant 0.000000e+00 : f32
    %70 = vector.broadcast %cst_68 : f32 to vector<8x256xf32>
    %71 = vector.extract_strided_slice %69 {offsets = [0, 0, 0], sizes = [4, 16, 16], strides = [1, 1, 1]} : vector<4x18x18xf32> to vector<4x16x16xf32>
    %72 = vector.shape_cast %71 : vector<4x16x16xf32> to vector<4x256xf32>
    %c0_69 = arith.constant 0 : index
    %c0_70 = arith.constant 0 : index
    %c0_71 = arith.constant 0 : index
    %c0_72 = arith.constant 0 : index
    %73 = vector.load %arg2[%c0_69, %c0_70, %c0_71, %c0_72] : memref<3x3x8x4xf32, #tpu.memory_space<vmem>>, vector<1x1x8x4xf32>
    %74 = vector.shape_cast %73 : vector<1x1x8x4xf32> to vector<8x4xf32>
    %cst_73 = arith.constant dense<0.000000e+00> : vector<8x256xf32>
    %75 = tpu.matmul %74, %72, %cst_73 {dimension_numbers = #tpu.dot_dimension_numbers<[1], [0], [0], [1], [0, 0, 1, 1], [], []>} : vector<8x4xf32>, vector<4x256xf32>, vector<8x256xf32> -> vector<8x256xf32>
    %76 = arith.addf %70, %75 : vector<8x256xf32>
    %77 = vector.extract_strided_slice %69 {offsets = [0, 0, 1], sizes = [4, 16, 16], strides = [1, 1, 1]} : vector<4x18x18xf32> to vector<4x16x16xf32>
    %78 = vector.shape_cast %77 : vector<4x16x16xf32> to vector<4x256xf32>
    %c0_74 = arith.constant 0 : index
    %c1_75 = arith.constant 1 : index
    %c0_76 = arith.constant 0 : index
    %c0_77 = arith.constant 0 : index
    %79 = vector.load %arg2[%c0_74, %c1_75, %c0_76, %c0_77] : memref<3x3x8x4xf32, #tpu.memory_space<vmem>>, vector<1x1x8x4xf32>
    %80 = vector.shape_cast %79 : vector<1x1x8x4xf32> to vector<8x4xf32>
    %cst_78 = arith.constant dense<0.000000e+00> : vector<8x256xf32>
    %81 = tpu.matmul %80, %78, %cst_78 {dimension_numbers = #tpu.dot_dimension_numbers<[1], [0], [0], [1], [0, 0, 1, 1], [], []>} : vector<8x4xf32>, vector<4x256xf32>, vector<8x256xf32> -> vector<8x256xf32>
    %82 = arith.addf %76, %81 : vector<8x256xf32>
    %83 = vector.extract_strided_slice %69 {offsets = [0, 0, 2], sizes = [4, 16, 16], strides = [1, 1, 1]} : vector<4x18x18xf32> to vector<4x16x16xf32>
    %84 = vector.shape_cast %83 : vector<4x16x16xf32> to vector<4x256xf32>
    %c0_79 = arith.constant 0 : index
    %c2_80 = arith.constant 2 : index
    %c0_81 = arith.constant 0 : index
    %c0_82 = arith.constant 0 : index
    %85 = vector.load %arg2[%c0_79, %c2_80, %c0_81, %c0_82] : memref<3x3x8x4xf32, #tpu.memory_space<vmem>>, vector<1x1x8x4xf32>
    %86 = vector.shape_cast %85 : vector<1x1x8x4xf32> to vector<8x4xf32>
    %cst_83 = arith.constant dense<0.000000e+00> : vector<8x256xf32>
    %87 = tpu.matmul %86, %84, %cst_83 {dimension_numbers = #tpu.dot_dimension_numbers<[1], [0], [0], [1], [0, 0, 1, 1], [], []>} : vector<8x4xf32>, vector<4x256xf32>, vector<8x256xf32> -> vector<8x256xf32>
    %88 = arith.addf %82, %87 : vector<8x256xf32>
    %89 = vector.extract_strided_slice %69 {offsets = [0, 1, 0], sizes = [4, 16, 16], strides = [1, 1, 1]} : vector<4x18x18xf32> to vector<4x16x16xf32>
    %90 = vector.shape_cast %89 : vector<4x16x16xf32> to vector<4x256xf32>
    %c1_84 = arith.constant 1 : index
    %c0_85 = arith.constant 0 : index
    %c0_86 = arith.constant 0 : index
    %c0_87 = arith.constant 0 : index
    %91 = vector.load %arg2[%c1_84, %c0_85, %c0_86, %c0_87] : memref<3x3x8x4xf32, #tpu.memory_space<vmem>>, vector<1x1x8x4xf32>
    %92 = vector.shape_cast %91 : vector<1x1x8x4xf32> to vector<8x4xf32>
    %cst_88 = arith.constant dense<0.000000e+00> : vector<8x256xf32>
    %93 = tpu.matmul %92, %90, %cst_88 {dimension_numbers = #tpu.dot_dimension_numbers<[1], [0], [0], [1], [0, 0, 1, 1], [], []>} : vector<8x4xf32>, vector<4x256xf32>, vector<8x256xf32> -> vector<8x256xf32>
    %94 = arith.addf %88, %93 : vector<8x256xf32>
    %95 = vector.extract_strided_slice %69 {offsets = [0, 1, 1], sizes = [4, 16, 16], strides = [1, 1, 1]} : vector<4x18x18xf32> to vector<4x16x16xf32>
    %96 = vector.shape_cast %95 : vector<4x16x16xf32> to vector<4x256xf32>
    %c1_89 = arith.constant 1 : index
    %c1_90 = arith.constant 1 : index
    %c0_91 = arith.constant 0 : index
    %c0_92 = arith.constant 0 : index
    %97 = vector.load %arg2[%c1_89, %c1_90, %c0_91, %c0_92] : memref<3x3x8x4xf32, #tpu.memory_space<vmem>>, vector<1x1x8x4xf32>
    %98 = vector.shape_cast %97 : vector<1x1x8x4xf32> to vector<8x4xf32>
    %cst_93 = arith.constant dense<0.000000e+00> : vector<8x256xf32>
    %99 = tpu.matmul %98, %96, %cst_93 {dimension_numbers = #tpu.dot_dimension_numbers<[1], [0], [0], [1], [0, 0, 1, 1], [], []>} : vector<8x4xf32>, vector<4x256xf32>, vector<8x256xf32> -> vector<8x256xf32>
    %100 = arith.addf %94, %99 : vector<8x256xf32>
    %101 = vector.extract_strided_slice %69 {offsets = [0, 1, 2], sizes = [4, 16, 16], strides = [1, 1, 1]} : vector<4x18x18xf32> to vector<4x16x16xf32>
    %102 = vector.shape_cast %101 : vector<4x16x16xf32> to vector<4x256xf32>
    %c1_94 = arith.constant 1 : index
    %c2_95 = arith.constant 2 : index
    %c0_96 = arith.constant 0 : index
    %c0_97 = arith.constant 0 : index
    %103 = vector.load %arg2[%c1_94, %c2_95, %c0_96, %c0_97] : memref<3x3x8x4xf32, #tpu.memory_space<vmem>>, vector<1x1x8x4xf32>
    %104 = vector.shape_cast %103 : vector<1x1x8x4xf32> to vector<8x4xf32>
    %cst_98 = arith.constant dense<0.000000e+00> : vector<8x256xf32>
    %105 = tpu.matmul %104, %102, %cst_98 {dimension_numbers = #tpu.dot_dimension_numbers<[1], [0], [0], [1], [0, 0, 1, 1], [], []>} : vector<8x4xf32>, vector<4x256xf32>, vector<8x256xf32> -> vector<8x256xf32>
    %106 = arith.addf %100, %105 : vector<8x256xf32>
    %107 = vector.extract_strided_slice %69 {offsets = [0, 2, 0], sizes = [4, 16, 16], strides = [1, 1, 1]} : vector<4x18x18xf32> to vector<4x16x16xf32>
    %108 = vector.shape_cast %107 : vector<4x16x16xf32> to vector<4x256xf32>
    %c2_99 = arith.constant 2 : index
    %c0_100 = arith.constant 0 : index
    %c0_101 = arith.constant 0 : index
    %c0_102 = arith.constant 0 : index
    %109 = vector.load %arg2[%c2_99, %c0_100, %c0_101, %c0_102] : memref<3x3x8x4xf32, #tpu.memory_space<vmem>>, vector<1x1x8x4xf32>
    %110 = vector.shape_cast %109 : vector<1x1x8x4xf32> to vector<8x4xf32>
    %cst_103 = arith.constant dense<0.000000e+00> : vector<8x256xf32>
    %111 = tpu.matmul %110, %108, %cst_103 {dimension_numbers = #tpu.dot_dimension_numbers<[1], [0], [0], [1], [0, 0, 1, 1], [], []>} : vector<8x4xf32>, vector<4x256xf32>, vector<8x256xf32> -> vector<8x256xf32>
    %112 = arith.addf %106, %111 : vector<8x256xf32>
    %113 = vector.extract_strided_slice %69 {offsets = [0, 2, 1], sizes = [4, 16, 16], strides = [1, 1, 1]} : vector<4x18x18xf32> to vector<4x16x16xf32>
    %114 = vector.shape_cast %113 : vector<4x16x16xf32> to vector<4x256xf32>
    %c2_104 = arith.constant 2 : index
    %c1_105 = arith.constant 1 : index
    %c0_106 = arith.constant 0 : index
    %c0_107 = arith.constant 0 : index
    %115 = vector.load %arg2[%c2_104, %c1_105, %c0_106, %c0_107] : memref<3x3x8x4xf32, #tpu.memory_space<vmem>>, vector<1x1x8x4xf32>
    %116 = vector.shape_cast %115 : vector<1x1x8x4xf32> to vector<8x4xf32>
    %cst_108 = arith.constant dense<0.000000e+00> : vector<8x256xf32>
    %117 = tpu.matmul %116, %114, %cst_108 {dimension_numbers = #tpu.dot_dimension_numbers<[1], [0], [0], [1], [0, 0, 1, 1], [], []>} : vector<8x4xf32>, vector<4x256xf32>, vector<8x256xf32> -> vector<8x256xf32>
    %118 = arith.addf %112, %117 : vector<8x256xf32>
    %119 = vector.extract_strided_slice %69 {offsets = [0, 2, 2], sizes = [4, 16, 16], strides = [1, 1, 1]} : vector<4x18x18xf32> to vector<4x16x16xf32>
    %120 = vector.shape_cast %119 : vector<4x16x16xf32> to vector<4x256xf32>
    %c2_109 = arith.constant 2 : index
    %c2_110 = arith.constant 2 : index
    %c0_111 = arith.constant 0 : index
    %c0_112 = arith.constant 0 : index
    %121 = vector.load %arg2[%c2_109, %c2_110, %c0_111, %c0_112] : memref<3x3x8x4xf32, #tpu.memory_space<vmem>>, vector<1x1x8x4xf32>
    %122 = vector.shape_cast %121 : vector<1x1x8x4xf32> to vector<8x4xf32>
    %cst_113 = arith.constant dense<0.000000e+00> : vector<8x256xf32>
    %123 = tpu.matmul %122, %120, %cst_113 {dimension_numbers = #tpu.dot_dimension_numbers<[1], [0], [0], [1], [0, 0, 1, 1], [], []>} : vector<8x4xf32>, vector<4x256xf32>, vector<8x256xf32> -> vector<8x256xf32>
    %124 = arith.addf %118, %123 : vector<8x256xf32>
    %c0_114 = arith.constant 0 : index
    %c0_115 = arith.constant 0 : index
    %125 = vector.load %arg3[%c0_114, %c0_115] : memref<8x1xf32, #tpu.memory_space<vmem>>, vector<8x1xf32>
    %126 = vector.broadcast %125 : vector<8x1xf32> to vector<8x256xf32>
    %127 = arith.addf %124, %126 : vector<8x256xf32>
    %cst_116 = arith.constant 0.000000e+00 : f32
    %128 = vector.broadcast %cst_116 : f32 to vector<8x256xf32>
    %129 = arith.maximumf %127, %128 : vector<8x256xf32>
    %cst_117 = arith.constant dense<0.000000e+00> : vector<1x8xf32>
    %130 = tpu.matmul %4, %129, %cst_117 {dimension_numbers = #tpu.dot_dimension_numbers<[1], [1], [0], [0], [0, 0, 1, 0], [], []>} : vector<1x256xf32>, vector<8x256xf32>, vector<1x8xf32> -> vector<1x8xf32>
    %131 = tpu.concatenate %67, %130 in 0 : vector<1x8xf32>, vector<1x8xf32> -> vector<2x8xf32>
    %c0_118 = arith.constant 0 : index
    %c0_119 = arith.constant 0 : index
    %132 = vector.load %arg4[%c0_118, %c0_119] : memref<8x10xf32, #tpu.memory_space<vmem>>, vector<8x10xf32>
    %cst_120 = arith.constant dense<0.000000e+00> : vector<2x10xf32>
    %133 = tpu.matmul %131, %132, %cst_120 {dimension_numbers = #tpu.dot_dimension_numbers<[1], [0], [0], [1], [0, 0, 1, 1], [], []>} : vector<2x8xf32>, vector<8x10xf32>, vector<2x10xf32> -> vector<2x10xf32>
    %c0_121 = arith.constant 0 : index
    %c0_122 = arith.constant 0 : index
    %134 = vector.load %arg5[%c0_121, %c0_122] : memref<1x10xf32, #tpu.memory_space<vmem>>, vector<1x10xf32>
    %135 = vector.broadcast %134 : vector<1x10xf32> to vector<2x10xf32>
    %136 = arith.addf %133, %135 : vector<2x10xf32>
    %c0_123 = arith.constant 0 : index
    %c0_124 = arith.constant 0 : index
    %137 = vector.load %arg6[%c0_123, %c0_124] : memref<2x10xf32, #tpu.memory_space<vmem>>, vector<2x10xf32>
    tpu.vector_store %arg6[%c0_123, %c0_124], %136 {strides = array<i32>} : memref<2x10xf32, #tpu.memory_space<vmem>>, vector<2x10xf32>,
    return
  }
  func.func @transform_0(%arg0: i32) -> (i32, i32, i32, i32) {
    %c0_i32 = arith.constant 0 : i32
    %c0_i32_0 = arith.constant 0 : i32
    %c0_i32_1 = arith.constant 0 : i32
    %c0_i32_2 = arith.constant 0 : i32
    %c0_i32_3 = arith.constant 0 : i32
    return %c0_i32, %c0_i32_0, %c0_i32_1, %c0_i32_2 : i32, i32, i32, i32
  }
  func.func @transform_1(%arg0: i32) -> (i32, i32, i32, i32) {
    %c0_i32 = arith.constant 0 : i32
    %c0_i32_0 = arith.constant 0 : i32
    %c0_i32_1 = arith.constant 0 : i32
    %c0_i32_2 = arith.constant 0 : i32
    %c0_i32_3 = arith.constant 0 : i32
    return %c0_i32, %c0_i32_0, %c0_i32_1, %c0_i32_2 : i32, i32, i32, i32
  }
  func.func @transform_2(%arg0: i32) -> (i32, i32) {
    %c0_i32 = arith.constant 0 : i32
    %c0_i32_0 = arith.constant 0 : i32
    %c0_i32_1 = arith.constant 0 : i32
    return %c0_i32, %c0_i32_0 : i32, i32
  }
  func.func @transform_3(%arg0: i32) -> (i32, i32) {
    %c0_i32 = arith.constant 0 : i32
    %c0_i32_0 = arith.constant 0 : i32
    %c0_i32_1 = arith.constant 0 : i32
    return %c0_i32, %c0_i32_0 : i32, i32
  }
  func.func @transform_4(%arg0: i32) -> (i32, i32) {
    %c0_i32 = arith.constant 0 : i32
    %c0_i32_0 = arith.constant 0 : i32
    %c0_i32_1 = arith.constant 0 : i32
    return %c0_i32, %c0_i32_0 : i32, i32
  }
  func.func @transform_5(%arg0: i32) -> (i32, i32) {
    %c0_i32 = arith.constant 0 : i32
    %c0_i32_0 = arith.constant 0 : i32
    %c0_i32_1 = arith.constant 0 : i32
    return %c0_i32, %c0_i32_0 : i32, i32
  }
}

</mosaic_0001>

<bundles_post_ra>
// kernel: tpu_custom_call.1
= control target key start
LH: loop header
LB: loop body
LE: loop exit
PB: predicated region body
PF: predicated region fallthrough
CT: control target
= control target key end

     0   :  { %10 = vsyncpa [#allocation4], 0  ;;  %s8857_s0 = inlined_call_operand.hbm [shape: f32[2,4,16,16], index: 0, kind: input, shape index: {}]   ;;  %s8858_s1 = inlined_call_operand.vmem [shape: f32[3,3,8,4], index: 1, kind: input, shape index: {}]   ;;  %s8859_s2 = inlined_call_operand.vmem [shape: f32[8,1], index: 2, kind: input, shape index: {}]   ;;  %s8860_s3 = inlined_call_operand.vmem [shape: f32[8,10], index: 3, kind: input, shape index: {}]   ;;  %s8861_s4 = inlined_call_operand.vmem [shape: f32[1,10], index: 4, kind: input, shape index: {}]   ;;  %s8862_s5 = inlined_call_operand.hbm [shape: f32[2,10], index: 5, kind: output, shape index: {}]  }
   0x1   :  { %11 = vsyncpa [#allocation5], 0  ;;  %s6237_s18 = smov [#allocation3]   ;;  %s6189_s22 = scalar_lea.hbm %s8857_s0, 2048 }
   0x2   :  { %s17_s19 = sshll.u32 %s6237_s18, 4  ;;  %p6190_p0 = scmp.ne.s32.totalorder %s8857_s0, %s6189_s22  ;;  %s18_s19 = int_to_ptr.vmem [resolvable:$true] %s17_s19 }
   0x3   :  { %p6193_p1 = scmp.lt.u32.totalorder %s6189_s22, %s8857_s0 }
   0x5   :  { %p6195_p2 = pnand %p6193_p1, %p6190_p0 }
   0x7   :  { %6198 = shalt.err (!%p6195_p2)
}
   0x8   :  { %s6199_s27 = scalar_lea.vmem %s18_s19, 2048  ;;  %p6204_p4 = scmp.lt.s32.totalorder %s18_s19, %s18_s19 }
   0x9   :  { %p6200_p3 = scmp.ne.s32.totalorder %s18_s19, %s6199_s27  ;;  %p6205_p5 = scmp.lt.s32.totalorder %s6199_s27, %s6199_s27 }
   0xb   :  { %p6206_p6 = por %p6205_p5, %p6204_p4 }
   0xd   :  { %p6207_p7 = pnand %p6206_p6, %p6200_p3 }
   0xf   :  { %6210 = shalt.err (!%p6207_p7)
}
  0x10   :  { %s6238_s28 = smov 128   ;;  %s6239_s29 = smov 8  }
  0x11   :  { %23 = dma.hbm_to_vmem [thread:$0]  %s8857_s0, 2048, %s18_s19, [#allocation4], %s6238_s28, %s6238_s28, %s6239_s29  }
  0x12   :  { %6233 = dma.done.wait [#allocation4], 2048  }
  0x13   :  { %6234 = vsyncadd [#allocation4], 4294965248  ;;  %vm35_vm0 = vcmask 146432   ;;  %v8863_v0 = vmov 0.0   ;;  %vm38_vm1 = vcmask 140288   ;;  %v63_v1 = vld [vmem:[#allocation3 + $0x10] sm:$0xff]  ;;  %v175_v15 = vlaneseq }
  0x14   :  { %40 = vst.msk [vmem:[#allocation2 + $0x18] sm:$0xff] %vm35_vm0, %v8863_v0  ;;  %41 = vst.msk [vmem:[#allocation2 + $0x20] sm:$0xff] %vm35_vm0, %v8863_v0  ;;  %699 = vmatprep.mubr.f32.mxu0 %v8863_v0  ;;  %v61_v2 = vld [vmem:[#allocation3] sm:$0xff]  ;;  %s6241_s0 = smov 1   ;;  %v64_v3 = vld [vmem:[#allocation3 + $0x18] sm:$0xff]  ;;  %vm141_vm2 = vcmask 138248  }
  0x15   :  { %36 = vst.msk [vmem:[#allocation2] sm:$0xff] %vm35_vm0, %v8863_v0  ;;  %37 = vst.msk [vmem:[#allocation2 + $0x8] sm:$0xff] %vm35_vm0, %v8863_v0  ;;  %97 = vrot.lane.b32.xlu1 %v63_v1, %s6241_s0  ;;  %93 = vrot.lane.b32.xlu0 %v61_v2, %s6241_s0  ;;  %v62_v4 = vld [vmem:[#allocation3 + $0x8] sm:$0xff]  ;;  %v65_v6 = vld [vmem:[#allocation3 + $0x20] sm:$0xff]  ;;  %v6242_v21 = vmov 1983009808  }
  0x16   :  { %43 = vst.msk [vmem:[#allocation2 + $0x30] sm:$0xff] %vm35_vm0, %v8863_v0  ;;  %44 = vst.msk [vmem:[#allocation2 + $0x38] sm:$0xff] %vm35_vm0, %v8863_v0  ;;  %v66_v5 = vld [vmem:[#allocation3 + $0x28] sm:$0xff]  ;;  %v68_v7 = vld [vmem:[#allocation3 + $0x38] sm:$0xff]  ;;  %v173_v22 = vunpack.c.l.s4 %v6242_v21  ;;  %s6243_s7 = smov 127   ;;  %vm1104_vm3 = vcmask 1046528  }
  0x17   :  { %46 = vst.msk [vmem:[#allocation2 + $0x48] sm:$0xff] %vm35_vm0, %v8863_v0  ;;  %47 = vst.msk [vmem:[#allocation2 + $0x50] sm:$0xff] %vm35_vm0, %v8863_v0  ;;  %v67_v8 = vld [vmem:[#allocation3 + $0x30] sm:$0xff]  ;;  %v6372_v27 = vshrl.u32 %v175_v15, 7  ;;  %s6244_s8 = smov 126   ;;  %vm2051_vm4 = vcmask 1045504  }
  0x18   :  { %49 = vst.msk [vmem:[#allocation2 + $0x60] sm:$0xff] %vm35_vm0, %v8863_v0  ;;  %50 = vst.msk [vmem:[#allocation2 + $0x68] sm:$0xff] %vm35_vm0, %v8863_v0  ;;  %v174_v33 = vunpack.c.0.s8 %v173_v22  ;;  %s6246_s9 = smov 32   ;;  %s6247_s10 = smov 64   ;;  %vm362_vm5 = vcmask 130048   ;;  %vm364_vm6 = vcmask 261120  }
  0x19   :  { %52 = vst.msk [vmem:[#allocation2 + $0x78] sm:$0xff] %vm35_vm0, %v8863_v0  ;;  %53 = vst.msk [vmem:[#allocation2 + $0x80] sm:$0xff] %vm35_vm0, %v8863_v0  ;;  %99 = vrot.lane.b32.xlu1 %v64_v3, %s6241_s0  ;;  %95 = vrot.lane.b32.xlu0 %v62_v4, %s6241_s0  ;;  %s6248_s11 = smov 96   ;;  %s6249_s12 = smov 16   ;;  %vm366_vm7 = vcmask 392192   ;;  %vm368_vm8 = vcmask 523264  }
  0x1a   :  { %55 = vst.msk [vmem:[#allocation2 + $0x90] sm:$0xff] %vm35_vm0, %v8863_v0  ;;  %56 = vst.msk [vmem:[#allocation2 + $0x98] sm:$0xff] %vm35_vm0, %v8863_v0  ;;  %v6457_v3 = vsub.s32 %v174_v33, %v6372_v27  ;;  %s6250_s13 = smov 48   ;;  %s6251_s14 = smov 80   ;;  %vm370_vm9 = vcmask 654336   ;;  %vm372_vm10 = vcmask 785408  }
  0x1b   :  { %58 = vst.msk [vmem:[#allocation2 + $0xa8] sm:$0xff] %vm35_vm0, %v8863_v0  ;;  %59 = vst.msk [vmem:[#allocation2 + $0xb0] sm:$0xff] %vm35_vm0, %v8863_v0  ;;  %s6252_s15 = smov 112   ;;  %vm374_vm11 = vcmask 916480   ;;  %vm628_vm12 = vcmask 1043456   ;;  %vm624_vm13 = vcmask 31744  }
  0x1c   :  { %42 = vst.msk [vmem:[#allocation2 + $0x28] sm:$0x3] %vm38_vm1, %v8863_v0  ;;  %39 = vst.msk [vmem:[#allocation2 + $0x10] sm:$0x3] %vm38_vm1, %v8863_v0  ;;  %vm6255_vm14 = vmmov 0   ;;  %vm5941_vm15 = vcmask 1040384  }
  0x1d   :  { %45 = vst.msk [vmem:[#allocation2 + $0x40] sm:$0x3] %vm38_vm1, %v8863_v0  ;;  %48 = vst.msk [vmem:[#allocation2 + $0x58] sm:$0x3] %vm38_vm1, %v8863_v0  ;;  %103 = vrot.lane.b32.xlu1 %v66_v5, %s6241_s0  ;;  %101 = vrot.lane.b32.xlu0 %v65_v6, %s6241_s0  ;;  %vm5951_vm0 = vcmask 64512   ;;  %s6256_s30 = smov [#allocation6]  }
  0x1e   :  { %51 = vst.msk [vmem:[#allocation2 + $0x70] sm:$0x3] %vm38_vm1, %v8863_v0  ;;  %54 = vst.msk [vmem:[#allocation2 + $0x88] sm:$0x3] %vm38_vm1, %v8863_v0  ;;  %s6033_s6 = sshll.u32 %s6256_s30, 4  ;;  %s6034_s6 = int_to_ptr.vmem [resolvable:$true] %s6033_s6 }
  0x1f   :  { %57 = vst.msk [vmem:[#allocation2 + $0xa0] sm:$0x3] %vm38_vm1, %v8863_v0  ;;  %60 = vst.msk [vmem:[#allocation2 + $0xb8] sm:$0x3] %vm38_vm1, %v8863_v0  ;;  %vm6025_vm1 = vcmask 74752   ;;  %p6216_p9 = scmp.lt.s32.totalorder %s6034_s6, %s6034_s6 }
  0x21   :  { %107 = vrot.lane.b32.xlu1 %v68_v7, %s6241_s0  ;;  %105 = vrot.lane.b32.xlu0 %v67_v8, %s6241_s0 }
  0x87   :  { %v98_v9 = vpop.permute.xlu1 %97  ;;  %v94_v10 = vpop.permute.xlu0 %93 }
  0x88   :  { %144 = vst.msk [vmem:[#allocation2 + $0x19] sm:$0xff] %vm141_vm2, %v98_v9  ;;  %142 = vst.msk [vmem:[#allocation2 + $0x1] sm:$0xff] %vm141_vm2, %v94_v10 }
  0x8b   :  { %v100_v11 = vpop.permute.xlu1 %99  ;;  %v96_v12 = vpop.permute.xlu0 %95 }
  0x8c   :  { %145 = vst.msk [vmem:[#allocation2 + $0x21] sm:$0xff] %vm141_vm2, %v100_v11  ;;  %143 = vst.msk [vmem:[#allocation2 + $0x9] sm:$0xff] %vm141_vm2, %v96_v12 }
  0x8f   :  { %v104_v13 = vpop.permute.xlu1 %103  ;;  %v102_v14 = vpop.permute.xlu0 %101  ;;  %v6366_v23 = vld [vmem:[#allocation2] sm:$0xff]  ;;  %v6388_v38 = vld [vmem:[#allocation2 + $0x18] sm:$0xff] }
  0x90   :  { %147 = vst.msk [vmem:[#allocation2 + $0x39] sm:$0xff] %vm141_vm2, %v104_v13  ;;  %146 = vst.msk [vmem:[#allocation2 + $0x31] sm:$0xff] %vm141_vm2, %v102_v14  ;;  %v1105_v32 = vrot.slane %v6366_v23, 1  ;;  %v1110_v56 = vrot.slane %v6388_v38, 1 }
  0x93   :  { %v108_v16 = vpop.permute.xlu1 %107  ;;  %v106_v17 = vpop.permute.xlu0 %105  ;;  %v6354_v18 = vld [vmem:[#allocation2 + $0x20] sm:$0xff]  ;;  %v6356_v19 = vld [vmem:[#allocation2 + $0x8] sm:$0xff]  ;;  %v6358_v20 = vld [vmem:[#allocation2 + $0x10] sm:$0x3] }
  0x94   :  { %149 = vst.msk [vmem:[#allocation2 + $0x51] sm:$0xff] %vm141_vm2, %v108_v16  ;;  %148 = vst.msk [vmem:[#allocation2 + $0x49] sm:$0xff] %vm141_vm2, %v106_v17  ;;  %398 = vrot.lane.b32.xlu1 %v6354_v18, %s6243_s7  ;;  %394 = vrot.lane.b32.xlu0 %v6356_v19, %s6243_s7  ;;  %v1106_v24 = vrot.slane %v6356_v19, 1  ;;  %v1108_v25 = vrot.slane %v6358_v20, 1  ;;  %v6370_v26 = vld [vmem:[#allocation2 + $0x28] sm:$0x3] }
  0x95   :  { %v1111_v30 = vrot.slane %v6354_v18, 1  ;;  %v1113_v34 = vrot.slane %v6370_v26, 1 }
  0x96   :  { %v6391_v39 = vsel %vm1104_vm3, %v1106_v24, %v1108_v25  ;;  %v6394_v40 = vsel %vm1104_vm3, %v1105_v32, %v1106_v24 }
  0x97   :  { %v6374_v28 = vld [vmem:[#allocation2 + $0x38] sm:$0xff]  ;;  %v6376_v29 = vld [vmem:[#allocation2 + $0x30] sm:$0xff]  ;;  %v6379_v31 = vld [vmem:[#allocation2 + $0x40] sm:$0x3]  ;;  %v6433_v58 = vsel %vm1104_vm3, %v1111_v30, %v1113_v34  ;;  %v6439_v60 = vsel %vm1104_vm3, %v1110_v56, %v1111_v30 }
  0x98   :  { %402 = vrot.lane.b32.xlu0 %v6374_v28, %s6243_s7  ;;  %v1116_v35 = vrot.slane %v6374_v28, 1  ;;  %v1118_v36 = vrot.slane %v6379_v31, 1  ;;  %v1115_v37 = vrot.slane %v6376_v29, 1  ;;  %v238_v41 = vcombine.low %v6356_v19, %v6374_v28 }
  0x99   :  { %v239_v42 = vcombine.high %v6356_v19, %v6374_v28  ;;  %v170_v45 = vcombine.low %v6366_v23, %v6376_v29  ;;  %v171_v46 = vcombine.high %v6366_v23, %v6376_v29 }
  0x9a   :  { %v6401_v43 = vsel %vm1104_vm3, %v1116_v35, %v1118_v36  ;;  %v6404_v44 = vsel %vm1104_vm3, %v1115_v37, %v1116_v35  ;;  %v6466_v5 = vrot.slane %v238_v41, %v6457_v3 }
  0x9b   :  { %v6410_v47 = vld [vmem:[#allocation2 + $0x50] sm:$0xff]  ;;  %v6412_v48 = vld [vmem:[#allocation2 + $0x48] sm:$0xff]  ;;  %v1201_v49 = vcombine.low %v6391_v39, %v6401_v43  ;;  %v1202_v50 = vcombine.high %v6391_v39, %v6401_v43  ;;  %v6418_v51 = vld [vmem:[#allocation2 + $0x58] sm:$0x3]  ;;  %v1133_v52 = vcombine.low %v6394_v40, %v6404_v44  ;;  %v1134_v53 = vcombine.high %v6394_v40, %v6404_v44 }
  0x9c   :  { %406 = vrot.lane.b32.xlu1 %v6410_v47, %s6243_s7  ;;  %392 = vrot.lane.b32.xlu0 %v6366_v23, %s6243_s7  ;;  %v1121_v54 = vrot.slane %v6410_v47, 1  ;;  %v1123_v55 = vrot.slane %v6418_v51, 1  ;;  %v1120_v57 = vrot.slane %v6412_v48, 1  ;;  %v254_v4 = vcombine.low %v6354_v18, %v6410_v47 }
  0x9d   :  { %v255_v7 = vcombine.high %v6354_v18, %v6410_v47  ;;  %v186_v8 = vcombine.low %v6388_v38, %v6412_v48  ;;  %v6478_v10 = vrot.slane %v239_v42, %v6457_v3  ;;  %v187_v11 = vcombine.high %v6388_v38, %v6412_v48 }
  0x9e   :  { %v6436_v59 = vsel %vm1104_vm3, %v1121_v54, %v1123_v55  ;;  %v6442_v61 = vsel %vm1104_vm3, %v1120_v57, %v1121_v54  ;;  %v6469_v6 = vrot.slane %v254_v4, %v6457_v3  ;;  %v6486_v13 = vrot.slane %v170_v45, %v6457_v3 }
  0x9f   :  { %v1217_v62 = vcombine.low %v6433_v58, %v6436_v59  ;;  %v1218_v63 = vcombine.high %v6433_v58, %v6436_v59  ;;  %v1149_v1 = vcombine.low %v6439_v60, %v6442_v61  ;;  %v1150_v2 = vcombine.high %v6439_v60, %v6442_v61 }
  0xa0   :  { %396 = vrot.lane.b32.xlu1 %v6388_v38, %s6243_s7  ;;  %400 = vrot.lane.b32.xlu0 %v6376_v29, %s6243_s7  ;;  %v271_v9 = vcombine.high %v6466_v5, %v6469_v6  ;;  %v6483_v12 = vrot.slane %v255_v7, %v6457_v3  ;;  %v6489_v14 = vrot.slane %v186_v8, %v6457_v3 }
  0xa1   :  { %v270_v15 = vcombine.low %v6466_v5, %v6469_v6  ;;  %v6498_v16 = vrot.slane %v171_v46, %v6457_v3  ;;  %v6501_v17 = vrot.slane %v187_v11, %v6457_v3  ;;  %v6510_v25 = vrot.slane %v1217_v62, %v6457_v3 }
  0xa2   :  { %v286_v21 = vcombine.low %v6478_v10, %v6483_v12  ;;  %v203_v22 = vcombine.high %v6486_v13, %v6489_v14  ;;  %v287_v24 = vcombine.high %v6478_v10, %v6483_v12  ;;  %v202_v33 = vcombine.low %v6486_v13, %v6489_v14 }
  0xa3   :  { %v218_v30 = vcombine.low %v6498_v16, %v6501_v17  ;;  %v219_v32 = vcombine.high %v6498_v16, %v6501_v17  ;;  %v6519_v34 = vrot.slane %v1201_v49, %v6457_v3  ;;  %v6530_v37 = vrot.slane %v1133_v52, %v6457_v3 }
  0xa4   :  { %404 = vrot.lane.b32.xlu1 %v6412_v48, %s6243_s7  ;;  %788 = vrot.lane.b32.xlu0 %v6356_v19, %s6244_s8  ;;  %v6533_v41 = vrot.slane %v1149_v1, %v6457_v3  ;;  %v6540_v42 = vrot.slane %v1202_v50, %v6457_v3  ;;  %v6543_v45 = vrot.slane %v1218_v63, %v6457_v3  ;;  %v2055_v62 = vrot.slane %v6358_v20, 2 }
  0xa5   :  { %v1234_v35 = vcombine.high %v6519_v34, %v6510_v25  ;;  %v1233_v36 = vcombine.low %v6519_v34, %v6510_v25  ;;  %v6550_v52 = vrot.slane %v1134_v53, %v6457_v3  ;;  %v6553_v54 = vrot.slane %v1150_v2, %v6457_v3 }
  0xa6   :  { %v1166_v46 = vcombine.high %v6530_v37, %v6533_v41  ;;  %v1165_v49 = vcombine.low %v6530_v37, %v6533_v41  ;;  %v1249_v55 = vcombine.low %v6540_v42, %v6543_v45  ;;  %v1250_v50 = vcombine.high %v6540_v42, %v6543_v45 }
  0xa7   :  { %v1181_v56 = vcombine.low %v6550_v52, %v6553_v54  ;;  %v1182_v57 = vcombine.high %v6550_v52, %v6553_v54  ;;  %v2053_v53 = vrot.slane %v6356_v19, 2  ;;  %v2065_v19 = vrot.slane %v6379_v31, 2 }
  0xa8   :  { %792 = vrot.lane.b32.xlu1 %v6354_v18, %s6244_s8  ;;  %796 = vrot.lane.b32.xlu0 %v6374_v28, %s6244_s8 }
  0xac   :  { %800 = vrot.lane.b32.xlu1 %v6410_v47, %s6244_s8  ;;  %786 = vrot.lane.b32.xlu0 %v6366_v23, %s6244_s8 }
  0xb0   :  { %790 = vrot.lane.b32.xlu1 %v6388_v38, %s6244_s8  ;;  %794 = vrot.lane.b32.xlu0 %v6376_v29, %s6244_s8 }
  0xb4   :  { %798 = vrot.lane.b32.xlu1 %v6412_v48, %s6244_s8  ;;  %1425 = vrot.lane.b32.xlu0 %v6391_v39, %s6243_s7 }
  0xb8   :  { %1429 = vrot.lane.b32.xlu1 %v6433_v58, %s6243_s7  ;;  %1433 = vrot.lane.b32.xlu0 %v6401_v43, %s6243_s7 }
  0xbc   :  { %1437 = vrot.lane.b32.xlu1 %v6436_v59, %s6243_s7  ;;  %1423 = vrot.lane.b32.xlu0 %v6394_v40, %s6243_s7 }
  0xc0   :  { %1427 = vrot.lane.b32.xlu1 %v6439_v60, %s6243_s7  ;;  %1431 = vrot.lane.b32.xlu0 %v6404_v44, %s6243_s7 }
  0xc4   :  { %1435 = vrot.lane.b32.xlu1 %v6442_v61, %s6243_s7  ;;  %1739 = vrot.lane.b32.xlu0 %v6391_v39, %s6244_s8  ;;  %v2058_v39 = vrot.slane %v6354_v18, 2 }
  0xc8   :  { %1743 = vrot.lane.b32.xlu1 %v6433_v58, %s6244_s8  ;;  %1747 = vrot.lane.b32.xlu0 %v6401_v43, %s6244_s8  ;;  %v6599_v43 = vsel %vm2051_vm4, %v2053_v53, %v2055_v62  ;;  %v2060_v58 = vrot.slane %v6370_v26, 2  ;;  %v2070_v26 = vrot.slane %v6418_v51, 2 }
  0xca   :  { %v6609_v20 = vsel %vm2051_vm4, %v2058_v39, %v2060_v58 }
  0xcc   :  { %1751 = vrot.lane.b32.xlu1 %v6436_v59, %s6244_s8  ;;  %1737 = vrot.lane.b32.xlu0 %v6394_v40, %s6244_s8  ;;  %v2063_v40 = vrot.slane %v6374_v28, 2  ;;  %v2052_v28 = vrot.slane %v6366_v23, 2 }
  0xce   :  { %v6612_v18 = vsel %vm2051_vm4, %v2063_v40, %v2065_v19  ;;  %v6625_v59 = vsel %vm2051_vm4, %v2052_v28, %v2053_v53 }
  0xd0   :  { %1741 = vrot.lane.b32.xlu1 %v6439_v60, %s6244_s8  ;;  %1745 = vrot.lane.b32.xlu0 %v6404_v44, %s6244_s8  ;;  %v2068_v44 = vrot.slane %v6410_v47, 2  ;;  %v2062_v60 = vrot.slane %v6376_v29, 2  ;;  %v2057_v47 = vrot.slane %v6388_v38, 2  ;;  %v6245_v38 = vmov 1934713408  }
  0xd1   :  { %v205_v63 = vunpack.c.l.s4 %v6245_v38 }
  0xd2   :  { %v6622_v31 = vsel %vm2051_vm4, %v2068_v44, %v2070_v26  ;;  %v6634_v51 = vsel %vm2051_vm4, %v2057_v47, %v2058_v39  ;;  %v6637_v23 = vsel %vm2051_vm4, %v2062_v60, %v2063_v40 }
  0xd4   :  { %1749 = vrot.lane.b32.xlu1 %v6442_v61, %s6244_s8  ;;  %2372 = vrot.lane.b32.xlu0 %v6599_v43, %s6243_s7  ;;  %v2067_v61 = vrot.slane %v6412_v48, 2  ;;  %v206_v48 = vunpack.c.0.s8 %v205_v63 }
  0xd6   :  { %v6645_v29 = vsel %vm2051_vm4, %v2067_v61, %v2068_v44  ;;  %v6660_v1 = vsub.s32 %v206_v48, %v6372_v27 }
  0xd8   :  { %2376 = vrot.lane.b32.xlu1 %v6609_v20, %s6243_s7  ;;  %2380 = vrot.lane.b32.xlu0 %v6612_v18, %s6243_s7  ;;  %v285_v2 = vrot.slane %v271_v9, %v6660_v1  ;;  %v294_v27 = vrot.slane %v286_v21, %v6660_v1  ;;  %v217_v4 = vrot.slane %v203_v22, %v6660_v1 }
  0xd9   :  { %v301_v7 = vrot.slane %v287_v24, %v6660_v1  ;;  %v226_v8 = vrot.slane %v218_v30, %v6660_v1  ;;  %v6695_v9 = vrot.slane %v270_v15, %v6660_v1  ;;  %v233_v11 = vrot.slane %v219_v32, %v6660_v1 }
  0xda   :  { %v6709_v5 = vrot.slane %v202_v33, %v6660_v1  ;;  %v303_v6 = vcombine.high %v285_v2, %v8863_v0  ;;  %v304_v13 = vcombine.high %v294_v27, %v8863_v0  ;;  %v235_v14 = vcombine.high %v217_v4, %v8863_v0 }
  0xdb   :  { %v302_v10 = vcombine.high %v6695_v9, %v8863_v0  ;;  %v305_v21 = vcombine.high %v301_v7, %v8863_v0  ;;  %v236_v22 = vcombine.high %v226_v8, %v8863_v0  ;;  %v1248_v32 = vrot.slane %v1234_v35, %v6660_v1 }
  0xdc   :  { %2384 = vrot.lane.b32.xlu1 %v6622_v31, %s6243_s7  ;;  %2370 = vrot.lane.b32.xlu0 %v6625_v59, %s6243_s7  ;;  %v234_v12 = vcombine.high %v6709_v5, %v8863_v0  ;;  %v237_v33 = vcombine.high %v233_v11, %v8863_v0  ;;  %v6739_v53 = vrot.slane %v1233_v36, %v6660_v1 }
  0xdd   :  { %v1180_v35 = vrot.slane %v1166_v46, %v6660_v1  ;;  %v6753_v25 = vrot.slane %v1165_v49, %v6660_v1  ;;  %v1266_v40 = vcombine.high %v1248_v32, %v8863_v0  ;;  %v1257_v41 = vrot.slane %v1249_v55, %v6660_v1 }
  0xde   :  { %8890 = vst [vmem:[#allocation9_spill] sm:$0xff] %v6739_v53  ;;  %v1265_v58 = vcombine.high %v6739_v53, %v8863_v0  ;;  %v1189_v47 = vrot.slane %v1181_v56, %v6660_v1  ;;  %v1264_v56 = vrot.slane %v1250_v50, %v6660_v1 }
  0xdf   :  { %8891 = vst [vmem:[#allocation10_spill] sm:$0xff] %v6753_v25  ;;  %v1197_v19 = vcombine.high %v6753_v25, %v8863_v0  ;;  %v1198_v49 = vcombine.high %v1180_v35, %v8863_v0  ;;  %v1267_v60 = vcombine.high %v1257_v41, %v8863_v0 }
  0xe0   :  { %2374 = vrot.lane.b32.xlu1 %v6634_v51, %s6243_s7  ;;  %2378 = vrot.lane.b32.xlu0 %v6637_v23, %s6243_s7  ;;  %v1268_v50 = vcombine.high %v1264_v56, %v8863_v0 }
  0xe4   :  { %2382 = vrot.lane.b32.xlu1 %v6645_v29, %s6243_s7  ;;  %2686 = vrot.lane.b32.xlu0 %v6599_v43, %s6244_s8 }
  0xe8   :  { %2690 = vrot.lane.b32.xlu1 %v6609_v20, %s6244_s8  ;;  %2694 = vrot.lane.b32.xlu0 %v6612_v18, %s6244_s8 }
  0xec   :  { %2698 = vrot.lane.b32.xlu1 %v6622_v31, %s6244_s8  ;;  %2684 = vrot.lane.b32.xlu0 %v6625_v59, %s6244_s8 }
  0xf0   :  { %2688 = vrot.lane.b32.xlu1 %v6634_v51, %s6244_s8  ;;  %2692 = vrot.lane.b32.xlu0 %v6637_v23, %s6244_s8 }
  0xf4   :  { %2696 = vrot.lane.b32.xlu1 %v6645_v29, %s6244_s8  ;;  %339 = vrot.lane.b32.xlu0 %v285_v2, %s6246_s9 }
  0xf8   :  { %347 = vrot.lane.b32.xlu0 %v294_v27, %s6247_s10  ;;  %311 = vrot.lane.b32.xlu1 %v217_v4, %s6246_s9  ;;  %v1199_v27 = vcombine.high %v1189_v47, %v8863_v0 }
  0xfc   :  { %355 = vrot.lane.b32.xlu0 %v301_v7, %s6248_s11  ;;  %319 = vrot.lane.b32.xlu1 %v226_v8, %s6247_s10 }
 0x100   :  { %335 = vrot.lane.b32.xlu0 %v302_v10, %s6249_s12  ;;  %327 = vrot.lane.b32.xlu1 %v233_v11, %s6248_s11 }
 0x104   :  { %343 = vrot.lane.b32.xlu0 %v303_v6, %s6250_s13  ;;  %307 = vrot.lane.b32.xlu1 %v234_v12, %s6249_s12  ;;  %v1196_v12 = vrot.slane %v1182_v57, %v6660_v1 }
 0x106   :  { %v6718_v15 = vpop.permute.xlu0 %394  ;;  %v399_v16 = vpop.permute.xlu1 %398 }
 0x108   :  { %351 = vrot.lane.b32.xlu0 %v304_v13, %s6251_s14  ;;  %315 = vrot.lane.b32.xlu1 %v235_v14, %s6250_s13 }
 0x10a   :  { %v403_v17 = vpop.permute.xlu0 %402 }
 0x10b   :  { %v484_v61 = vcombine.low %v6718_v15, %v403_v17  ;;  %v485_v4 = vcombine.high %v6718_v15, %v403_v17 }
 0x10c   :  { %359 = vrot.lane.b32.xlu0 %v305_v21, %s6252_s15  ;;  %323 = vrot.lane.b32.xlu1 %v236_v22, %s6251_s14 }
 0x10d   :  { %v6799_v7 = vrot.slane %v484_v61, %v6457_v3  ;;  %v499_v13 = vrot.slane %v485_v4, %v6457_v3 }
 0x10e   :  { %v407_v24 = vpop.permute.xlu1 %406  ;;  %v6728_v30 = vpop.permute.xlu0 %392 }
 0x10f   :  { %v500_v44 = vcombine.low %v399_v16, %v407_v24  ;;  %v501_v55 = vcombine.high %v399_v16, %v407_v24  ;;  %v1200_v24 = vcombine.high %v1196_v12, %v8863_v0 }
 0x110   :  { %1302 = vrot.lane.b32.xlu0 %v1248_v32, %s6246_s9  ;;  %331 = vrot.lane.b32.xlu1 %v237_v33, %s6252_s15 }
 0x111   :  { %v6786_v38 = vrot.slane %v500_v44, %v6457_v3  ;;  %v515_v10 = vrot.slane %v501_v55, %v6457_v3 }
 0x112   :  { %v397_v62 = vpop.permute.xlu1 %396  ;;  %v401_v39 = vpop.permute.xlu0 %400 }
 0x113   :  { %v416_v8 = vcombine.low %v6728_v30, %v401_v39  ;;  %v517_v15 = vcombine.high %v6799_v7, %v6786_v38  ;;  %v417_v14 = vcombine.high %v6728_v30, %v401_v39  ;;  %v532_v21 = vcombine.low %v499_v13, %v515_v10 }
 0x114   :  { %1298 = vrot.lane.b32.xlu0 %v1265_v58, %s6249_s12  ;;  %1274 = vrot.lane.b32.xlu1 %v1180_v35, %s6246_s9  ;;  %v533_v39 = vcombine.high %v499_v13, %v515_v10  ;;  %v516_v13 = vcombine.low %v6799_v7, %v6786_v38 }
 0x115   :  { %v6820_v16 = vrot.slane %v416_v8, %v6457_v3  ;;  %v6831_v22 = vrot.slane %v517_v15, %v6660_v1  ;;  %v431_v32 = vrot.slane %v417_v14, %v6457_v3 }
 0x116   :  { %v405_v34 = vpop.permute.xlu1 %404  ;;  %v6757_v36 = vpop.permute.xlu0 %788 }
 0x117   :  { %v432_v63 = vcombine.low %v397_v62, %v405_v34  ;;  %v433_v11 = vcombine.high %v397_v62, %v405_v34  ;;  %v6843_v62 = vrot.slane %v532_v21, %v6660_v1 }
 0x118   :  { %1306 = vrot.lane.b32.xlu0 %v1266_v40, %s6250_s13  ;;  %1270 = vrot.lane.b32.xlu1 %v1197_v19, %s6249_s12 }
 0x119   :  { %v6806_v6 = vrot.slane %v432_v63, %v6457_v3  ;;  %v447_v17 = vrot.slane %v433_v11, %v6457_v3 }
 0x11a   :  { %v6764_v46 = vpop.permute.xlu1 %792  ;;  %v6766_v37 = vpop.permute.xlu0 %796 }
 0x11b   :  { %v449_v30 = vcombine.high %v6820_v16, %v6806_v6  ;;  %v878_v33 = vcombine.low %v6757_v36, %v6766_v37  ;;  %v464_v58 = vcombine.low %v431_v32, %v447_v17  ;;  %v879_v44 = vcombine.high %v6757_v36, %v6766_v37 }
 0x11c   :  { %1310 = vrot.lane.b32.xlu0 %v1257_v41, %s6247_s10  ;;  %1278 = vrot.lane.b32.xlu1 %v1198_v49, %s6250_s13  ;;  %v465_v61 = vcombine.high %v431_v32, %v447_v17  ;;  %v6918_v32 = vrot.slane %v516_v13, %v6660_v1  ;;  %v448_v38 = vcombine.low %v6820_v16, %v6806_v6 }
 0x11d   :  { %v6855_v49 = vrot.slane %v449_v30, %v6660_v1  ;;  %v893_v4 = vrot.slane %v879_v44, %v6457_v3 }
 0x11e   :  { %v801_v26 = vpop.permute.xlu1 %800  ;;  %v6775_v28 = vpop.permute.xlu0 %786  ;;  %v548_v6 = vcombine.high %v6918_v32, %v8863_v0 }
 0x11f   :  { %v894_v52 = vcombine.low %v6764_v46, %v801_v26  ;;  %v895_v35 = vcombine.high %v6764_v46, %v801_v26  ;;  %v6869_v26 = vrot.slane %v533_v39, %v6660_v1 }
 0x120   :  { %1314 = vrot.lane.b32.xlu0 %v1267_v60, %s6251_s14  ;;  %1282 = vrot.lane.b32.xlu1 %v1189_v47, %s6247_s10  ;;  %v6860_v60 = vrot.slane %v878_v33, %v6457_v3  ;;  %v6872_v47 = vrot.slane %v464_v58, %v6660_v1 }
 0x121   :  { %v6847_v34 = vrot.slane %v894_v52, %v6457_v3  ;;  %v909_v36 = vrot.slane %v895_v35, %v6457_v3 }
 0x122   :  { %v6788_v48 = vpop.permute.xlu1 %790  ;;  %v6790_v2 = vpop.permute.xlu0 %794 }
 0x123   :  { %v810_v46 = vcombine.low %v6775_v28, %v6790_v2  ;;  %v811_v8 = vcombine.high %v6775_v28, %v6790_v2  ;;  %v926_v28 = vcombine.low %v893_v4, %v909_v36 }
 0x124   :  { %1318 = vrot.lane.b32.xlu0 %v1264_v56, %s6248_s11  ;;  %1286 = vrot.lane.b32.xlu1 %v1199_v27, %s6251_s14  ;;  %v911_v27 = vcombine.high %v6860_v60, %v6847_v34 }
 0x125   :  { %v6889_v10 = vrot.slane %v810_v46, %v6457_v3  ;;  %v825_v15 = vrot.slane %v811_v8, %v6457_v3  ;;  %v934_v21 = vrot.slane %v926_v28, %v6660_v1  ;;  %v6943_v46 = vrot.slane %v448_v38, %v6660_v1 }
 0x126   :  { %v799_v42 = vpop.permute.xlu1 %798  ;;  %v6808_v45 = vpop.permute.xlu0 %1425  ;;  %v550_v8 = vcombine.high %v6843_v62, %v8863_v0 }
 0x127   :  { %v826_v40 = vcombine.low %v6788_v48, %v799_v42  ;;  %v827_v37 = vcombine.high %v6788_v48, %v799_v42  ;;  %v479_v48 = vrot.slane %v465_v61, %v6660_v1  ;;  %v549_v61 = vcombine.high %v6831_v22, %v8863_v0 }
 0x128   :  { %1322 = vrot.lane.b32.xlu0 %v1268_v50, %s6252_s15  ;;  %1290 = vrot.lane.b32.xlu1 %v1196_v12, %s6248_s11  ;;  %v925_v12 = vrot.slane %v911_v27, %v6660_v1  ;;  %v480_v27 = vcombine.high %v6943_v46, %v8863_v0 }
 0x129   :  { %v6877_v55 = vrot.slane %v826_v40, %v6457_v3  ;;  %v841_v11 = vrot.slane %v827_v37, %v6457_v3  ;;  %v483_v13 = vcombine.high %v479_v48, %v8863_v0 }
 0x12a   :  { %v6826_v54 = vpop.permute.xlu1 %1429  ;;  %v6828_v57 = vpop.permute.xlu0 %1433 }
 0x12b   :  { %v843_v2 = vcombine.high %v6889_v10, %v6877_v55  ;;  %v858_v30 = vcombine.low %v825_v15, %v841_v11  ;;  %v859_v35 = vcombine.high %v825_v15, %v841_v11 }
 0x12c   :  { %585 = vrot.lane.b32.xlu0 %v6831_v22, %s6246_s9  ;;  %1294 = vrot.lane.b32.xlu1 %v1200_v24, %s6252_s15  ;;  %v927_v24 = vcombine.high %v893_v4, %v909_v36  ;;  %v910_v4 = vcombine.low %v6860_v60, %v6847_v34  ;;  %v481_v22 = vcombine.high %v6855_v49, %v8863_v0 }
 0x12d   :  { %v857_v52 = vrot.slane %v843_v2, %v6660_v1  ;;  %v6928_v58 = vrot.slane %v858_v30, %v6660_v1  ;;  %v6940_v16 = vrot.slane %v859_v35, %v6660_v1  ;;  %v842_v2 = vcombine.low %v6889_v10, %v6877_v55 }
 0x12e   :  { %v6850_v19 = vpop.permute.xlu1 %1437  ;;  %v6852_v41 = vpop.permute.xlu0 %1423  ;;  %v941_v39 = vrot.slane %v927_v24, %v6660_v1  ;;  %v551_v34 = vcombine.high %v6869_v26, %v8863_v0  ;;  %v6981_v15 = vrot.slane %v910_v4, %v6660_v1  ;;  %v943_v30 = vcombine.high %v925_v12, %v8863_v0 }
 0x12f   :  { %v1531_v24 = vcombine.low %v6826_v54, %v6850_v19  ;;  %v944_v4 = vcombine.high %v934_v21, %v8863_v0 }
 0x130   :  { %593 = vrot.lane.b32.xlu0 %v6843_v62, %s6247_s10  ;;  %557 = vrot.lane.b32.xlu1 %v6855_v49, %s6246_s9  ;;  %v482_v62 = vcombine.high %v6872_v47, %v8863_v0  ;;  %8892 = vst [vmem:[#allocation11_spill] sm:$0xff] %v6981_v15 }
 0x132   :  { %v6879_v63 = vpop.permute.xlu1 %1427  ;;  %v6881_v56 = vpop.permute.xlu0 %1431 }
 0x134   :  { %601 = vrot.lane.b32.xlu0 %v6869_v26, %s6248_s11  ;;  %565 = vrot.lane.b32.xlu1 %v6872_v47, %s6247_s10  ;;  %v942_v26 = vcombine.high %v6981_v15, %v8863_v0  ;;  %v6993_v47 = vrot.slane %v842_v2, %v6660_v1 }
 0x136   :  { %v6897_v42 = vpop.permute.xlu1 %1435  ;;  %v6899_v50 = vpop.permute.xlu0 %1739  ;;  %8893 = vst [vmem:[#allocation12_spill] sm:$0xff] %v6993_v47  ;;  %v874_v35 = vcombine.high %v6993_v47, %v8863_v0 }
 0x138   :  { %979 = vrot.lane.b32.xlu0 %v925_v12, %s6246_s9  ;;  %573 = vrot.lane.b32.xlu1 %v479_v48, %s6248_s11  ;;  %v1463_v12 = vcombine.low %v6879_v63, %v6897_v42 }
 0x13a   :  { %v6909_v14 = vpop.permute.xlu1 %1743  ;;  %v6911_v17 = vpop.permute.xlu0 %1747 }
 0x13c   :  { %987 = vrot.lane.b32.xlu0 %v934_v21, %s6247_s10  ;;  %951 = vrot.lane.b32.xlu1 %v857_v52, %s6246_s9  ;;  %v945_v21 = vcombine.high %v941_v39, %v8863_v0 }
 0x13e   :  { %v6922_v7 = vpop.permute.xlu1 %1751  ;;  %v6924_v33 = vpop.permute.xlu0 %1737 }
 0x140   :  { %995 = vrot.lane.b32.xlu0 %v941_v39, %s6248_s11  ;;  %959 = vrot.lane.b32.xlu1 %v6928_v58, %s6247_s10 }
 0x142   :  { %v6933_v40 = vpop.permute.xlu1 %1741  ;;  %v6935_v44 = vpop.permute.xlu0 %1745 }
 0x144   :  { %581 = vrot.lane.b32.xlu0 %v548_v6, %s6249_s12  ;;  %967 = vrot.lane.b32.xlu1 %v6940_v16, %s6248_s11  ;;  %v1515_v6 = vcombine.low %v6808_v45, %v6828_v57 }
 0x146   :  { %v6950_v36 = vpop.permute.xlu1 %1749  ;;  %v6952_v37 = vpop.permute.xlu0 %2372 }
 0x148   :  { %589 = vrot.lane.b32.xlu0 %v549_v61, %s6250_s13  ;;  %553 = vrot.lane.b32.xlu1 %v480_v27, %s6249_s12  ;;  %v1532_v61 = vcombine.high %v6826_v54, %v6850_v19  ;;  %v1539_v27 = vrot.slane %v1531_v24, %v6457_v3  ;;  %v1447_v54 = vcombine.low %v6852_v41, %v6881_v56 }
 0x14a   :  { %v6964_v11 = vpop.permute.xlu1 %2376  ;;  %v6966_v28 = vpop.permute.xlu0 %2380  ;;  %v1546_v19 = vrot.slane %v1532_v61, %v6457_v3  ;;  %v1455_v39 = vrot.slane %v1447_v54, %v6457_v3  ;;  %v1845_v61 = vcombine.low %v6909_v14, %v6922_v7 }
 0x14c   :  { %597 = vrot.lane.b32.xlu0 %v550_v8, %s6251_s14  ;;  %561 = vrot.lane.b32.xlu1 %v481_v22, %s6250_s13  ;;  %v875_v8 = vcombine.high %v857_v52, %v8863_v0 }
 0x14e   :  { %v6976_v60 = vpop.permute.xlu1 %2384  ;;  %v6978_v49 = vpop.permute.xlu0 %2370 }
 0x150   :  { %605 = vrot.lane.b32.xlu0 %v551_v34, %s6252_s15  ;;  %569 = vrot.lane.b32.xlu1 %v482_v62, %s6251_s14  ;;  %v1516_v34 = vcombine.high %v6808_v45, %v6828_v57  ;;  %v1523_v62 = vrot.slane %v1515_v6, %v6457_v3  ;;  %v876_v45 = vcombine.high %v6928_v58, %v8863_v0 }
 0x152   :  { %v6986_v55 = vpop.permute.xlu1 %2374  ;;  %v6988_v10 = vpop.permute.xlu0 %2378  ;;  %v1548_v52 = vcombine.high %v1523_v62, %v1539_v27 }
 0x154   :  { %975 = vrot.lane.b32.xlu0 %v942_v26, %s6249_s12  ;;  %577 = vrot.lane.b32.xlu1 %v483_v13, %s6252_s15  ;;  %v1464_v13 = vcombine.high %v6879_v63, %v6897_v42  ;;  %v1471_v26 = vrot.slane %v1463_v12, %v6457_v3  ;;  %v877_v42 = vcombine.high %v6940_v16, %v8863_v0 }
 0x156   :  { %v7000_v48 = vpop.permute.xlu1 %2382  ;;  %v7002_v38 = vpop.permute.xlu0 %2686  ;;  %v1478_v58 = vrot.slane %v1464_v13, %v6457_v3  ;;  %v1480_v6 = vcombine.high %v1455_v39, %v1471_v26  ;;  %v1777_v13 = vcombine.low %v6933_v40, %v6950_v36 }
 0x158   :  { %983 = vrot.lane.b32.xlu0 %v943_v30, %s6250_s13  ;;  %947 = vrot.lane.b32.xlu1 %v874_v35, %s6249_s12  ;;  %v1530_v30 = vrot.slane %v1516_v34, %v6457_v3  ;;  %v1448_v35 = vcombine.high %v6852_v41, %v6881_v56  ;;  %v1562_v41 = vrot.slane %v1548_v52, %v6660_v1 }
 0x159   :  { %v1785_v25 = vrot.slane %v1777_v13, %v6457_v3 }
 0x15a   :  { %v7017_v22 = vpop.permute.xlu1 %2690  ;;  %v7019_v2 = vpop.permute.xlu0 %2694  ;;  %v1563_v63 = vcombine.low %v1530_v30, %v1546_v19  ;;  %v1462_v56 = vrot.slane %v1448_v35, %v6457_v3  ;;  %v1564_v16 = vcombine.high %v1530_v30, %v1546_v19  ;;  %v1494_v35 = vrot.slane %v1480_v6, %v6660_v1 }
 0x15b   :  { %v1547_v19 = vcombine.low %v1523_v62, %v1539_v27  ;;  %v1479_v62 = vcombine.low %v1455_v39, %v1471_v26 }
 0x15c   :  { %991 = vrot.lane.b32.xlu0 %v944_v4, %s6251_s14  ;;  %955 = vrot.lane.b32.xlu1 %v875_v8, %s6250_s13  ;;  %v1829_v8 = vcombine.low %v6899_v50, %v6911_v17  ;;  %v1571_v34 = vrot.slane %v1563_v63, %v6660_v1  ;;  %v1495_v54 = vcombine.low %v1462_v56, %v1478_v58 }
 0x15d   :  { %v1578_v30 = vrot.slane %v1564_v16, %v6660_v1  ;;  %v1496_v63 = vcombine.high %v1462_v56, %v1478_v58  ;;  %v7085_v27 = vrot.slane %v1547_v19, %v6660_v1  ;;  %v8899_v19 = vmov 0.0  }
 0x15e   :  { %v7035_v57 = vpop.permute.xlu1 %2698  ;;  %v7037_v24 = vpop.permute.xlu0 %2684  ;;  %v1837_v0 = vrot.slane %v1829_v8, %v6457_v3  ;;  %v1503_v6 = vrot.slane %v1495_v54, %v6660_v1  ;;  %v1580_v15 = vcombine.high %v1562_v41, %v8899_v19 }
 0x15f   :  { %8894 = vst [vmem:[#allocation13_spill] sm:$0xff] %v7037_v24  ;;  %8896 = vst [vmem:[#allocation15_spill] sm:$0xff] %v7085_v27  ;;  %v1510_v24 = vrot.slane %v1496_v63, %v6660_v1  ;;  %v1579_v26 = vcombine.high %v7085_v27, %v8899_v19 }
 0x160   :  { %999 = vrot.lane.b32.xlu0 %v945_v21, %s6252_s15  ;;  %963 = vrot.lane.b32.xlu1 %v876_v45, %s6251_s14  ;;  %v1853_v21 = vrot.slane %v1845_v61, %v6457_v3 }
 0x162   :  { %v7050_v12 = vpop.permute.xlu1 %2688  ;;  %v7052_v4 = vpop.permute.xlu0 %2692  ;;  %v1862_v61 = vcombine.high %v1837_v0, %v1853_v21 }
 0x163   :  { %8895 = vst [vmem:[#allocation14_spill] sm:$0xff] %v7052_v4  ;;  %v7103_v4 = vrot.slane %v1479_v62, %v6660_v1 }
 0x164   :  { %1616 = vrot.lane.b32.xlu0 %v1562_v41, %s6246_s9  ;;  %971 = vrot.lane.b32.xlu1 %v877_v42, %s6252_s15  ;;  %v1761_v42 = vcombine.low %v6924_v33, %v6935_v44  ;;  %v1876_v13 = vrot.slane %v1862_v61, %v6660_v1  ;;  %v1582_v41 = vcombine.high %v1578_v30, %v8899_v19 }
 0x165   :  { %8900 = vst [vmem:[#allocation18_spill] sm:$0xff] %v7103_v4 }
 0x166   :  { %v7064_v45 = vpop.permute.xlu1 %2696  ;;  %v7066_v52 = vpop.permute.xlu0 %339  ;;  %v1769_v8 = vrot.slane %v1761_v42, %v6457_v3 }
 0x168   :  { %1624 = vrot.lane.b32.xlu0 %v1571_v34, %s6247_s10  ;;  %1588 = vrot.lane.b32.xlu1 %v1494_v35, %s6246_s9  ;;  %v1794_v58 = vcombine.high %v1769_v8, %v1785_v25 }
 0x16a   :  { %v7076_v53 = vpop.permute.xlu0 %347  ;;  %v7078_v47 = vpop.permute.xlu1 %311  ;;  %v1808_v39 = vrot.slane %v1794_v58, %v6660_v1  ;;  %v1861_v58 = vcombine.low %v1837_v0, %v1853_v21  ;;  %v1513_v21 = vcombine.high %v1503_v6, %v8899_v19 }
 0x16c   :  { %1632 = vrot.lane.b32.xlu0 %v1578_v30, %s6248_s11  ;;  %1596 = vrot.lane.b32.xlu1 %v1503_v6, %s6247_s10  ;;  %v1514_v30 = vcombine.high %v1510_v24, %v8899_v19 }
 0x16e   :  { %v7087_v56 = vpop.permute.xlu0 %355  ;;  %v7089_v16 = vpop.permute.xlu1 %319 }
 0x16f   :  { %8897 = vst [vmem:[#allocation16_spill] sm:$0xff] %v7087_v56  ;;  %v1512_v56 = vcombine.high %v1494_v35, %v8899_v19  ;;  %v1830_v35 = vcombine.high %v6899_v50, %v6911_v17 }
 0x170   :  { %1930 = vrot.lane.b32.xlu0 %v1876_v13, %s6246_s9  ;;  %1604 = vrot.lane.b32.xlu1 %v1510_v24, %s6248_s11  ;;  %v1762_v24 = vcombine.high %v6924_v33, %v6935_v44  ;;  %v2164_v33 = vcombine.low %v6609_v20, %v6622_v31 }
 0x171   :  { %v1844_v17 = vrot.slane %v1830_v35, %v6457_v3 }
 0x172   :  { %v7095_v54 = vpop.permute.xlu0 %335  ;;  %v7097_v42 = vpop.permute.xlu1 %327 }
 0x173   :  { %8898 = vst [vmem:[#allocation17_spill] sm:$0xff] %v7097_v42  ;;  %v1511_v42 = vcombine.high %v7103_v4, %v8899_v19  ;;  %v1793_v4 = vcombine.low %v1769_v8, %v1785_v25 }
 0x174   :  { %1612 = vrot.lane.b32.xlu0 %v1579_v26, %s6249_s12  ;;  %1902 = vrot.lane.b32.xlu1 %v1808_v39, %s6246_s9  ;;  %v1581_v26 = vcombine.high %v1571_v34, %v8899_v19  ;;  %v7133_v34 = vrot.slane %v1861_v58, %v6660_v1 }
 0x175   :  { %v7150_v50 = vrot.slane %v1793_v4, %v6660_v1 }
 0x176   :  { %v7107_v63 = vpop.permute.xlu0 %343  ;;  %v7109_v61 = vpop.permute.xlu1 %307  ;;  %8901 = vst [vmem:[#allocation19_spill] sm:$0xff] %v7133_v34  ;;  %v1893_v8 = vcombine.high %v7133_v34, %v8899_v19  ;;  %v2080_v34 = vcombine.low %v6625_v59, %v6637_v23 }
 0x177   :  { %8902 = vst [vmem:[#allocation20_spill] sm:$0xff] %v7150_v50  ;;  %v1825_v4 = vcombine.high %v7150_v50, %v8899_v19 }
 0x178   :  { %1620 = vrot.lane.b32.xlu0 %v1580_v15, %s6250_s13  ;;  %1584 = vrot.lane.b32.xlu1 %v1511_v42, %s6249_s12  ;;  %v1846_v15 = vcombine.high %v6909_v14, %v6922_v7  ;;  %v1778_v14 = vcombine.high %v6933_v40, %v6950_v36 }
 0x17a   :  { %v7116_v62 = vpop.permute.xlu0 %351  ;;  %v7118_v27 = vpop.permute.xlu1 %315  ;;  %v1860_v25 = vrot.slane %v1846_v15, %v6457_v3  ;;  %v1792_v36 = vrot.slane %v1778_v14, %v6457_v3  ;;  %v2096_v14 = vcombine.low %v6634_v51, %v6645_v29 }
 0x17c   :  { %1628 = vrot.lane.b32.xlu0 %v1581_v26, %s6251_s14  ;;  %1592 = vrot.lane.b32.xlu1 %v1512_v56, %s6250_s13  ;;  %v1877_v40 = vcombine.low %v1844_v17, %v1860_v25  ;;  %v1894_v26 = vcombine.high %v1876_v13, %v8899_v19  ;;  %v1826_v13 = vcombine.high %v1808_v39, %v8899_v19 }
 0x17e   :  { %v7127_v42 = vpop.permute.xlu0 %359  ;;  %v7129_v0 = vpop.permute.xlu1 %323  ;;  %v1885_v35 = vrot.slane %v1877_v40, %v6660_v1 }
 0x180   :  { %1636 = vrot.lane.b32.xlu0 %v1582_v41, %s6252_s15  ;;  %1600 = vrot.lane.b32.xlu1 %v1513_v21, %s6251_s14  ;;  %v1776_v41 = vrot.slane %v1762_v24, %v6457_v3  ;;  %v1878_v24 = vcombine.high %v1844_v17, %v1860_v25  ;;  %v1895_v40 = vcombine.high %v1885_v35, %v8899_v19 }
 0x182   :  { %v7143_v7 = vpop.permute.xlu0 %1302  ;;  %v7145_v6 = vpop.permute.xlu1 %331  ;;  %v1809_v44 = vcombine.low %v1776_v41, %v1792_v36  ;;  %v1810_v25 = vcombine.high %v1776_v41, %v1792_v36 }
 0x184   :  { %1926 = vrot.lane.b32.xlu0 %v1893_v8, %s6249_s12  ;;  %1608 = vrot.lane.b32.xlu1 %v1514_v30, %s6252_s15  ;;  %v2148_v30 = vcombine.low %v6599_v43, %v6612_v18  ;;  %v2172_v8 = vrot.slane %v2164_v33, %v6457_v3  ;;  %v1817_v39 = vrot.slane %v1809_v44, %v6660_v1 }
 0x185   :  { %v2104_v33 = vrot.slane %v2096_v14, %v6457_v3  ;;  %v1824_v41 = vrot.slane %v1810_v25, %v6660_v1 }
 0x186   :  { %v7158_v56 = vpop.permute.xlu0 %1298  ;;  %v7160_v58 = vpop.permute.xlu1 %1274  ;;  %v2156_v50 = vrot.slane %v2148_v30, %v6457_v3  ;;  %v1827_v44 = vcombine.high %v1817_v39, %v8899_v19  ;;  %v2088_v30 = vrot.slane %v2080_v34, %v6457_v3  ;;  %v2165_v34 = vcombine.high %v6609_v20, %v6622_v31 }
 0x187   :  { %8903 = vst [vmem:[#allocation21_spill] sm:$0xff] %v7160_v58  ;;  %v1828_v25 = vcombine.high %v1824_v41, %v8899_v19  ;;  %v2097_v31 = vcombine.high %v6634_v51, %v6645_v29 }
 0x188   :  { %1934 = vrot.lane.b32.xlu0 %v1894_v26, %s6250_s13  ;;  %1898 = vrot.lane.b32.xlu1 %v1825_v4, %s6249_s12  ;;  %v2179_v20 = vrot.slane %v2165_v34, %v6457_v3 }
 0x189   :  { %v2111_v51 = vrot.slane %v2097_v31, %v6457_v3 }
 0x18a   :  { %v7170_v15 = vpop.permute.xlu0 %1306  ;;  %v7172_v21 = vpop.permute.xlu1 %1270 }
 0x18c   :  { %1938 = vrot.lane.b32.xlu0 %v1885_v35, %s6247_s10  ;;  %1906 = vrot.lane.b32.xlu1 %v1826_v13, %s6250_s13  ;;  %v1892_v35 = vrot.slane %v1878_v24, %v6660_v1  ;;  %v2112_v24 = vcombine.low %v2088_v30, %v2104_v33 }
 0x18e   :  { %v7183_v26 = vpop.permute.xlu0 %1310  ;;  %v7185_v4 = vpop.permute.xlu1 %1278  ;;  %v1896_v36 = vcombine.high %v1892_v35, %v8899_v19 }
 0x18f   :  { %8904 = vst [vmem:[#allocation22_spill] sm:$0xff] %v7183_v26  ;;  %8905 = vst [vmem:[#allocation23_spill] sm:$0xff] %v7185_v4  ;;  %v2180_v4 = vcombine.low %v2156_v50, %v2172_v8 }
 0x190   :  { %1942 = vrot.lane.b32.xlu0 %v1895_v40, %s6251_s14  ;;  %1910 = vrot.lane.b32.xlu1 %v1817_v39, %s6247_s10 }
 0x191   :  { %v7211_v14 = vrot.slane %v2180_v4, %v6660_v1  ;;  %v7225_v4 = vrot.slane %v2112_v24, %v6660_v1 }
 0x192   :  { %v7195_v17 = vpop.permute.xlu0 %1314  ;;  %v7197_v13 = vpop.permute.xlu1 %1282 }
 0x193   :  { %8906 = vst [vmem:[#allocation24_spill] sm:$0xff] %v7195_v17  ;;  %8907 = vst [vmem:[#allocation25_spill] sm:$0xff] %v7197_v13 }
 0x194   :  { %1946 = vrot.lane.b32.xlu0 %v1892_v35, %s6248_s11  ;;  %1914 = vrot.lane.b32.xlu1 %v1827_v44, %s6251_s14  ;;  %8910 = vst [vmem:[#allocation28_spill] sm:$0xff] %v7211_v14  ;;  %v2212_v35 = vcombine.high %v7211_v14, %v8899_v19  ;;  %8913 = vst [vmem:[#allocation31_spill] sm:$0xff] %v7225_v4 }
 0x196   :  { %v7204_v40 = vpop.permute.xlu0 %1318  ;;  %v7206_v58 = vpop.permute.xlu1 %1286 }
 0x197   :  { %8908 = vst [vmem:[#allocation26_spill] sm:$0xff] %v7204_v40  ;;  %8909 = vst [vmem:[#allocation27_spill] sm:$0xff] %v7206_v58  ;;  %v2181_v58 = vcombine.high %v2156_v50, %v2172_v8  ;;  %v2144_v8 = vcombine.high %v7225_v4, %v8899_v19 }
 0x198   :  { %1950 = vrot.lane.b32.xlu0 %v1896_v36, %s6252_s15  ;;  %1918 = vrot.lane.b32.xlu1 %v1824_v41, %s6248_s11  ;;  %v2149_v36 = vcombine.high %v6599_v43, %v6612_v18  ;;  %v2113_v41 = vcombine.high %v2088_v30, %v2104_v33  ;;  %v2081_v18 = vcombine.high %v6625_v59, %v6637_v23 }
 0x199   :  { %v2195_v50 = vrot.slane %v2181_v58, %v6660_v1  ;;  %v2478_v59 = vcombine.low %v6964_v11, %v6976_v60 }
 0x19a   :  { %v7217_v39 = vpop.permute.xlu0 %1322  ;;  %v7219_v44 = vpop.permute.xlu1 %1290  ;;  %v2163_v43 = vrot.slane %v2149_v36, %v6457_v3  ;;  %v2127_v34 = vrot.slane %v2113_v41, %v6660_v1  ;;  %v2095_v30 = vrot.slane %v2081_v18, %v6457_v3  ;;  %v2410_v18 = vcombine.low %v6986_v55, %v7000_v48 }
 0x19b   :  { %8911 = vst [vmem:[#allocation29_spill] sm:$0xff] %v7217_v39  ;;  %8912 = vst [vmem:[#allocation30_spill] sm:$0xff] %v7219_v44  ;;  %v2213_v58 = vcombine.high %v2195_v50, %v8899_v19  ;;  %v2486_v41 = vrot.slane %v2478_v59, %v6457_v3  ;;  %v2394_v39 = vcombine.low %v6978_v49, %v6988_v10 }
 0x19c   :  { %2245 = vrot.lane.b32.xlu0 %v2212_v35, %s6249_s12  ;;  %1922 = vrot.lane.b32.xlu1 %v1828_v25, %s6252_s15  ;;  %v2196_v33 = vcombine.low %v2163_v43, %v2179_v20  ;;  %v2145_v36 = vcombine.high %v2127_v34, %v8899_v19  ;;  %v2128_v31 = vcombine.low %v2095_v30, %v2111_v51 }
 0x19d   :  { %v2418_v59 = vrot.slane %v2410_v18, %v6457_v3 }
 0x19e   :  { %v7234_v44 = vpop.permute.xlu0 %585  ;;  %v7236_v14 = vpop.permute.xlu1 %1294  ;;  %v2204_v25 = vrot.slane %v2196_v33, %v6660_v1  ;;  %v2136_v33 = vrot.slane %v2128_v31, %v6660_v1 }
 0x19f   :  { %8914 = vst [vmem:[#allocation32_spill] sm:$0xff] %v7236_v14 }
 0x1a0   :  { %2249 = vrot.lane.b32.xlu0 %v2195_v50, %s6246_s9  ;;  %2217 = vrot.lane.b32.xlu1 %v2144_v8, %s6249_s12  ;;  %v2462_v50 = vcombine.low %v6952_v37, %v6966_v28  ;;  %v2197_v8 = vcombine.high %v2163_v43, %v2179_v20  ;;  %v2129_v20 = vcombine.high %v2095_v30, %v2111_v51 }
 0x1a1   :  { %v2146_v31 = vcombine.high %v2136_v33, %v8899_v19 }
 0x1a2   :  { %v7247_v29 = vpop.permute.xlu0 %593  ;;  %v7249_v24 = vpop.permute.xlu1 %557  ;;  %v2470_v14 = vrot.slane %v2462_v50, %v6457_v3  ;;  %v2402_v50 = vrot.slane %v2394_v39, %v6457_v3  ;;  %v2143_v18 = vrot.slane %v2129_v20, %v6660_v1  ;;  %v2479_v39 = vcombine.high %v6964_v11, %v6976_v60 }
 0x1a3   :  { %v2411_v60 = vcombine.high %v6986_v55, %v7000_v48 }
 0x1a4   :  { %2253 = vrot.lane.b32.xlu0 %v2213_v58, %s6250_s13  ;;  %2221 = vrot.lane.b32.xlu1 %v2127_v34, %s6246_s9  ;;  %v2214_v34 = vcombine.high %v2204_v25, %v8899_v19  ;;  %v2494_v43 = vcombine.low %v2470_v14, %v2486_v41  ;;  %v2147_v20 = vcombine.high %v2143_v18, %v8899_v19 }
 0x1a5   :  { %v7320_v11 = vrot.slane %v2479_v39, %v6457_v3  ;;  %v2395_v39 = vcombine.high %v6978_v49, %v6988_v10 }
 0x1a6   :  { %v7258_v23 = vpop.permute.xlu0 %601  ;;  %v7260_v35 = vpop.permute.xlu1 %565  ;;  %v7299_v17 = vrot.slane %v2494_v43, %v6660_v1 }
 0x1a8   :  { %2257 = vrot.lane.b32.xlu0 %v2204_v25, %s6247_s10  ;;  %2225 = vrot.lane.b32.xlu1 %v2145_v36, %s6250_s13  ;;  %v2211_v25 = vrot.slane %v2197_v8, %v6660_v1  ;;  %v2495_v8 = vcombine.high %v2470_v14, %v2486_v41  ;;  %v2427_v41 = vcombine.high %v2402_v50, %v2418_v59 }
 0x1aa   :  { %v7271_v58 = vpop.permute.xlu0 %979  ;;  %v7273_v4 = vpop.permute.xlu1 %573  ;;  %v2215_v30 = vcombine.high %v2211_v25, %v8899_v19  ;;  %v2509_v14 = vrot.slane %v2495_v8, %v6660_v1  ;;  %v2441_v8 = vrot.slane %v2427_v41, %v6660_v1 }
 0x1ac   :  { %2261 = vrot.lane.b32.xlu0 %v2214_v34, %s6251_s14  ;;  %2229 = vrot.lane.b32.xlu1 %v2136_v33, %s6247_s10  ;;  %v2426_v34 = vcombine.low %v2402_v50, %v2418_v59  ;;  %v7345_v59 = vrot.slane %v2411_v60, %v6457_v3  ;;  %v2527_v49 = vcombine.high %v2509_v14, %v8899_v19 }
 0x1ae   :  { %v7283_v36 = vpop.permute.xlu0 %987  ;;  %v7285_v40 = vpop.permute.xlu1 %951  ;;  %v7311_v43 = vrot.slane %v2426_v34, %v6660_v1 }
 0x1b0   :  { %2265 = vrot.lane.b32.xlu0 %v2211_v25, %s6248_s11  ;;  %2233 = vrot.lane.b32.xlu1 %v2146_v31, %s6251_s14  ;;  %v2526_v25 = vcombine.high %v7299_v17, %v8899_v19  ;;  %v2458_v34 = vcombine.high %v7311_v43, %v8899_v19 }
 0x1b2   :  { %v7292_v13 = vpop.permute.xlu0 %995  ;;  %v7294_v51 = vpop.permute.xlu1 %959 }
 0x1b4   :  { %2269 = vrot.lane.b32.xlu0 %v2215_v30, %s6252_s15  ;;  %2237 = vrot.lane.b32.xlu1 %v2143_v18, %s6248_s11  ;;  %v2463_v30 = vcombine.high %v6952_v37, %v6966_v28 }
 0x1b6   :  { %v582_v33 = vpop.permute.xlu0 %581  ;;  %v7305_v31 = vpop.permute.xlu1 %967  ;;  %v7330_v18 = vrot.slane %v2463_v30, %v6457_v3  ;;  %v2792_v30 = vcombine.low %v7017_v22, %v7035_v57 }
 0x1b7   :  { %v615_v26 = vsel %vm362_vm5, %v6918_v32, %v582_v33  ;;  %v7357_v33 = vrot.slane %v2395_v39, %v6457_v3  ;;  %v2776_v39 = vcombine.low %v7002_v38, %v7019_v2 }
 0x1b8   :  { %2559 = vrot.lane.b32.xlu0 %v2526_v25, %s6249_s12  ;;  %2241 = vrot.lane.b32.xlu1 %v2147_v20, %s6252_s15  ;;  %v616_v37 = vsel %vm364_vm6, %v615_v26, %v7234_v44  ;;  %v376_v26 = vsel %vm362_vm5, %v6695_v9, %v7095_v54  ;;  %v2510_v44 = vcombine.low %v7330_v18, %v7320_v11 }
 0x1b9   :  { %v377_v25 = vsel %vm364_vm6, %v376_v26, %v7066_v52 }
 0x1ba   :  { %v590_v28 = vpop.permute.xlu0 %589  ;;  %v554_v32 = vpop.permute.xlu1 %553  ;;  %v2518_v52 = vrot.slane %v2510_v44, %v6660_v1  ;;  %v8915_v44 = vld [vmem:[#allocation16_spill] sm:$0xff] }
 0x1bb   :  { %v617_v55 = vsel %vm366_vm7, %v616_v37, %v590_v28  ;;  %v608_v48 = vsel %vm362_vm5, %v6943_v46, %v554_v32  ;;  %v363_v46 = vsel %vm362_vm5, %v6709_v5, %v7109_v61  ;;  %v378_v61 = vsel %vm366_vm7, %v377_v25, %v7107_v63  ;;  %v8917_v25 = vld [vmem:[#allocation14_spill] sm:$0xff] }
 0x1bc   :  { %2563 = vrot.lane.b32.xlu0 %v2509_v14, %s6246_s9  ;;  %2531 = vrot.lane.b32.xlu1 %v2458_v34, %s6249_s12  ;;  %v618_v9 = vsel %vm368_vm8, %v617_v55, %v7247_v29  ;;  %v609_v54 = vsel %vm364_vm6, %v608_v48, %v7249_v24  ;;  %v2442_v29 = vcombine.low %v7357_v33, %v7345_v59 }
 0x1bd   :  { %v365_v24 = vsel %vm364_vm6, %v363_v46, %v7078_v47  ;;  %v379_v47 = vsel %vm368_vm8, %v378_v61, %v7076_v53  ;;  %v2459_v34 = vcombine.high %v2441_v8, %v8899_v19  ;;  %v8916_v46 = vld [vmem:[#allocation11_spill] sm:$0xff]  ;;  %v8919_v61 = vld [vmem:[#allocation17_spill] sm:$0xff] }
 0x1be   :  { %v598_v10 = vpop.permute.xlu0 %597  ;;  %v562_v50 = vpop.permute.xlu1 %561  ;;  %v367_v63 = vsel %vm366_vm7, %v365_v24, %v7118_v27  ;;  %v2511_v27 = vcombine.high %v7330_v18, %v7320_v11  ;;  %v7398_v11 = vrot.slane %v2792_v30, %v6457_v3  ;;  %v2450_v48 = vrot.slane %v2442_v29, %v6660_v1 }
 0x1bf   :  { %v619_v20 = vsel %vm370_vm9, %v618_v9, %v598_v10  ;;  %v610_v5 = vsel %vm366_vm7, %v609_v54, %v562_v50  ;;  %v369_v53 = vsel %vm368_vm8, %v367_v63, %v7089_v16  ;;  %v2724_v16 = vcombine.low %v7050_v12, %v7064_v45 }
 0x1c0   :  { %2567 = vrot.lane.b32.xlu0 %v2527_v49, %s6250_s13  ;;  %2535 = vrot.lane.b32.xlu1 %v2441_v8, %s6246_s9  ;;  %v611_v14 = vsel %vm368_vm8, %v610_v5, %v7260_v35  ;;  %v620_v37 = vsel %vm372_vm10, %v619_v20, %v7258_v23  ;;  %v380_v35 = vsel %vm370_vm9, %v379_v47, %v7116_v62  ;;  %v8918_v20 = vld [vmem:[#allocation13_spill] sm:$0xff] }
 0x1c1   :  { %v2528_v23 = vcombine.high %v2518_v52, %v8899_v19  ;;  %v371_v18 = vsel %vm370_vm9, %v369_v53, %v7129_v0  ;;  %v381_v49 = vsel %vm372_vm10, %v380_v35, %v8915_v44  ;;  %v6042_v0 = vld [vmem:[%s8858_s1 + $0x8] sm:$0xff]  ;;  %v7416_v54 = vrot.slane %v2776_v39, %v6457_v3 }
 0x1c2   :  { %v606_v60 = vpop.permute.xlu0 %605  ;;  %v570_v41 = vpop.permute.xlu1 %569  ;;  %v2525_v50 = vrot.slane %v2511_v27, %v6660_v1  ;;  %v2443_v8 = vcombine.high %v7357_v33, %v7345_v59  ;;  %v2708_v5 = vcombine.low %v8918_v20, %v8917_v25  ;;  %v373_v29 = vsel %vm372_vm10, %v371_v18, %v8919_v61 }
 0x1c3   :  { %v612_v28 = vsel %vm370_vm9, %v611_v14, %v570_v41  ;;  %v621_v32 = vsel %vm374_vm11, %v620_v37, %v606_v60  ;;  %v375_v24 = vsel %vm374_vm11, %v373_v29, %v7145_v6  ;;  %v2460_v30 = vcombine.high %v2450_v48, %v8899_v19  ;;  %v8920_v14 = vld [vmem:[#allocation12_spill] sm:$0xff]  ;;  %v8927_v29 = vld [vmem:[#allocation25_spill] sm:$0xff] }
 0x1c4   :  { %2571 = vrot.lane.b32.xlu0 %v2518_v52, %s6247_s10  ;;  %6043 = vmatprep.subr.msk.mxu0 %vm628_vm12, %v621_v32  ;;  %v613_v26 = vsel %vm372_vm10, %v612_v28, %v7273_v4  ;;  %v382_v4 = vsel %vm374_vm11, %v381_v49, %v7127_v42  ;;  %v2808_v42 = vcombine.low %v7416_v54, %v7398_v11 }
 0x1c5   :  { %2539 = vrot.lane.b32.xlu1 %v2459_v34, %s6250_s13  ;;  %v7440_v63 = vrot.slane %v2724_v16, %v6457_v3  ;;  %v7449_v6 = vrot.slane %v2708_v5, %v6457_v3  ;;  %v2529_v34 = vcombine.high %v2525_v50, %v8899_v19 }
 0x1c6   :  { %v976_v55 = vpop.permute.xlu0 %975  ;;  %v578_v62 = vpop.permute.xlu1 %577  ;;  %v7459_v27 = vrot.slane %v2808_v42, %v6660_v1 }
 0x1c7   :  { %v1009_v9 = vsel %vm362_vm5, %v8916_v46, %v976_v55  ;;  %v614_v10 = vsel %vm374_vm11, %v613_v26, %v578_v62  ;;  %v2740_v39 = vcombine.low %v7449_v6, %v7440_v63  ;;  %v2809_v55 = vcombine.high %v7416_v54, %v7398_v11  ;;  %v8924_v54 = vld [vmem:[#allocation21_spill] sm:$0xff] }
 0x1c8   :  { %2575 = vrot.lane.b32.xlu0 %v2528_v23, %s6251_s14  ;;  %6044 = vmatpush1.msk.msra.mxu0 %vm628_vm12, %v614_v10  ;;  %v1010_v52 = vsel %vm364_vm6, %v1009_v9, %v7271_v58  ;;  %v2457_v58 = vrot.slane %v2443_v8, %v6660_v1  ;;  %v8921_v23 = vld [vmem:[#allocation9_spill] sm:$0xff]  ;;  %v2840_v11 = vcombine.high %v7459_v27, %v8899_v19  ;;  %v8923_v10 = vld [vmem:[#allocation22_spill] sm:$0xff]  ;;  %v8926_v8 = vld [vmem:[#allocation24_spill] sm:$0xff] }
 0x1c9   :  { %2543 = vrot.lane.b32.xlu1 %v2450_v48, %s6247_s10  ;;  %6046 = vmatprep.subr.msk.mxu0 %vm628_vm12, %v382_v4  ;;  %v1332_v18 = vsel %vm362_vm5, %v8921_v23, %v7158_v56  ;;  %v8922_v48 = vld [vmem:[#allocation10_spill] sm:$0xff]  ;;  %v7493_v46 = vrot.slane %v2740_v39, %v6660_v1 }
 0x1ca   :  { %v984_v59 = vpop.permute.xlu0 %983  ;;  %6045 = vmatmul.mubr.msk.f32.vlgmr.msra.gmra.mrb[0].mxu0 %vm624_vm13, %v6042_v0  ;;  %v948_v33 = vpop.permute.xlu1 %947  ;;  %v2461_v62 = vcombine.high %v2457_v58, %v8899_v19  ;;  %v1325_v26 = vsel %vm362_vm5, %v8922_v48, %v7172_v21  ;;  %v1333_v44 = vsel %vm364_vm6, %v1332_v18, %v7143_v7  ;;  %v2725_v7 = vcombine.high %v7050_v12, %v7064_v45 }
 0x1cb   :  { %v1011_v60 = vsel %vm366_vm7, %v1010_v52, %v984_v59  ;;  %6047 = vmatpush1.msk.msra.mxu0 %vm628_vm12, %v375_v24  ;;  %v1002_v41 = vsel %vm362_vm5, %v8920_v14, %v948_v33  ;;  %779 = vmatprep.mubr.f32.mxu0 %v8899_v19  ;;  %v1334_v9 = vsel %vm366_vm7, %v1333_v44, %v7170_v15  ;;  %v8925_v15 = vld [vmem:[#allocation23_spill] sm:$0xff]  ;;  %v8928_v24 = vld [vmem:[#allocation26_spill] sm:$0xff]  ;;  %v8930_v14 = vld [vmem:[#allocation29_spill] sm:$0xff] }
 0x1cc   :  { %2579 = vrot.lane.b32.xlu0 %v2525_v50, %s6248_s11  ;;  %v1012_v37 = vsel %vm368_vm8, %v1011_v60, %v7283_v36  ;;  %v1003_v28 = vsel %vm364_vm6, %v1002_v41, %v7285_v40  ;;  %v383_v36 = vld [vmem:[%s8858_s1] sm:$0xff]  ;;  %v2793_v40 = vcombine.high %v7017_v22, %v7035_v57  ;;  %v1335_v0 = vsel %vm368_vm8, %v1334_v9, %v8923_v10  ;;  %v8929_v60 = vld [vmem:[#allocation27_spill] sm:$0xff] }
 0x1cd   :  { %2547 = vrot.lane.b32.xlu1 %v2460_v30, %s6251_s14  ;;  %v1326_v4 = vsel %vm364_vm6, %v1325_v26, %v8924_v54  ;;  %v1336_v5 = vsel %vm370_vm9, %v1335_v0, %v8926_v8  ;;  %v2772_v33 = vcombine.high %v7493_v46, %v8899_v19  ;;  %v6049_v30 = vld [vmem:[%s8858_s1 + $0x10] sm:$0xff] }
 0x1ce   :  { %v992_v47 = vpop.permute.xlu0 %991  ;;  %v956_v32 = vpop.permute.xlu1 %955  ;;  %v1327_v50 = vsel %vm366_vm7, %v1326_v4, %v8925_v15  ;;  %v1337_v52 = vsel %vm372_vm10, %v1336_v5, %v8928_v24  ;;  %v8934_v4 = vld [vmem:[#allocation18_spill] sm:$0xff]  ;;  %v69_v15 = vld [vmem:[#allocation3 + $0x40] sm:$0xff] }
 0x1cf   :  { %v1013_v35 = vsel %vm370_vm9, %v1012_v37, %v992_v47  ;;  %v1004_v53 = vsel %vm366_vm7, %v1003_v28, %v956_v32  ;;  %v1328_v42 = vsel %vm368_vm8, %v1327_v50, %v8927_v29  ;;  %v1338_v41 = vsel %vm374_vm11, %v1337_v52, %v8930_v14  ;;  %v8932_v28 = vld [vmem:[#allocation32_spill] sm:$0xff] }
 0x1d0   :  { %2583 = vrot.lane.b32.xlu0 %v2529_v34, %s6252_s15  ;;  %v1014_v22 = vsel %vm372_vm10, %v1013_v35, %v7292_v13  ;;  %v1005_v56 = vsel %vm368_vm8, %v1004_v53, %v7294_v51  ;;  %v2777_v13 = vcombine.high %v7002_v38, %v7019_v2  ;;  %v2807_v51 = vrot.slane %v2793_v40, %v6457_v3 }
 0x1d1   :  { %2551 = vrot.lane.b32.xlu1 %v2457_v58, %s6248_s11  ;;  %v2823_v38 = vrot.slane %v2809_v55, %v6660_v1  ;;  %v2741_v2 = vcombine.high %v7449_v6, %v7440_v63  ;;  %v2709_v6 = vcombine.high %v8918_v20, %v8917_v25  ;;  %v8931_v58 = vld [vmem:[#allocation30_spill] sm:$0xff]  ;;  %v2739_v53 = vrot.slane %v2725_v7, %v6457_v3 }
 0x1d2   :  { %v1000_v57 = vpop.permute.xlu0 %999  ;;  %6048 = vmatmul.mubr.msk.f32.vlgmr.msra.gmra.mrb[0].mxu0 %vm624_vm13, %v383_v36  ;;  %v964_v16 = vpop.permute.xlu1 %963  ;;  %v2791_v63 = vrot.slane %v2777_v13, %v6457_v3 }
 0x1d3   :  { %v1015_v49 = vsel %vm374_vm11, %v1014_v22, %v1000_v57  ;;  %v1006_v21 = vsel %vm370_vm9, %v1005_v56, %v964_v16  ;;  %1091 = vmatprep.mubr.f32.mxu0 %v8899_v19  ;;  %v2841_v35 = vcombine.high %v2823_v38, %v8899_v19  ;;  %v2755_v25 = vrot.slane %v2741_v2, %v6660_v1 }
 0x1d4   :  { %2873 = vrot.lane.b32.xlu0 %v2840_v11, %s6249_s12  ;;  %6050 = vmatprep.subr.msk.mxu0 %vm628_vm12, %v1015_v49  ;;  %v1007_v45 = vsel %vm372_vm10, %v1006_v21, %v7305_v31  ;;  %v1329_v31 = vsel %vm370_vm9, %v1328_v42, %v8929_v60  ;;  %v2824_v47 = vcombine.low %v2791_v63, %v2807_v51  ;;  %v8933_v21 = vld [vmem:[#allocation15_spill] sm:$0xff] }
 0x1d5   :  { %2555 = vrot.lane.b32.xlu1 %v2461_v62, %s6252_s15  ;;  %v1330_v37 = vsel %vm372_vm10, %v1329_v31, %v8931_v58  ;;  %v2723_v20 = vrot.slane %v2709_v6, %v6457_v3  ;;  %v2773_v55 = vcombine.high %v2755_v25, %v8899_v19  ;;  %v6053_v62 = vld [vmem:[%s8858_s1 + $0x18] sm:$0xff]  ;;  %v2825_v48 = vcombine.high %v2791_v63, %v2807_v51  ;;  %v71_v42 = vld [vmem:[#allocation3 + $0x50] sm:$0xff]  ;;  %v73_v31 = vld [vmem:[#allocation3 + $0x60] sm:$0xff] }
 0x1d6   :  { %v1617_v12 = vpop.permute.xlu0 %1616  ;;  %v972_v61 = vpop.permute.xlu1 %971  ;;  %v1331_v32 = vsel %vm374_vm11, %v1330_v37, %v8932_v28  ;;  %v2832_v23 = vrot.slane %v2824_v47, %v6660_v1  ;;  %v72_v58 = vld [vmem:[#allocation3 + $0x58] sm:$0xff]  ;;  %v6057_v37 = vld [vmem:[%s8858_s1 + $0x20] sm:$0xff]  ;;  %v75_v28 = vld [vmem:[#allocation3 + $0x70] sm:$0xff] }
 0x1d7   :  { %v1008_v59 = vsel %vm374_vm11, %v1007_v45, %v972_v61  ;;  %v2756_v18 = vcombine.low %v2723_v20, %v2739_v53  ;;  %v2839_v44 = vrot.slane %v2825_v48, %v6660_v1  ;;  %v2757_v49 = vcombine.high %v2723_v20, %v2739_v53 }
 0x1d8   :  { %2877 = vrot.lane.b32.xlu0 %v2823_v38, %s6246_s9  ;;  %6051 = vmatpush1.msk.msra.mxu0 %vm628_vm12, %v1008_v59  ;;  %v2842_v57 = vcombine.high %v2832_v23, %v8899_v19 }
 0x1d9   :  { %2845 = vrot.lane.b32.xlu1 %v2772_v33, %s6249_s12  ;;  %6054 = vmatprep.subr.msk.mxu0 %vm628_vm12, %v1338_v41  ;;  %v2764_v56 = vrot.slane %v2756_v18, %v6660_v1  ;;  %v2843_v0 = vcombine.high %v2839_v44, %v8899_v19  ;;  %v2771_v2 = vrot.slane %v2757_v49, %v6660_v1 }
 0x1da   :  { %v1625_v34 = vpop.permute.xlu0 %1624  ;;  %6052 = vmatmul.mubr.msk.f32.vlgmr.msra.gmra.mrb[0].mxu0 %vm624_vm13, %v6049_v30  ;;  %v1589_v39 = vpop.permute.xlu1 %1588  ;;  %v70_v30 = vld [vmem:[#allocation3 + $0x48] sm:$0xff] }
 0x1db   :  { %6055 = vmatpush1.msk.msra.mxu0 %vm628_vm12, %v1331_v32  ;;  %1414 = vmatprep.mubr.f32.mxu0 %v8899_v19  ;;  %v2774_v51 = vcombine.high %v2764_v56, %v8899_v19  ;;  %v2775_v29 = vcombine.high %v2771_v2, %v8899_v19 }
 0x1dc   :  { %2881 = vrot.lane.b32.xlu0 %v2841_v35, %s6250_s13 }
 0x1dd   :  { %2849 = vrot.lane.b32.xlu1 %v2755_v25, %s6246_s9  ;;  %v76_v25 = vld [vmem:[#allocation3 + $0x78] sm:$0xff] }
 0x1de   :  { %v1633_v36 = vpop.permute.xlu0 %1632  ;;  %v1597_v40 = vpop.permute.xlu1 %1596 }
 0x1e0   :  { %2885 = vrot.lane.b32.xlu0 %v2832_v23, %s6247_s10 }
 0x1e1   :  { %2853 = vrot.lane.b32.xlu1 %v2773_v55, %s6250_s13 }
 0x1e2   :  { %v7560_v26 = vpop.permute.xlu0 %1930  ;;  %v1605_v22 = vpop.permute.xlu1 %1604  ;;  %6056 = vmatmul.mubr.msk.f32.vlgmr.msra.gmra.mrb[0].mxu0 %vm624_vm13, %v6053_v62 }
 0x1e3   :  { %1728 = vmatprep.mubr.f32.mxu0 %v8899_v19 }
 0x1e4   :  { %2889 = vrot.lane.b32.xlu0 %v2842_v57, %s6251_s14 }
 0x1e5   :  { %2857 = vrot.lane.b32.xlu1 %v2764_v56, %s6247_s10 }
 0x1e6   :  { %v1613_v16 = vpop.permute.xlu0 %1612  ;;  %v7568_v11 = vpop.permute.xlu1 %1902 }
 0x1e7   :  { %v1646_v13 = vsel %vm362_vm5, %v8933_v21, %v1613_v16 }
 0x1e8   :  { %2893 = vrot.lane.b32.xlu0 %v2839_v44, %s6248_s11  ;;  %v1647_v9 = vsel %vm364_vm6, %v1646_v13, %v1617_v12 }
 0x1e9   :  { %2861 = vrot.lane.b32.xlu1 %v2774_v51, %s6251_s14 }
 0x1ea   :  { %v1621_v7 = vpop.permute.xlu0 %1620  ;;  %v1585_v10 = vpop.permute.xlu1 %1584 }
 0x1eb   :  { %v1648_v54 = vsel %vm366_vm7, %v1647_v9, %v1621_v7  ;;  %v1639_v38 = vsel %vm362_vm5, %v8934_v4, %v1585_v10 }
 0x1ec   :  { %2897 = vrot.lane.b32.xlu0 %v2843_v0, %s6252_s15  ;;  %v1649_v50 = vsel %vm368_vm8, %v1648_v54, %v1625_v34  ;;  %v1640_v5 = vsel %vm364_vm6, %v1639_v38, %v1589_v39  ;;  %v74_v39 = vld [vmem:[#allocation3 + $0x68] sm:$0xff] }
 0x1ed   :  { %2865 = vrot.lane.b32.xlu1 %v2771_v2, %s6248_s11 }
 0x1ee   :  { %v1629_v8 = vpop.permute.xlu0 %1628  ;;  %v1593_v12 = vpop.permute.xlu1 %1592 }
 0x1ef   :  { %v1650_v45 = vsel %vm370_vm9, %v1649_v50, %v1629_v8  ;;  %v1641_v61 = vsel %vm366_vm7, %v1640_v5, %v1593_v12 }
 0x1f0   :  { %109 = vrot.lane.b32.xlu0 %v69_v15, %s6241_s0  ;;  %v1651_v24 = vsel %vm372_vm10, %v1650_v45, %v1633_v36  ;;  %v1642_v59 = vsel %vm368_vm8, %v1641_v61, %v1597_v40  ;;  %v8935_v40 = vld [vmem:[#allocation19_spill] sm:$0xff]  ;;  %v8937_v61 = vld [vmem:[#allocation28_spill] sm:$0xff] }
 0x1f1   :  { %2869 = vrot.lane.b32.xlu1 %v2775_v29, %s6252_s15 }
 0x1f2   :  { %v1637_v52 = vpop.permute.xlu0 %1636  ;;  %v1601_v33 = vpop.permute.xlu1 %1600 }
 0x1f3   :  { %v1652_v63 = vsel %vm374_vm11, %v1651_v24, %v1637_v52  ;;  %v1643_v60 = vsel %vm370_vm9, %v1642_v59, %v1601_v33 }
 0x1f4   :  { %113 = vrot.lane.b32.xlu0 %v71_v42, %s6241_s0  ;;  %6058 = vmatprep.subr.msk.mxu0 %vm628_vm12, %v1652_v63  ;;  %v1644_v41 = vsel %vm372_vm10, %v1643_v60, %v1605_v22  ;;  %v8936_v22 = vld [vmem:[#allocation20_spill] sm:$0xff] }
 0x1f5   :  { %111 = vrot.lane.b32.xlu1 %v70_v30, %s6241_s0  ;;  %v8938_v30 = vld [vmem:[#allocation31_spill] sm:$0xff] }
 0x1f6   :  { %v1927_v14 = vpop.permute.xlu0 %1926  ;;  %v1609_v6 = vpop.permute.xlu1 %1608 }
 0x1f7   :  { %v1645_v47 = vsel %vm374_vm11, %v1644_v41, %v1609_v6  ;;  %v1960_v23 = vsel %vm362_vm5, %v8935_v40, %v1927_v14 }
 0x1f8   :  { %117 = vrot.lane.b32.xlu0 %v73_v31, %s6241_s0  ;;  %6059 = vmatpush1.msk.msra.mxu0 %vm628_vm12, %v1645_v47  ;;  %v1961_v18 = vsel %vm364_vm6, %v1960_v23, %v7560_v26 }
 0x1f9   :  { %115 = vrot.lane.b32.xlu1 %v72_v58, %s6241_s0  ;;  %6060 = vmatmul.mubr.msk.f32.vlgmr.msra.gmra.mrb[0].mxu0 %vm624_vm13, %v6057_v37 }
 0x1fa   :  { %v1935_v32 = vpop.permute.xlu0 %1934  ;;  %v1899_v34 = vpop.permute.xlu1 %1898  ;;  %2042 = vmatprep.mubr.f32.mxu0 %v8899_v19 }
 0x1fb   :  { %v1962_v48 = vsel %vm366_vm7, %v1961_v18, %v1935_v32  ;;  %v1953_v57 = vsel %vm362_vm5, %v8936_v22, %v1899_v34 }
 0x1fc   :  { %121 = vrot.lane.b32.xlu0 %v75_v28, %s6241_s0  ;;  %v1954_v44 = vsel %vm364_vm6, %v1953_v57, %v7568_v11  ;;  %v6061_v11 = vld [vmem:[%s8858_s1 + $0x28] sm:$0xff] }
 0x1fd   :  { %119 = vrot.lane.b32.xlu1 %v74_v39, %s6241_s0 }
 0x1fe   :  { %v1939_v35 = vpop.permute.xlu0 %1938  ;;  %v1907_v53 = vpop.permute.xlu1 %1906 }
 0x1ff   :  { %v1963_v56 = vsel %vm368_vm8, %v1962_v48, %v1939_v35  ;;  %v1955_v26 = vsel %vm366_vm7, %v1954_v44, %v1907_v53  ;;  %v6065_v35 = vld [vmem:[%s8858_s1 + $0x30] sm:$0xff] }
 0x201   :  { %123 = vrot.lane.b32.xlu1 %v76_v25, %s6241_s0 }
 0x202   :  { %v1943_v20 = vpop.permute.xlu0 %1942  ;;  %v1911_v36 = vpop.permute.xlu1 %1910 }
 0x203   :  { %v1964_v16 = vsel %vm370_vm9, %v1963_v56, %v1943_v20  ;;  %v1956_v9 = vsel %vm368_vm8, %v1955_v26, %v1911_v36 }
 0x206   :  { %v1947_v55 = vpop.permute.xlu0 %1946  ;;  %v1915_v62 = vpop.permute.xlu1 %1914 }
 0x207   :  { %v1965_v49 = vsel %vm372_vm10, %v1964_v16, %v1947_v55  ;;  %v1957_v7 = vsel %vm370_vm9, %v1956_v9, %v1915_v62 }
 0x20a   :  { %v1951_v21 = vpop.permute.xlu0 %1950  ;;  %v1919_v13 = vpop.permute.xlu1 %1918 }
 0x20b   :  { %v1966_v51 = vsel %vm374_vm11, %v1965_v49, %v1951_v21  ;;  %v1958_v10 = vsel %vm372_vm10, %v1957_v7, %v1919_v13  ;;  %v6253_v21 = vmov 0  }
 0x20c   :  { %6062 = vmatprep.subr.msk.mxu0 %vm628_vm12, %v1966_v51  ;;  %6165 = vset.pattern.permute.xlu0 %v6253_v21 }
 0x20e   :  { %v2246_v0 = vpop.permute.xlu0 %2245  ;;  %v1923_v54 = vpop.permute.xlu1 %1922 }
 0x20f   :  { %v1959_v4 = vsel %vm374_vm11, %v1958_v10, %v1923_v54  ;;  %v2279_v29 = vsel %vm362_vm5, %v8937_v61, %v2246_v0 }
 0x210   :  { %6063 = vmatpush1.msk.msra.mxu0 %vm628_vm12, %v1959_v4 }
 0x211   :  { %6064 = vmatmul.mubr.msk.f32.vlgmr.msra.gmra.mrb[0].mxu0 %vm624_vm13, %v6061_v11 }
 0x212   :  { %v2250_v38 = vpop.permute.xlu0 %2249  ;;  %v2218_v2 = vpop.permute.xlu1 %2217  ;;  %2361 = vmatprep.mubr.f32.mxu0 %v8899_v19 }
 0x213   :  { %v2280_v42 = vsel %vm364_vm6, %v2279_v29, %v2250_v38  ;;  %v2272_v63 = vsel %vm362_vm5, %v8938_v30, %v2218_v2  ;;  %v6069_v38 = vld [vmem:[%s8858_s1 + $0x38] sm:$0xff] }
 0x216   :  { %v2254_v15 = vpop.permute.xlu0 %2253  ;;  %v2222_v50 = vpop.permute.xlu1 %2221 }
 0x217   :  { %v2281_v59 = vsel %vm366_vm7, %v2280_v42, %v2254_v15  ;;  %v2273_v31 = vsel %vm364_vm6, %v2272_v63, %v2222_v50 }
 0x21a   :  { %v2258_v8 = vpop.permute.xlu0 %2257  ;;  %v2226_v5 = vpop.permute.xlu1 %2225 }
 0x21b   :  { %v2282_v33 = vsel %vm368_vm8, %v2281_v59, %v2258_v8  ;;  %v2274_v58 = vsel %vm366_vm7, %v2273_v31, %v2226_v5 }
 0x21e   :  { %v2262_v12 = vpop.permute.xlu0 %2261  ;;  %v2230_v45 = vpop.permute.xlu1 %2229 }
 0x21f   :  { %v2283_v60 = vsel %vm370_vm9, %v2282_v33, %v2262_v12  ;;  %v2275_v47 = vsel %vm368_vm8, %v2274_v58, %v2230_v45 }
 0x222   :  { %v2266_v24 = vpop.permute.xlu0 %2265  ;;  %v2234_v52 = vpop.permute.xlu1 %2233 }
 0x223   :  { %v2284_v14 = vsel %vm372_vm10, %v2283_v60, %v2266_v24  ;;  %v2276_v28 = vsel %vm370_vm9, %v2275_v47, %v2234_v52 }
 0x226   :  { %v2270_v41 = vpop.permute.xlu0 %2269  ;;  %v2238_v6 = vpop.permute.xlu1 %2237 }
 0x227   :  { %v2285_v37 = vsel %vm374_vm11, %v2284_v14, %v2270_v41  ;;  %v2277_v32 = vsel %vm372_vm10, %v2276_v28, %v2238_v6 }
 0x228   :  { %6066 = vmatprep.subr.msk.mxu0 %vm628_vm12, %v2285_v37 }
 0x22a   :  { %v2560_v34 = vpop.permute.xlu0 %2559  ;;  %v2242_v39 = vpop.permute.xlu1 %2241 }
 0x22b   :  { %v2278_v53 = vsel %vm374_vm11, %v2277_v32, %v2242_v39  ;;  %v2593_v48 = vsel %vm362_vm5, %v7299_v17, %v2560_v34  ;;  %v6073_v34 = vld [vmem:[%s8858_s1 + $0x40] sm:$0xff] }
 0x22c   :  { %6067 = vmatpush1.msk.msra.mxu0 %vm628_vm12, %v2278_v53 }
 0x22d   :  { %6068 = vmatmul.mubr.msk.f32.vlgmr.msra.gmra.mrb[0].mxu0 %vm624_vm13, %v6065_v35 }
 0x22e   :  { %v2564_v25 = vpop.permute.xlu0 %2563  ;;  %v2532_v20 = vpop.permute.xlu1 %2531  ;;  %2675 = vmatprep.mubr.f32.mxu0 %v8899_v19 }
 0x22f   :  { %v2594_v22 = vsel %vm364_vm6, %v2593_v48, %v2564_v25  ;;  %v2586_v13 = vsel %vm362_vm5, %v7311_v43, %v2532_v20 }
 0x232   :  { %v2568_v36 = vpop.permute.xlu0 %2567  ;;  %v2536_v40 = vpop.permute.xlu1 %2535 }
 0x233   :  { %v2595_v56 = vsel %vm366_vm7, %v2594_v22, %v2568_v36  ;;  %v2587_v17 = vsel %vm364_vm6, %v2586_v13, %v2536_v40 }
 0x236   :  { %v2572_v23 = vpop.permute.xlu0 %2571 }
 0x237   :  { %v2540_v18 = vpop.permute.xlu1 %2539  ;;  %v2596_v44 = vsel %vm368_vm8, %v2595_v56, %v2572_v23 }
 0x238   :  { %v2588_v10 = vsel %vm366_vm7, %v2587_v17, %v2540_v18 }
 0x23a   :  { %v2576_v55 = vpop.permute.xlu0 %2575 }
 0x23b   :  { %v2544_v62 = vpop.permute.xlu1 %2543  ;;  %v2597_v49 = vsel %vm370_vm9, %v2596_v44, %v2576_v55 }
 0x23c   :  { %v2589_v0 = vsel %vm368_vm8, %v2588_v10, %v2544_v62 }
 0x23e   :  { %v2580_v57 = vpop.permute.xlu0 %2579 }
 0x23f   :  { %v2548_v16 = vpop.permute.xlu1 %2547  ;;  %v2598_v26 = vsel %vm372_vm10, %v2597_v49, %v2580_v57 }
 0x240   :  { %v2590_v54 = vsel %vm370_vm9, %v2589_v0, %v2548_v16 }
 0x242   :  { %v2584_v51 = vpop.permute.xlu0 %2583 }
 0x243   :  { %v2599_v9 = vsel %vm374_vm11, %v2598_v26, %v2584_v51  ;;  %v2552_v7 = vpop.permute.xlu1 %2551 }
 0x244   :  { %6070 = vmatprep.subr.msk.mxu0 %vm628_vm12, %v2599_v9  ;;  %v2591_v4 = vsel %vm372_vm10, %v2590_v54, %v2552_v7 }
 0x246   :  { %v2874_v11 = vpop.permute.xlu0 %2873 }
 0x247   :  { %v2556_v43 = vpop.permute.xlu1 %2555  ;;  %v2907_v42 = vsel %vm362_vm5, %v7459_v27, %v2874_v11 }
 0x248   :  { %v2592_v2 = vsel %vm374_vm11, %v2591_v4, %v2556_v43 }
 0x249   :  { %6071 = vmatpush1.msk.msra.mxu0 %vm628_vm12, %v2592_v2 }
 0x24a   :  { %v2878_v15 = vpop.permute.xlu0 %2877  ;;  %6072 = vmatmul.mubr.msk.f32.vlgmr.msra.gmra.mrb[0].mxu0 %vm624_vm13, %v6069_v38 }
 0x24b   :  { %v2846_v50 = vpop.permute.xlu1 %2845  ;;  %2989 = vmatprep.mubr.f32.mxu0 %v8899_v19  ;;  %v2908_v24 = vsel %vm364_vm6, %v2907_v42, %v2878_v15 }
 0x24c   :  { %v2900_v60 = vsel %vm362_vm5, %v7493_v46, %v2846_v50 }
 0x24e   :  { %v2882_v8 = vpop.permute.xlu0 %2881 }
 0x24f   :  { %v2850_v5 = vpop.permute.xlu1 %2849  ;;  %v2909_v59 = vsel %vm366_vm7, %v2908_v24, %v2882_v8 }
 0x250   :  { %v2901_v41 = vsel %vm364_vm6, %v2900_v60, %v2850_v5 }
 0x252   :  { %v2886_v12 = vpop.permute.xlu0 %2885 }
 0x253   :  { %v2854_v45 = vpop.permute.xlu1 %2853  ;;  %v2910_v30 = vsel %vm368_vm8, %v2909_v59, %v2886_v12 }
 0x254   :  { %v2902_v58 = vsel %vm366_vm7, %v2901_v41, %v2854_v45 }
 0x256   :  { %v2890_v61 = vpop.permute.xlu0 %2889 }
 0x257   :  { %v2858_v29 = vpop.permute.xlu1 %2857  ;;  %v2911_v63 = vsel %vm370_vm9, %v2910_v30, %v2890_v61 }
 0x258   :  { %v2903_v37 = vsel %vm368_vm8, %v2902_v58, %v2858_v29 }
 0x25a   :  { %v2894_v52 = vpop.permute.xlu0 %2893 }
 0x25b   :  { %v2862_v33 = vpop.permute.xlu1 %2861  ;;  %v2912_v31 = vsel %vm372_vm10, %v2911_v63, %v2894_v52 }
 0x25c   :  { %v2904_v47 = vsel %vm370_vm9, %v2903_v37, %v2862_v33 }
 0x25e   :  { %v2898_v14 = vpop.permute.xlu0 %2897 }
 0x25f   :  { %v2913_v27 = vsel %vm374_vm11, %v2912_v31, %v2898_v14  ;;  %v2866_v6 = vpop.permute.xlu1 %2865 }
 0x260   :  { %6074 = vmatprep.subr.msk.mxu0 %vm628_vm12, %v2913_v27  ;;  %v2905_v32 = vsel %vm372_vm10, %v2904_v47, %v2866_v6 }
 0x262   :  { %v110_v28 = vpop.permute.xlu0 %109 }
 0x263   :  { %150 = vst.msk [vmem:[#allocation2 + $0x61] sm:$0xff] %vm141_vm2, %v110_v28  ;;  %v2870_v46 = vpop.permute.xlu1 %2869 }
 0x264   :  { %v2906_v39 = vsel %vm374_vm11, %v2905_v32, %v2870_v46 }
 0x265   :  { %6075 = vmatpush1.msk.msra.mxu0 %vm628_vm12, %v2906_v39 }
 0x266   :  { %v114_v35 = vpop.permute.xlu0 %113  ;;  %6076 = vmatmul.mubr.msk.f32.vlgmr.msra.gmra.mrb[0].mxu0 %vm624_vm13, %v6073_v34 }
 0x267   :  { %152 = vst.msk [vmem:[#allocation2 + $0x79] sm:$0xff] %vm141_vm2, %v114_v35  ;;  %v112_v53 = vpop.permute.xlu1 %111 }
 0x268   :  { %151 = vst.msk [vmem:[#allocation2 + $0x69] sm:$0xff] %vm141_vm2, %v112_v53 }
 0x26a   :  { %v118_v25 = vpop.permute.xlu0 %117  ;;  %v7717_v55 = vld [vmem:[#allocation2 + $0x60] sm:$0xff] }
 0x26b   :  { %154 = vst.msk [vmem:[#allocation2 + $0x91] sm:$0xff] %vm141_vm2, %v118_v25  ;;  %v116_v20 = vpop.permute.xlu1 %115  ;;  %v4002_v21 = vrot.slane %v7717_v55, 1 }
 0x26c   :  { %153 = vst.msk [vmem:[#allocation2 + $0x81] sm:$0xff] %vm141_vm2, %v116_v20 }
 0x26e   :  { %v122_v36 = vpop.permute.xlu0 %121  ;;  %v7732_v49 = vld [vmem:[#allocation2 + $0x78] sm:$0xff] }
 0x26f   :  { %156 = vst.msk [vmem:[#allocation2 + $0xa9] sm:$0xff] %vm141_vm2, %v122_v36  ;;  %v120_v40 = vpop.permute.xlu1 %119  ;;  %v7710_v23 = vld [vmem:[#allocation2 + $0x68] sm:$0xff]  ;;  %v7715_v18 = vld [vmem:[#allocation2 + $0x70] sm:$0x3]  ;;  %v4007_v4 = vrot.slane %v7732_v49, 1 }
 0x270   :  { %155 = vst.msk [vmem:[#allocation2 + $0x99] sm:$0xff] %vm141_vm2, %v120_v40  ;;  %3307 = vrot.lane.b32.xlu0 %v7710_v23, %s6243_s7  ;;  %v4003_v16 = vrot.slane %v7710_v23, 1  ;;  %v4005_v44 = vrot.slane %v7715_v18, 1 }
 0x272   :  { %v7719_v62 = vld [vmem:[#allocation2 + $0x90] sm:$0xff]  ;;  %v7751_v0 = vsel %vm1104_vm3, %v4003_v16, %v4005_v44  ;;  %v7758_v38 = vsel %vm1104_vm3, %v4002_v21, %v4003_v16 }
 0x273   :  { %v124_v48 = vpop.permute.xlu1 %123  ;;  %v7721_v22 = vld [vmem:[#allocation2 + $0x80] sm:$0xff]  ;;  %v3091_v57 = vcombine.low %v7717_v55, %v7719_v62  ;;  %v3092_v56 = vcombine.high %v7717_v55, %v7719_v62  ;;  %v4012_v26 = vrot.slane %v7719_v62, 1  ;;  %v7742_v9 = vld [vmem:[#allocation2 + $0x88] sm:$0x3] }
 0x274   :  { %157 = vst.msk [vmem:[#allocation2 + $0xb1] sm:$0xff] %vm141_vm2, %v124_v48  ;;  %3311 = vrot.lane.b32.xlu1 %v7721_v22, %s6243_s7  ;;  %v4008_v43 = vrot.slane %v7721_v22, 1  ;;  %v4010_v8 = vrot.slane %v7742_v9, 1 }
 0x275   :  { %v7814_v37 = vrot.slane %v3091_v57, %v6457_v3  ;;  %v7834_v39 = vrot.slane %v3092_v56, %v6457_v3 }
 0x276   :  { %v7735_v13 = vld [vmem:[#allocation2 + $0xa8] sm:$0xff]  ;;  %v4011_v30 = vsel %vm1104_vm3, %v4008_v43, %v4010_v8  ;;  %v7795_v60 = vsel %vm1104_vm3, %v4007_v4, %v4008_v43 }
 0x277   :  { %v7738_v51 = vld [vmem:[#allocation2 + $0x98] sm:$0xff]  ;;  %v7740_v17 = vld [vmem:[#allocation2 + $0xa0] sm:$0x3]  ;;  %v3107_v7 = vcombine.low %v7732_v49, %v7735_v13  ;;  %v3108_v10 = vcombine.high %v7732_v49, %v7735_v13  ;;  %v4017_v12 = vrot.slane %v7735_v13, 1 }
 0x278   :  { %3315 = vrot.lane.b32.xlu0 %v7738_v51, %s6243_s7  ;;  %v4013_v54 = vrot.slane %v7738_v51, 1  ;;  %v4015_v11 = vrot.slane %v7740_v17, 1  ;;  %v3159_v2 = vcombine.low %v7710_v23, %v7738_v51  ;;  %v3160_v15 = vcombine.high %v7710_v23, %v7738_v51 }
 0x279   :  { %v7811_v58 = vrot.slane %v3107_v7, %v6457_v3  ;;  %v7820_v28 = vrot.slane %v3108_v10, %v6457_v3 }
 0x27a   :  { %v7765_v50 = vsel %vm1104_vm3, %v4013_v54, %v4015_v11  ;;  %v7769_v5 = vsel %vm1104_vm3, %v4012_v26, %v4013_v54  ;;  %v7837_v35 = vrot.slane %v3159_v2, %v6457_v3  ;;  %v7861_v16 = vrot.slane %v3160_v15, %v6457_v3 }
 0x27b   :  { %v7772_v45 = vld [vmem:[#allocation2 + $0xb0] sm:$0xff]  ;;  %v4098_v61 = vcombine.low %v7751_v0, %v7765_v50  ;;  %v4099_v29 = vcombine.high %v7751_v0, %v7765_v50  ;;  %v7778_v42 = vld [vmem:[#allocation2 + $0xb8] sm:$0x3]  ;;  %v4030_v24 = vcombine.low %v7758_v38, %v7769_v5  ;;  %v4031_v52 = vcombine.high %v7758_v38, %v7769_v5 }
 0x27c   :  { %3305 = vrot.lane.b32.xlu0 %v7717_v55, %s6243_s7  ;;  %3319 = vrot.lane.b32.xlu1 %v7772_v45, %s6243_s7  ;;  %v4018_v59 = vrot.slane %v7772_v45, 1  ;;  %v4020_v33 = vrot.slane %v7778_v42, 1  ;;  %v3175_v32 = vcombine.low %v7721_v22, %v7772_v45  ;;  %v3123_v46 = vcombine.low %v7814_v37, %v7811_v58 }
 0x27d   :  { %v7831_v34 = vrot.slane %v4098_v61, %v6457_v3  ;;  %v3176_v25 = vcombine.high %v7721_v22, %v7772_v45  ;;  %v3124_v20 = vcombine.high %v7814_v37, %v7811_v58  ;;  %v3139_v36 = vcombine.low %v7834_v39, %v7820_v28 }
 0x27e   :  { %v7792_v63 = vsel %vm1104_vm3, %v4018_v59, %v4020_v33  ;;  %v7798_v31 = vsel %vm1104_vm3, %v4017_v12, %v4018_v59  ;;  %v7840_v53 = vrot.slane %v3175_v32, %v6457_v3  ;;  %v3140_v40 = vcombine.high %v7834_v39, %v7820_v28 }
 0x27f   :  { %v4114_v14 = vcombine.low %v4011_v30, %v7792_v63  ;;  %v4115_v41 = vcombine.high %v4011_v30, %v7792_v63  ;;  %v4046_v27 = vcombine.low %v7795_v60, %v7798_v31  ;;  %v4047_v6 = vcombine.high %v7795_v60, %v7798_v31 }
 0x280   :  { %3313 = vrot.lane.b32.xlu0 %v7719_v62, %s6243_s7  ;;  %3309 = vrot.lane.b32.xlu1 %v7732_v49, %s6243_s7  ;;  %v3191_v57 = vcombine.low %v7837_v35, %v7840_v53  ;;  %v3192_v56 = vcombine.high %v7837_v35, %v7840_v53  ;;  %v7864_v44 = vrot.slane %v3176_v25, %v6457_v3  ;;  %v4936_v59 = vrot.slane %v7715_v18, 2 }
 0x281   :  { %v7817_v47 = vrot.slane %v4114_v14, %v6457_v3  ;;  %v7867_v21 = vrot.slane %v4115_v41, %v6457_v3  ;;  %v7870_v26 = vrot.slane %v4046_v27, %v6457_v3  ;;  %v7875_v10 = vrot.slane %v4047_v6, %v6457_v3 }
 0x282   :  { %v3207_v54 = vcombine.low %v7861_v16, %v7864_v44  ;;  %v3208_v11 = vcombine.high %v7861_v16, %v7864_v44  ;;  %v7886_v4 = vrot.slane %v4099_v29, %v6457_v3  ;;  %v7889_v43 = vrot.slane %v4030_v24, %v6457_v3 }
 0x283   :  { %v4130_v48 = vcombine.low %v7831_v34, %v7817_v47  ;;  %v7892_v2 = vrot.slane %v4031_v52, %v6457_v3  ;;  %v4934_v52 = vrot.slane %v7710_v23, 2  ;;  %v4939_v33 = vrot.slane %v7721_v22, 2 }
 0x284   :  { %3691 = vrot.lane.b32.xlu0 %v7710_v23, %s6244_s8  ;;  %3317 = vrot.lane.b32.xlu1 %v7735_v13, %s6243_s7  ;;  %v4933_v23 = vrot.slane %v7717_v55, 2  ;;  %v3215_v53 = vrot.slane %v3207_v54, %v6660_v1 }
 0x286   :  { %v3225_v54 = vcombine.high %v3215_v53, %v8899_v19 }
 0x288   :  { %3699 = vrot.lane.b32.xlu0 %v7738_v51, %s6244_s8  ;;  %3695 = vrot.lane.b32.xlu1 %v7721_v22, %s6244_s8  ;;  %v4951_v22 = vrot.slane %v7778_v42, 2 }
 0x28c   :  { %3689 = vrot.lane.b32.xlu0 %v7717_v55, %s6244_s8  ;;  %3703 = vrot.lane.b32.xlu1 %v7772_v45, %s6244_s8 }
 0x290   :  { %3697 = vrot.lane.b32.xlu0 %v7719_v62, %s6244_s8  ;;  %3693 = vrot.lane.b32.xlu1 %v7732_v49, %s6244_s8 }
 0x294   :  { %4317 = vrot.lane.b32.xlu0 %v7751_v0, %s6243_s7  ;;  %3701 = vrot.lane.b32.xlu1 %v7735_v13, %s6244_s8 }
 0x298   :  { %4325 = vrot.lane.b32.xlu0 %v7765_v50, %s6243_s7  ;;  %4321 = vrot.lane.b32.xlu1 %v4011_v30, %s6243_s7 }
 0x29c   :  { %4315 = vrot.lane.b32.xlu0 %v7758_v38, %s6243_s7  ;;  %4329 = vrot.lane.b32.xlu1 %v7792_v63, %s6243_s7 }
 0x2a0   :  { %4323 = vrot.lane.b32.xlu0 %v7769_v5, %s6243_s7  ;;  %4319 = vrot.lane.b32.xlu1 %v7795_v60, %s6243_s7 }
 0x2a4   :  { %4626 = vrot.lane.b32.xlu0 %v7751_v0, %s6244_s8  ;;  %4327 = vrot.lane.b32.xlu1 %v7798_v31, %s6243_s7  ;;  %v7943_v0 = vsel %vm2051_vm4, %v4934_v52, %v4936_v59 }
 0x2a8   :  { %4634 = vrot.lane.b32.xlu0 %v7765_v50, %s6244_s8  ;;  %4630 = vrot.lane.b32.xlu1 %v4011_v30, %s6244_s8  ;;  %v4944_v50 = vrot.slane %v7738_v51, 2  ;;  %v4941_v30 = vrot.slane %v7742_v9, 2  ;;  %v4949_v51 = vrot.slane %v7772_v45, 2  ;;  %v4943_v9 = vrot.slane %v7719_v62, 2  ;;  %v2998_v62 = vld [vmem:[%s8859_s2] sm:$0xff] }
 0x2aa   :  { %v7970_v55 = vsel %vm2051_vm4, %v4949_v51, %v4951_v22  ;;  %v7979_v45 = vsel %vm2051_vm4, %v4943_v9, %v4944_v50 }
 0x2ac   :  { %4624 = vrot.lane.b32.xlu0 %v7758_v38, %s6244_s8  ;;  %4638 = vrot.lane.b32.xlu1 %v7792_v63, %s6244_s8  ;;  %v4946_v38 = vrot.slane %v7740_v17, 2  ;;  %v7967_v17 = vsel %vm2051_vm4, %v4933_v23, %v4934_v52  ;;  %v4938_v63 = vrot.slane %v7732_v49, 2 }
 0x2ae   :  { %v7955_v18 = vsel %vm2051_vm4, %v4944_v50, %v4946_v38  ;;  %v7982_v42 = vsel %vm2051_vm4, %v4938_v63, %v4939_v33 }
 0x2b0   :  { %4632 = vrot.lane.b32.xlu0 %v7769_v5, %s6244_s8  ;;  %4628 = vrot.lane.b32.xlu1 %v7795_v60, %s6244_s8  ;;  %v7958_v5 = vsel %vm2051_vm4, %v4939_v33, %v4941_v30  ;;  %v4948_v60 = vrot.slane %v7735_v13, 2 }
 0x2b2   :  { %v7993_v49 = vsel %vm2051_vm4, %v4948_v60, %v4949_v51 }
 0x2b4   :  { %5248 = vrot.lane.b32.xlu0 %v7943_v0, %s6243_s7  ;;  %4636 = vrot.lane.b32.xlu1 %v7798_v31, %s6244_s8 }
 0x2b8   :  { %5256 = vrot.lane.b32.xlu0 %v7955_v18, %s6243_s7  ;;  %5252 = vrot.lane.b32.xlu1 %v7958_v5, %s6243_s7 }
 0x2bc   :  { %5246 = vrot.lane.b32.xlu0 %v7967_v17, %s6243_s7  ;;  %5260 = vrot.lane.b32.xlu1 %v7970_v55, %s6243_s7 }
 0x2c0   :  { %5254 = vrot.lane.b32.xlu0 %v7979_v45, %s6243_s7  ;;  %5250 = vrot.lane.b32.xlu1 %v7982_v42, %s6243_s7 }
 0x2c4   :  { %3001 = vperm.xlu0 %6165, %v2998_v62   ;;  %5258 = vrot.lane.b32.xlu1 %v7993_v49, %s6243_s7 }
 0x2c8   :  { %5565 = vrot.lane.b32.xlu0 %v7955_v18, %s6244_s8  ;;  %5557 = vrot.lane.b32.xlu1 %v7943_v0, %s6244_s8 }
 0x2cc   :  { %5555 = vrot.lane.b32.xlu0 %v7967_v17, %s6244_s8  ;;  %5561 = vrot.lane.b32.xlu1 %v7958_v5, %s6244_s8 }
 0x2d0   :  { %5563 = vrot.lane.b32.xlu0 %v7979_v45, %s6244_s8  ;;  %5569 = vrot.lane.b32.xlu1 %v7970_v55, %s6244_s8 }
 0x2d4   :  { %5559 = vrot.lane.b32.xlu1 %v7982_v42, %s6244_s8 }
 0x2d8   :  { %5567 = vrot.lane.b32.xlu1 %v7993_v49, %s6244_s8 }
 0x2e2   :  { %v3308_v13 = vpop.permute.xlu0 %3307 }
 0x2e6   :  { %v3312_v31 = vpop.permute.xlu1 %3311 }
 0x2ea   :  { %v3316_v14 = vpop.permute.xlu0 %3315 }
 0x2eb   :  { %v3397_v41 = vcombine.low %v3308_v13, %v3316_v14  ;;  %v3398_v62 = vcombine.high %v3308_v13, %v3316_v14 }
 0x2ed   :  { %v3405_v25 = vrot.slane %v3397_v41, %v6457_v3 }
 0x2ee   :  { %v3306_v27 = vpop.permute.xlu0 %3305  ;;  %v3320_v6 = vpop.permute.xlu1 %3319 }
 0x2ef   :  { %v3413_v32 = vcombine.low %v3312_v31, %v3320_v6  ;;  %v3414_v23 = vcombine.high %v3312_v31, %v3320_v6 }
 0x2f1   :  { %v3421_v52 = vrot.slane %v3413_v32, %v6457_v3  ;;  %v3428_v24 = vrot.slane %v3414_v23, %v6457_v3 }
 0x2f2   :  { %v3314_v59 = vpop.permute.xlu0 %3313  ;;  %v3310_v50 = vpop.permute.xlu1 %3309 }
 0x2f3   :  { %v3429_v38 = vcombine.low %v3405_v25, %v3421_v52  ;;  %v3329_v33 = vcombine.low %v3306_v27, %v3314_v59  ;;  %v3430_v9 = vcombine.high %v3405_v25, %v3421_v52  ;;  %v3412_v52 = vrot.slane %v3398_v62, %v6457_v3 }
 0x2f5   :  { %v8016_v30 = vrot.slane %v3429_v38, %v6660_v1  ;;  %v3337_v41 = vrot.slane %v3329_v33, %v6457_v3  ;;  %v3444_v25 = vrot.slane %v3430_v9, %v6660_v1  ;;  %v3445_v14 = vcombine.low %v3412_v52, %v3428_v24 }
 0x2f6   :  { %v8018_v51 = vpop.permute.xlu0 %3691  ;;  %v3318_v22 = vpop.permute.xlu1 %3317  ;;  %v3330_v9 = vcombine.high %v3306_v27, %v3314_v59 }
 0x2f7   :  { %v3345_v63 = vcombine.low %v3310_v50, %v3318_v22  ;;  %v3461_v60 = vcombine.high %v8016_v30, %v8899_v19  ;;  %v3346_v23 = vcombine.high %v3310_v50, %v3318_v22  ;;  %v3462_v29 = vcombine.high %v3444_v25, %v8899_v19 }
 0x2f8   :  { %v3453_v8 = vrot.slane %v3445_v14, %v6660_v1  ;;  %v3344_v22 = vrot.slane %v3330_v9, %v6457_v3 }
 0x2f9   :  { %v3353_v32 = vrot.slane %v3345_v63, %v6457_v3  ;;  %3494 = vrot.lane.b32.xlu0 %v3461_v60, %s6249_s12  ;;  %v3360_v12 = vrot.slane %v3346_v23, %v6457_v3 }
 0x2fa   :  { %v8026_v38 = vpop.permute.xlu0 %3699  ;;  %v8028_v31 = vpop.permute.xlu1 %3695  ;;  %v3463_v59 = vcombine.high %v3453_v8, %v8899_v19 }
 0x2fb   :  { %v3361_v6 = vcombine.low %v3337_v41, %v3353_v32  ;;  %v3362_v60 = vcombine.high %v3337_v41, %v3353_v32 }
 0x2fd   :  { %3498 = vrot.lane.b32.xlu0 %v3444_v25, %s6246_s9  ;;  %v8034_v13 = vrot.slane %v3361_v6, %v6660_v1  ;;  %v3376_v50 = vrot.slane %v3362_v60, %v6660_v1  ;;  %v3378_v60 = vcombine.high %v3344_v22, %v3360_v12 }
 0x2fe   :  { %v8036_v33 = vpop.permute.xlu0 %3689  ;;  %v8038_v63 = vpop.permute.xlu1 %3703 }
 0x2ff   :  { %v3393_v61 = vcombine.high %v8034_v13, %v8899_v19  ;;  %v3394_v41 = vcombine.high %v3376_v50, %v8899_v19 }
 0x301   :  { %3502 = vrot.lane.b32.xlu0 %v3462_v29, %s6250_s13  ;;  %3466 = vrot.lane.b32.xlu1 %v3393_v61, %s6249_s12  ;;  %v3446_v29 = vcombine.high %v3412_v52, %v3428_v24  ;;  %v3377_v61 = vcombine.low %v3344_v22, %v3360_v12  ;;  %v8877_v52 = vmov 0.00390625   ;;  %v3392_v12 = vrot.slane %v3378_v60, %v6660_v1 }
 0x302   :  { %v8045_v62 = vpop.permute.xlu0 %3697  ;;  %v8047_v6 = vpop.permute.xlu1 %3693  ;;  %3072 = vmatprep.mubr.f32.mxu1 %v8877_v52  ;;  %5932 = vmatprep.mubr.f32.mxu0 %v8877_v52 }
 0x303   :  { %v3460_v14 = vrot.slane %v3446_v29, %v6660_v1  ;;  %v3385_v23 = vrot.slane %v3377_v61, %v6660_v1  ;;  %v8081_v29 = vrot.slane %v3191_v57, %v6660_v1  ;;  %v3206_v57 = vrot.slane %v3192_v56, %v6660_v1 }
 0x304   :  { %v3138_v56 = vrot.slane %v3124_v20, %v6660_v1 }
 0x305   :  { %3506 = vrot.lane.b32.xlu0 %v3453_v8, %s6247_s10  ;;  %3470 = vrot.lane.b32.xlu1 %v3376_v50, %s6246_s9  ;;  %v3464_v9 = vcombine.high %v3460_v14, %v8899_v19  ;;  %v3395_v50 = vcombine.high %v3385_v23, %v8899_v19 }
 0x306   :  { %v8055_v27 = vpop.permute.xlu0 %4317  ;;  %v8059_v32 = vpop.permute.xlu1 %3701 }
 0x309   :  { %3510 = vrot.lane.b32.xlu0 %v3463_v59, %s6251_s14  ;;  %3474 = vrot.lane.b32.xlu1 %v3394_v41, %s6250_s13  ;;  %v3223_v59 = vcombine.high %v8081_v29, %v8899_v19 }
 0x30a   :  { %v8063_v25 = vpop.permute.xlu0 %4325  ;;  %v8069_v24 = vpop.permute.xlu1 %4321 }
 0x30d   :  { %3514 = vrot.lane.b32.xlu0 %v3460_v14, %s6248_s11  ;;  %3478 = vrot.lane.b32.xlu1 %v3385_v23, %s6247_s10  ;;  %v3396_v14 = vcombine.high %v3392_v12, %v8899_v19  ;;  %v8105_v23 = vrot.slane %v3123_v46, %v6660_v1  ;;  %v3797_v46 = vcombine.low %v8028_v31, %v8038_v63 }
 0x30e   :  { %v8071_v8 = vpop.permute.xlu0 %4315  ;;  %v8090_v22 = vpop.permute.xlu1 %4329 }
 0x30f   :  { %v3155_v35 = vcombine.high %v8105_v23, %v8899_v19 }
 0x311   :  { %3518 = vrot.lane.b32.xlu0 %v3464_v9, %s6252_s15  ;;  %3482 = vrot.lane.b32.xlu1 %v3395_v50, %s6251_s14  ;;  %v3224_v50 = vcombine.high %v3206_v57, %v8899_v19 }
 0x312   :  { %v8085_v61 = vpop.permute.xlu0 %4323  ;;  %v8109_v60 = vpop.permute.xlu1 %4319 }
 0x315   :  { %3256 = vrot.lane.b32.xlu0 %v3223_v59, %s6249_s12  ;;  %3486 = vrot.lane.b32.xlu1 %v3392_v12, %s6248_s11  ;;  %v3781_v12 = vcombine.low %v8018_v51, %v8026_v38 }
 0x316   :  { %v8094_v41 = vpop.permute.xlu0 %4626  ;;  %v8128_v59 = vpop.permute.xlu1 %4327 }
 0x317   :  { %v3789_v58 = vrot.slane %v3781_v12, %v6457_v3 }
 0x319   :  { %3260 = vrot.lane.b32.xlu0 %v3206_v57, %s6246_s9  ;;  %3490 = vrot.lane.b32.xlu1 %v3396_v14, %s6252_s15  ;;  %v3805_v14 = vrot.slane %v3797_v46, %v6457_v3  ;;  %v3222_v46 = vrot.slane %v3208_v11, %v6660_v1 }
 0x31a   :  { %v8111_v9 = vpop.permute.xlu0 %4634  ;;  %v8142_v37 = vpop.permute.xlu1 %4630 }
 0x31b   :  { %v3813_v20 = vcombine.low %v3789_v58, %v3805_v14  ;;  %v3814_v7 = vcombine.high %v3789_v58, %v3805_v14 }
 0x31d   :  { %3264 = vrot.lane.b32.xlu0 %v3224_v50, %s6250_s13  ;;  %3228 = vrot.lane.b32.xlu1 %v3155_v35, %s6249_s12  ;;  %v3156_v50 = vcombine.high %v3138_v56, %v8899_v19  ;;  %v3729_v35 = vcombine.low %v8047_v6, %v8059_v32  ;;  %v8164_v16 = vrot.slane %v3813_v20, %v6660_v1 }
 0x31e   :  { %v8132_v57 = vpop.permute.xlu0 %4624  ;;  %v8166_v44 = vpop.permute.xlu1 %4638  ;;  %v3154_v20 = vrot.slane %v3140_v40, %v6660_v1  ;;  %v3828_v28 = vrot.slane %v3814_v7, %v6660_v1 }
 0x31f   :  { %v3737_v12 = vrot.slane %v3729_v35, %v6457_v3  ;;  %v3798_v35 = vcombine.high %v8028_v31, %v8038_v63 }
 0x320   :  { %v3158_v14 = vcombine.high %v3154_v20, %v8899_v19 }
 0x321   :  { %3268 = vrot.lane.b32.xlu0 %v3215_v53, %s6247_s10  ;;  %3232 = vrot.lane.b32.xlu1 %v3138_v56, %s6246_s9  ;;  %v3147_v53 = vrot.slane %v3139_v36, %v6660_v1  ;;  %v3713_v56 = vcombine.low %v8036_v33, %v8045_v62 }
 0x322   :  { %v8146_v15 = vpop.permute.xlu0 %4632  ;;  %v8186_v31 = vpop.permute.xlu1 %4628 }
 0x323   :  { %v3721_v36 = vrot.slane %v3713_v56, %v6457_v3  ;;  %v3782_v56 = vcombine.high %v8018_v51, %v8026_v38  ;;  %v3730_v38 = vcombine.high %v8047_v6, %v8059_v32 }
 0x325   :  { %3272 = vrot.lane.b32.xlu0 %v3225_v54, %s6251_s14  ;;  %3236 = vrot.lane.b32.xlu1 %v3156_v50, %s6250_s13  ;;  %v3226_v54 = vcombine.high %v3222_v46, %v8899_v19  ;;  %v3157_v50 = vcombine.high %v3147_v53, %v8899_v19  ;;  %v3796_v40 = vrot.slane %v3782_v56, %v6457_v3 }
 0x326   :  { %v8169_v11 = vpop.permute.xlu0 %5248  ;;  %v3746_v58 = vcombine.high %v3721_v36, %v3737_v12  ;;  %v8203_v7 = vpop.permute.xlu1 %4636  ;;  %v3744_v6 = vrot.slane %v3730_v38, %v6457_v3 }
 0x329   :  { %3276 = vrot.lane.b32.xlu0 %v3222_v46, %s6248_s11  ;;  %3240 = vrot.lane.b32.xlu1 %v3147_v53, %s6247_s10  ;;  %v3745_v46 = vcombine.low %v3721_v36, %v3737_v12  ;;  %v3845_v53 = vcombine.high %v8164_v16, %v8899_v19  ;;  %v3760_v12 = vrot.slane %v3746_v58, %v6660_v1 }
 0x32a   :  { %v8188_v63 = vpop.permute.xlu0 %5256 }
 0x32b   :  { %v8193_v39 = vrot.slane %v3745_v46, %v6660_v1  ;;  %v3714_v46 = vcombine.high %v8036_v33, %v8045_v62  ;;  %v3778_v38 = vcombine.high %v3760_v12, %v8899_v19 }
 0x32d   :  { %3280 = vrot.lane.b32.xlu0 %v3226_v54, %s6252_s15  ;;  %3244 = vrot.lane.b32.xlu1 %v3157_v50, %s6251_s14  ;;  %v3812_v54 = vrot.slane %v3798_v35, %v6457_v3  ;;  %v3846_v50 = vcombine.high %v3828_v28, %v8899_v19  ;;  %v3777_v35 = vcombine.high %v8193_v39, %v8899_v19 }
 0x32e   :  { %v3728_v36 = vrot.slane %v3714_v46, %v6457_v3 }
 0x32f   :  { %v3829_v51 = vcombine.low %v3796_v40, %v3812_v54  ;;  %v3830_v33 = vcombine.high %v3796_v40, %v3812_v54 }
 0x330   :  { %v3761_v62 = vcombine.low %v3728_v36, %v3744_v6 }
 0x331   :  { %3248 = vrot.lane.b32.xlu1 %v3154_v20, %s6248_s11  ;;  %3878 = vrot.lane.b32.xlu0 %v3845_v53, %s6249_s12  ;;  %v8207_v20 = vpop.permute.xlu0 %5246  ;;  %v3837_v32 = vrot.slane %v3829_v51, %v6660_v1  ;;  %v3844_v58 = vrot.slane %v3830_v33, %v6660_v1  ;;  %v8941_v33 = vmov 0.00390625  }
 0x335   :  { %3252 = vrot.lane.b32.xlu1 %v3158_v14, %s6252_s15  ;;  %3882 = vrot.lane.b32.xlu0 %v3828_v28, %s6246_s9  ;;  %v8217_v14 = vpop.permute.xlu1 %5252  ;;  %v8219_v28 = vpop.permute.xlu0 %5254 }
 0x339   :  { %3886 = vrot.lane.b32.xlu0 %v3846_v50, %s6250_s13  ;;  %3850 = vrot.lane.b32.xlu1 %v3777_v35, %s6249_s12  ;;  %v2991_v53 = vpop.f32.mrb[0].mxu0  ;;  %v3847_v50 = vcombine.high %v3837_v32, %v8899_v19  ;;  %v3769_v35 = vrot.slane %v3761_v62, %v6660_v1  ;;  %v8231_v46 = vpop.permute.xlu1 %5260 }
 0x33a   :  { %v2993_v56 = vpop.f32.mrb[1].mxu0 }
 0x33b   :  { %v3779_v52 = vcombine.high %v3769_v35, %v8899_v19 }
 0x33d   :  { %3890 = vrot.lane.b32.xlu0 %v3837_v32, %s6247_s10  ;;  %3854 = vrot.lane.b32.xlu1 %v3760_v12, %s6246_s9 }
 0x341   :  { %3894 = vrot.lane.b32.xlu0 %v3847_v50, %s6251_s14  ;;  %3858 = vrot.lane.b32.xlu1 %v3778_v38, %s6250_s13  ;;  %v3762_v50 = vcombine.high %v3728_v36, %v3744_v6  ;;  %v3848_v38 = vcombine.high %v3844_v58, %v8899_v19 }
 0x343   :  { %v8225_v51 = vpop.permute.xlu0 %3001  ;;  %v3776_v36 = vrot.slane %v3762_v50, %v6660_v1 }
 0x344   :  { %8939 = vst [vmem:[#allocation16_spill] sm:$0xff] %v8225_v51  ;;  %v3004_v54 = vadd.f32 %v8225_v51, %v2991_v53  ;;  %v3005_v40 = vadd.f32 %v8225_v51, %v2993_v56  ;;  %v8241_v53 = vrot.slane %v4130_v48, %v6660_v1  ;;  %v8245_v56 = vpop.permute.xlu1 %5250  ;;  %v8942_v48 = vcombine.high %v7831_v34, %v7817_v47 }
 0x345   :  { %3898 = vrot.lane.b32.xlu0 %v3844_v58, %s6248_s11  ;;  %3862 = vrot.lane.b32.xlu1 %v3769_v35, %s6247_s10  ;;  %v8943_v58 = vcombine.low %v7889_v43, %v7870_v26  ;;  %v4423_v34 = vcombine.low %v8069_v24, %v8090_v22 }
 0x346   :  { %v3006_v32 = vmax.f32 %v3004_v54, 0.0  ;;  %v3007_v12 = vmax.f32 %v3005_v40, 0.0  ;;  %8940 = vst [vmem:[#allocation11_spill] sm:$0xff] %v8241_v53  ;;  %v4162_v6 = vcombine.high %v8241_v53, %v8899_v19  ;;  %v4145_v62 = vrot.slane %v8942_v48, %v6660_v1 }
 0x347   :  { %v8262_v35 = vrot.slane %v8943_v58, %v6660_v1  ;;  %v4431_v48 = vrot.slane %v4423_v34, %v6457_v3  ;;  %v8948_v34 = vcombine.high %v7886_v4, %v7867_v21 }
 0x348   :  { %3008 = vmatprep.subr.mxu1 %v3007_v12  ;;  %v8265_v54 = vpop.permute.xlu1 %5258  ;;  %v4163_v40 = vcombine.high %v4145_v62, %v8899_v19  ;;  %v8945_v12 = vcombine.low %v7886_v4, %v7867_v21 }
 0x349   :  { %3902 = vrot.lane.b32.xlu0 %v3848_v38, %s6252_s15  ;;  %3866 = vrot.lane.b32.xlu1 %v3779_v52, %s6251_s14  ;;  %v3780_v52 = vcombine.high %v3776_v36, %v8899_v19  ;;  %8944 = vst [vmem:[#allocation14_spill] sm:$0xff] %v8262_v35  ;;  %v4094_v47 = vcombine.high %v8262_v35, %v8899_v19 }
 0x34a   :  { %3009 = vmatpush1.xpose.msra.mxu1 %v3006_v32  ;;  %v4154_v50 = vrot.slane %v8945_v12, %v6660_v1  ;;  %v8946_v38 = vcombine.high %v7889_v43, %v7870_v26  ;;  %v4355_v43 = vcombine.low %v8109_v60, %v8128_v59  ;;  %v4161_v12 = vrot.slane %v8948_v34, %v6660_v1 }
 0x34c   :  { %v8276_v32 = vpop.permute.xlu1 %5557  ;;  %v4165_v21 = vcombine.high %v4161_v12, %v8899_v19 }
 0x34d   :  { %4195 = vrot.lane.b32.xlu0 %v4162_v6, %s6249_s12  ;;  %3870 = vrot.lane.b32.xlu1 %v3776_v36, %s6248_s11  ;;  %v4077_v6 = vrot.slane %v8946_v38, %v6660_v1  ;;  %v4407_v36 = vcombine.low %v8055_v27, %v8063_v25 }
 0x34e   :  { %3073 = vmatmul.mubr.f32.vlgmr.msra.gmra.mrb[0].mxu1 %v8941_v33  ;;  %v4424_v33 = vcombine.high %v8069_v24, %v8090_v22 }
 0x34f   :  { %3605 = vmatprep.mubr.f32.mxu1 %v8899_v19  ;;  %v4095_v58 = vcombine.high %v4077_v6, %v8899_v19 }
 0x350   :  { %v4438_v24 = vrot.slane %v4424_v33, %v6457_v3 }
 0x351   :  { %4199 = vrot.lane.b32.xlu0 %v4145_v62, %s6246_s9  ;;  %3874 = vrot.lane.b32.xlu1 %v3780_v52, %s6252_s15  ;;  %v8291_v62 = vpop.permute.xlu0 %5565  ;;  %v4164_v52 = vcombine.high %v4154_v50, %v8899_v19 }
 0x355   :  { %4203 = vrot.lane.b32.xlu0 %v4163_v40, %s6250_s13  ;;  %4167 = vrot.lane.b32.xlu1 %v4094_v47, %s6249_s12  ;;  %v4415_v40 = vrot.slane %v4407_v36, %v6457_v3  ;;  %v8296_v47 = vpop.permute.xlu1 %5561  ;;  %v8312_v36 = vpop.permute.xlu0 %5555 }
 0x356   :  { %8947 = vst [vmem:[#allocation13_spill] sm:$0xff] %v8296_v47  ;;  %8950 = vst [vmem:[#allocation17_spill] sm:$0xff] %v8312_v36 }
 0x357   :  { %v4439_v26 = vcombine.low %v4415_v40, %v4431_v48  ;;  %v4440_v51 = vcombine.high %v4415_v40, %v4431_v48 }
 0x359   :  { %4207 = vrot.lane.b32.xlu0 %v4154_v50, %s6247_s10  ;;  %4171 = vrot.lane.b32.xlu1 %v4077_v6, %s6246_s9  ;;  %v8949_v50 = vcombine.low %v7892_v2, %v7875_v10  ;;  %v4339_v6 = vcombine.low %v8071_v8, %v8085_v61  ;;  %v8322_v34 = vrot.slane %v4439_v26, %v6660_v1  ;;  %v8329_v35 = vpop.permute.xlu0 %5563 }
 0x35a   :  { %8952 = vst [vmem:[#allocation9_spill] sm:$0xff] %v8329_v35 }
 0x35b   :  { %v4086_v38 = vrot.slane %v8949_v50, %v6660_v1  ;;  %8951 = vst [vmem:[#allocation12_spill] sm:$0xff] %v8322_v34  ;;  %v4347_v50 = vrot.slane %v4339_v6, %v6457_v3  ;;  %v4471_v26 = vcombine.high %v8322_v34, %v8899_v19  ;;  %v4408_v6 = vcombine.high %v8055_v27, %v8063_v25 }
 0x35c   :  { %v4356_v25 = vcombine.high %v8109_v60, %v8128_v59 }
 0x35d   :  { %4211 = vrot.lane.b32.xlu0 %v4164_v52, %s6251_s14  ;;  %4175 = vrot.lane.b32.xlu1 %v4095_v58, %s6250_s13  ;;  %v4363_v52 = vrot.slane %v4355_v43, %v6457_v3  ;;  %v8317_v58 = vpop.permute.xlu1 %5569  ;;  %v4096_v4 = vcombine.high %v4086_v38, %v8899_v19  ;;  %v4422_v40 = vrot.slane %v4408_v6, %v6457_v3 }
 0x35f   :  { %v4371_v43 = vcombine.low %v4347_v50, %v4363_v52  ;;  %v4455_v27 = vcombine.low %v4422_v40, %v4438_v24 }
 0x361   :  { %4215 = vrot.lane.b32.xlu0 %v4161_v12, %s6248_s11  ;;  %4179 = vrot.lane.b32.xlu1 %v4086_v38, %s6247_s10  ;;  %v8953_v12 = vcombine.high %v7892_v2, %v7875_v10  ;;  %v4454_v10 = vrot.slane %v4440_v51, %v6660_v1  ;;  %v8347_v2 = vrot.slane %v4371_v43, %v6660_v1 }
 0x362   :  { %v4340_v43 = vcombine.high %v8071_v8, %v8085_v61  ;;  %v4463_v59 = vrot.slane %v4455_v27, %v6660_v1  ;;  %v4456_v8 = vcombine.high %v4422_v40, %v4438_v24  ;;  %v4716_v61 = vcombine.low %v8094_v41, %v8111_v9 }
 0x363   :  { %v4093_v38 = vrot.slane %v8953_v12, %v6660_v1  ;;  %8955 = vst [vmem:[#allocation22_spill] sm:$0xff] %v8347_v2  ;;  %v4403_v51 = vcombine.high %v8347_v2, %v8899_v19  ;;  %v4664_v40 = vcombine.low %v8186_v31, %v8203_v7 }
 0x364   :  { %v4473_v27 = vcombine.high %v4463_v59, %v8899_v19  ;;  %v4470_v24 = vrot.slane %v4456_v8, %v6660_v1 }
 0x365   :  { %4219 = vrot.lane.b32.xlu0 %v4165_v21, %s6252_s15  ;;  %4183 = vrot.lane.b32.xlu1 %v4096_v4, %s6251_s14  ;;  %v8339_v21 = vpop.permute.xlu1 %5559  ;;  %v4097_v48 = vcombine.high %v4093_v38, %v8899_v19  ;;  %v4372_v4 = vcombine.high %v4347_v50, %v4363_v52  ;;  %v4732_v50 = vcombine.low %v8142_v37, %v8166_v44 }
 0x366   :  { %8954 = vst [vmem:[#allocation10_spill] sm:$0xff] %v8339_v21  ;;  %v4474_v8 = vcombine.high %v4470_v24, %v8899_v19 }
 0x367   :  { %v4386_v52 = vrot.slane %v4372_v4, %v6660_v1 }
 0x369   :  { %4187 = vrot.lane.b32.xlu1 %v4093_v38, %s6248_s11  ;;  %4504 = vrot.lane.b32.xlu0 %v4471_v26, %s6249_s12  ;;  %v8354_v33 = vpop.permute.xlu1 %5567  ;;  %v4472_v38 = vcombine.high %v4454_v10, %v8899_v19  ;;  %v4370_v26 = vrot.slane %v4356_v25, %v6457_v3  ;;  %v4404_v4 = vcombine.high %v4386_v52, %v8899_v19 }
 0x36a   :  { %8956 = vst [vmem:[#allocation21_spill] sm:$0xff] %v8354_v33 }
 0x36b   :  { %v3495_v22 = vpop.permute.xlu0 %3494 }
 0x36d   :  { %4191 = vrot.lane.b32.xlu1 %v4097_v48, %s6252_s15  ;;  %4508 = vrot.lane.b32.xlu0 %v4454_v10, %s6246_s9  ;;  %v4354_v48 = vrot.slane %v4340_v43, %v6457_v3  ;;  %v4724_v43 = vrot.slane %v4716_v61, %v6457_v3 }
 0x36f   :  { %v3499_v12 = vpop.permute.xlu0 %3498  ;;  %v4387_v10 = vcombine.low %v4354_v48, %v4370_v26  ;;  %v4388_v61 = vcombine.high %v4354_v48, %v4370_v26 }
 0x371   :  { %4512 = vrot.lane.b32.xlu0 %v4472_v38, %s6250_s13  ;;  %4476 = vrot.lane.b32.xlu1 %v4403_v51, %s6249_s12  ;;  %v4740_v51 = vrot.slane %v4732_v50, %v6457_v3  ;;  %v4395_v53 = vrot.slane %v4387_v10, %v6660_v1  ;;  %v3528_v50 = vsel %vm362_vm5, %v8016_v30, %v3495_v22 }
 0x373   :  { %v3503_v6 = vpop.permute.xlu0 %3502  ;;  %v3467_v60 = vpop.permute.xlu1 %3466  ;;  %v4405_v33 = vcombine.high %v4395_v53, %v8899_v19 }
 0x375   :  { %4516 = vrot.lane.b32.xlu0 %v4463_v59, %s6247_s10  ;;  %4480 = vrot.lane.b32.xlu1 %v4386_v52, %s6246_s9  ;;  %v4748_v59 = vcombine.low %v4724_v43, %v4740_v51  ;;  %v4648_v52 = vcombine.low %v8132_v57, %v8146_v15 }
 0x377   :  { %v3507_v25 = vpop.permute.xlu0 %3506  ;;  %v3471_v38 = vpop.permute.xlu1 %3470  ;;  %v8395_v35 = vrot.slane %v4748_v59, %v6660_v1  ;;  %v4656_v47 = vrot.slane %v4648_v52, %v6457_v3 }
 0x379   :  { %4520 = vrot.lane.b32.xlu0 %v4473_v27, %s6251_s14  ;;  %4484 = vrot.lane.b32.xlu1 %v4404_v4, %s6250_s13  ;;  %v4672_v27 = vrot.slane %v4664_v40, %v6457_v3  ;;  %v3529_v4 = vsel %vm364_vm6, %v3528_v50, %v3499_v12  ;;  %v4749_v40 = vcombine.high %v4724_v43, %v4740_v51 }
 0x37a   :  { %v3530_v36 = vsel %vm366_vm7, %v3529_v4, %v3503_v6  ;;  %v4402_v6 = vrot.slane %v4388_v61, %v6660_v1 }
 0x37b   :  { %v3511_v2 = vpop.permute.xlu0 %3510  ;;  %v3475_v34 = vpop.permute.xlu1 %3474  ;;  %v3531_v30 = vsel %vm368_vm8, %v3530_v36, %v3507_v25  ;;  %v4680_v12 = vcombine.low %v4656_v47, %v4672_v27  ;;  %v4780_v36 = vcombine.high %v8395_v35, %v8899_v19  ;;  %v4681_v50 = vcombine.high %v4656_v47, %v4672_v27 }
 0x37c   :  { %v3532_v22 = vsel %vm370_vm9, %v3531_v30, %v3511_v2  ;;  %v3521_v2 = vsel %vm362_vm5, %v8034_v13, %v3467_v60  ;;  %v4406_v25 = vcombine.high %v4402_v6, %v8899_v19 }
 0x37d   :  { %4524 = vrot.lane.b32.xlu0 %v4470_v24, %s6248_s11  ;;  %4488 = vrot.lane.b32.xlu1 %v4395_v53, %s6247_s10  ;;  %v4733_v24 = vcombine.high %v8142_v37, %v8166_v44  ;;  %v3522_v37 = vsel %vm364_vm6, %v3521_v2, %v3471_v38  ;;  %v8419_v51 = vrot.slane %v4680_v12, %v6660_v1 }
 0x37e   :  { %v3523_v52 = vsel %vm366_vm7, %v3522_v37, %v3475_v34  ;;  %v4665_v38 = vcombine.high %v8186_v31, %v8203_v7  ;;  %v4649_v12 = vcombine.high %v8132_v57, %v8146_v15  ;;  %v6180_v31 = vld [vmem:[%s8858_s1 + $0x8] sm:$0xff]  ;;  %v5045_v15 = vcombine.low %v7958_v5, %v7970_v55 }
 0x37f   :  { %v3515_v21 = vpop.permute.xlu0 %3514  ;;  %v3479_v10 = vpop.permute.xlu1 %3478  ;;  %v4747_v43 = vrot.slane %v4733_v24, %v6457_v3  ;;  %v4712_v4 = vcombine.high %v8419_v51, %v8899_v19 }
 0x380   :  { %v3533_v26 = vsel %vm372_vm10, %v3532_v22, %v3515_v21  ;;  %v4717_v21 = vcombine.high %v8094_v41, %v8111_v9  ;;  %v4763_v41 = vrot.slane %v4749_v40, %v6660_v1  ;;  %v3524_v9 = vsel %vm368_vm8, %v3523_v52, %v3479_v10 }
 0x381   :  { %4528 = vrot.lane.b32.xlu0 %v4474_v8, %s6252_s15  ;;  %4492 = vrot.lane.b32.xlu1 %v4405_v33, %s6251_s14  ;;  %v4679_v7 = vrot.slane %v4665_v38, %v6457_v3 }
 0x382   :  { %v4731_v13 = vrot.slane %v4717_v21, %v6457_v3  ;;  %v4781_v22 = vcombine.high %v4763_v41, %v8899_v19 }
 0x383   :  { %v3519_v48 = vpop.permute.xlu0 %3518  ;;  %v3483_v53 = vpop.permute.xlu1 %3482 }
 0x384   :  { %v3534_v59 = vsel %vm374_vm11, %v3533_v26, %v3519_v48  ;;  %v3525_v60 = vsel %vm370_vm9, %v3524_v9, %v3483_v53  ;;  %v4764_v10 = vcombine.low %v4731_v13, %v4747_v43  ;;  %v4695_v26 = vrot.slane %v4681_v50, %v6660_v1 }
 0x385   :  { %6077 = vmatprep.subr.msk.mxu1 %vm628_vm12, %v3534_v59  ;;  %4496 = vrot.lane.b32.xlu1 %v4402_v6, %s6248_s11  ;;  %v4663_v48 = vrot.slane %v4649_v12, %v6457_v3  ;;  %v5029_v53 = vcombine.low %v7943_v0, %v7955_v18  ;;  %v4765_v21 = vcombine.high %v4731_v13, %v4747_v43 }
 0x386   :  { %4813 = vrot.lane.b32.xlu0 %v4780_v36, %s6249_s12  ;;  %v4772_v57 = vrot.slane %v4764_v10, %v6660_v1  ;;  %v4713_v59 = vcombine.high %v4695_v26, %v8899_v19  ;;  %v5053_v36 = vrot.slane %v5045_v15, %v6457_v3  ;;  %v4961_v43 = vcombine.low %v7967_v17, %v7979_v45 }
 0x387   :  { %v3257_v44 = vpop.permute.xlu0 %3256  ;;  %v3487_v33 = vpop.permute.xlu1 %3486  ;;  %v4696_v6 = vcombine.low %v4663_v48, %v4679_v7  ;;  %v5037_v37 = vrot.slane %v5029_v53, %v6457_v3  ;;  %v4779_v9 = vrot.slane %v4765_v21, %v6660_v1  ;;  %v4697_v50 = vcombine.high %v4663_v48, %v4679_v7 }
 0x388   :  { %v3526_v8 = vsel %vm372_vm10, %v3525_v60, %v3487_v33  ;;  %v4782_v2 = vcombine.high %v4772_v57, %v8899_v19  ;;  %v4977_v33 = vcombine.low %v7982_v42, %v7993_v49  ;;  %v3290_v13 = vsel %vm362_vm5, %v8081_v29, %v3257_v44 }
 0x389   :  { %4500 = vrot.lane.b32.xlu1 %v4406_v25, %s6252_s15  ;;  %v5061_v60 = vcombine.low %v5037_v37, %v5053_v36  ;;  %v4969_v29 = vrot.slane %v4961_v43, %v6457_v3 }
 0x38a   :  { %4817 = vrot.lane.b32.xlu0 %v4763_v41, %s6246_s9  ;;  %v4704_v41 = vrot.slane %v4696_v6, %v6660_v1  ;;  %v4985_v38 = vrot.slane %v4977_v33, %v6457_v3  ;;  %v5062_v6 = vcombine.high %v5037_v37, %v5053_v36 }
 0x38b   :  { %v3261_v61 = vpop.permute.xlu0 %3260  ;;  %v3491_v34 = vpop.permute.xlu1 %3490  ;;  %v8478_v12 = vrot.slane %v5061_v60, %v6660_v1 }
 0x38c   :  { %v3527_v30 = vsel %vm374_vm11, %v3526_v8, %v3491_v34  ;;  %v3291_v8 = vsel %vm364_vm6, %v3290_v13, %v3261_v61  ;;  %v4714_v10 = vcombine.high %v4704_v41, %v8899_v19  ;;  %v4993_v15 = vcombine.low %v4969_v29, %v4985_v38 }
 0x38d   :  { %4785 = vrot.lane.b32.xlu1 %v4712_v4, %s6249_s12  ;;  %6078 = vmatpush1.msk.msra.mxu1 %vm628_vm12, %v3527_v30  ;;  %v5093_v53 = vcombine.high %v8478_v12, %v8899_v19  ;;  %v4994_v60 = vcombine.high %v4969_v29, %v4985_v38 }
 0x38e   :  { %4821 = vrot.lane.b32.xlu0 %v4781_v22, %s6250_s13  ;;  %6079 = vmatmul.mubr.msk.f32.vlgmr.msra.gmra.mrb[2].mxu1 %vm624_vm13, %v6180_v31  ;;  %v4783_v22 = vcombine.high %v4779_v9, %v8899_v19  ;;  %v8502_v36 = vrot.slane %v4993_v15, %v6660_v1  ;;  %v5286_v15 = vcombine.low %v8245_v56, %v8265_v54 }
 0x38f   :  { %v3265_v47 = vpop.permute.xlu0 %3264  ;;  %v3229_v27 = vpop.permute.xlu1 %3228  ;;  %3682 = vmatprep.mubr.f32.mxu1 %v8899_v19 }
 0x390   :  { %v3292_v30 = vsel %vm366_vm7, %v3291_v8, %v3265_v47  ;;  %v4711_v47 = vrot.slane %v4697_v50, %v6660_v1  ;;  %v4962_v8 = vcombine.high %v7967_v17, %v7979_v45  ;;  %v5354_v17 = vcombine.low %v8217_v14, %v8231_v46 }
 0x391   :  { %4789 = vrot.lane.b32.xlu1 %v4695_v26, %s6246_s9 }
 0x392   :  { %4825 = vrot.lane.b32.xlu0 %v4772_v57, %s6247_s10  ;;  %v5046_v57 = vcombine.high %v7958_v5, %v7970_v55 }
 0x393   :  { %v3269_v24 = vpop.permute.xlu0 %3268  ;;  %v3233_v40 = vpop.permute.xlu1 %3232 }
 0x394   :  { %v3293_v44 = vsel %vm368_vm8, %v3292_v30, %v3269_v24  ;;  %v5030_v24 = vcombine.high %v7943_v0, %v7955_v18  ;;  %v5060_v37 = vrot.slane %v5046_v57, %v6457_v3  ;;  %v5076_v0 = vrot.slane %v5062_v6, %v6660_v1 }
 0x395   :  { %4793 = vrot.lane.b32.xlu1 %v4713_v59, %s6250_s13  ;;  %v3283_v59 = vsel %vm362_vm5, %v8105_v23, %v3229_v27  ;;  %v5338_v30 = vcombine.low %v8169_v11, %v8188_v63 }
 0x396   :  { %4829 = vrot.lane.b32.xlu0 %v4782_v2, %s6251_s14  ;;  %v3284_v5 = vsel %vm364_vm6, %v3283_v59, %v3233_v40  ;;  %v4715_v2 = vcombine.high %v4711_v47, %v8899_v19  ;;  %v5044_v23 = vrot.slane %v5030_v24, %v6457_v3  ;;  %v4978_v40 = vcombine.high %v7982_v42, %v7993_v49  ;;  %v6181_v42 = vld [vmem:[%s8858_s1] sm:$0xff] }
 0x397   :  { %v3273_v25 = vpop.permute.xlu0 %3272  ;;  %v3237_v52 = vpop.permute.xlu1 %3236  ;;  %v5094_v13 = vcombine.high %v5076_v0, %v8899_v19  ;;  %v5270_v59 = vcombine.low %v8207_v20, %v8219_v28 }
 0x398   :  { %v3294_v31 = vsel %vm370_vm9, %v3293_v44, %v3273_v25  ;;  %v3285_v33 = vsel %vm366_vm7, %v3284_v5, %v3237_v52  ;;  %v5025_v52 = vcombine.high %v8502_v36, %v8899_v19  ;;  %v5077_v50 = vcombine.low %v5044_v23, %v5060_v37 }
 0x399   :  { %4797 = vrot.lane.b32.xlu1 %v4704_v41, %s6247_s10  ;;  %v4992_v49 = vrot.slane %v4978_v40, %v6457_v3 }
 0x39a   :  { %4833 = vrot.lane.b32.xlu0 %v4779_v9, %s6248_s11  ;;  %v5085_v45 = vrot.slane %v5077_v50, %v6660_v1 }
 0x39b   :  { %v3277_v34 = vpop.permute.xlu0 %3276  ;;  %v3241_v4 = vpop.permute.xlu1 %3240 }
 0x39c   :  { %v3295_v61 = vsel %vm372_vm10, %v3294_v31, %v3277_v34  ;;  %v3286_v18 = vsel %vm368_vm8, %v3285_v33, %v3241_v4  ;;  %v5008_v4 = vrot.slane %v4994_v60, %v6660_v1 }
 0x39d   :  { %4801 = vrot.lane.b32.xlu1 %v4714_v10, %s6251_s14  ;;  %v4976_v10 = vrot.slane %v4962_v8, %v6457_v3 }
 0x39e   :  { %4837 = vrot.lane.b32.xlu0 %v4783_v22, %s6252_s15  ;;  %v5026_v44 = vcombine.high %v5008_v4, %v8899_v19 }
 0x39f   :  { %v3281_v7 = vpop.permute.xlu0 %3280  ;;  %v3245_v26 = vpop.permute.xlu1 %3244  ;;  %v5009_v31 = vcombine.low %v4976_v10, %v4992_v49 }
 0x3a0   :  { %v3296_v48 = vsel %vm374_vm11, %v3295_v61, %v3281_v7  ;;  %v3287_v27 = vsel %vm370_vm9, %v3286_v18, %v3245_v26  ;;  %v5362_v61 = vrot.slane %v5354_v17, %v6457_v3  ;;  %v5095_v7 = vcombine.high %v5085_v45, %v8899_v19 }
 0x3a1   :  { %4805 = vrot.lane.b32.xlu1 %v4711_v47, %s6248_s11  ;;  %6080 = vmatprep.subr.msk.mxu1 %vm628_vm12, %v3296_v48  ;;  %v5078_v26 = vcombine.high %v5044_v23, %v5060_v37  ;;  %v5346_v47 = vrot.slane %v5338_v30, %v6457_v3  ;;  %v5010_v18 = vcombine.high %v4976_v10, %v4992_v49 }
 0x3a2   :  { %5126 = vrot.lane.b32.xlu0 %v5093_v53, %s6249_s12  ;;  %v5017_v53 = vrot.slane %v5009_v31, %v6660_v1  ;;  %v5339_v49 = vcombine.high %v8169_v11, %v8188_v63 }
 0x3a3   :  { %v3879_v55 = vpop.permute.xlu0 %3878  ;;  %v3249_v21 = vpop.permute.xlu1 %3248  ;;  %v5370_v6 = vcombine.low %v5346_v47, %v5362_v61  ;;  %v5092_v24 = vrot.slane %v5078_v26, %v6660_v1  ;;  %v5371_v50 = vcombine.high %v5346_v47, %v5362_v61 }
 0x3a4   :  { %v3288_v25 = vsel %vm372_vm10, %v3287_v27, %v3249_v21  ;;  %v3912_v5 = vsel %vm362_vm5, %v8164_v16, %v3879_v55  ;;  %v5294_v21 = vrot.slane %v5286_v15, %v6457_v3  ;;  %v5278_v16 = vrot.slane %v5270_v59, %v6457_v3  ;;  %v8957_v59 = vld [vmem:[#allocation13_spill] sm:$0xff] }
 0x3a5   :  { %4809 = vrot.lane.b32.xlu1 %v4715_v2, %s6252_s15  ;;  %v5096_v27 = vcombine.high %v5092_v24, %v8899_v19  ;;  %v8561_v40 = vrot.slane %v5370_v6, %v6660_v1  ;;  %v5385_v11 = vrot.slane %v5371_v50, %v6660_v1  ;;  %v8961_v50 = vld [vmem:[#allocation10_spill] sm:$0xff] }
 0x3a6   :  { %5130 = vrot.lane.b32.xlu0 %v5076_v0, %s6246_s9  ;;  %v5027_v0 = vcombine.high %v5017_v53, %v8899_v19 }
 0x3a7   :  { %v3883_v41 = vpop.permute.xlu0 %3882  ;;  %v3253_v9 = vpop.permute.xlu1 %3252  ;;  %v5403_v15 = vcombine.high %v5385_v11, %v8899_v19 }
 0x3a8   :  { %v3289_v43 = vsel %vm374_vm11, %v3288_v25, %v3253_v9  ;;  %v3913_v2 = vsel %vm364_vm6, %v3912_v5, %v3883_v41  ;;  %v5302_v41 = vcombine.low %v5278_v16, %v5294_v21  ;;  %v5663_v5 = vcombine.low %v8957_v59, %v8317_v58 }
 0x3a9   :  { %5098 = vrot.lane.b32.xlu1 %v5025_v52, %s6249_s12  ;;  %6081 = vmatpush1.msk.msra.mxu1 %vm628_vm12, %v3289_v43  ;;  %v5024_v43 = vrot.slane %v5010_v18, %v6660_v1 }
 0x3aa   :  { %5134 = vrot.lane.b32.xlu0 %v5094_v13, %s6250_s13  ;;  %6082 = vmatmul.mubr.msk.f32.vlgmr.msra.gmra.mrb[2].mxu1 %vm624_vm13, %v6181_v42  ;;  %v5355_v13 = vcombine.high %v8217_v14, %v8231_v46  ;;  %v5402_v42 = vcombine.high %v8561_v40, %v8899_v19 }
 0x3ab   :  { %v3887_v38 = vpop.permute.xlu0 %3886  ;;  %v3851_v34 = vpop.permute.xlu1 %3850  ;;  %3989 = vmatprep.mubr.f32.mxu1 %v8899_v19  ;;  %v5028_v17 = vcombine.high %v5024_v43, %v8899_v19 }
 0x3ac   :  { %v3914_v23 = vsel %vm366_vm7, %v3913_v2, %v3887_v38  ;;  %v3905_v38 = vsel %vm362_vm5, %v8193_v39, %v3851_v34  ;;  %v5369_v10 = vrot.slane %v5355_v13, %v6457_v3  ;;  %v5353_v39 = vrot.slane %v5339_v49, %v6457_v3  ;;  %v8960_v13 = vld [vmem:[#allocation21_spill] sm:$0xff] }
 0x3ad   :  { %5102 = vrot.lane.b32.xlu1 %v5008_v4, %s6246_s9 }
 0x3ae   :  { %5138 = vrot.lane.b32.xlu0 %v5085_v45, %s6247_s10  ;;  %v8585_v45 = vrot.slane %v5302_v41, %v6660_v1  ;;  %v5386_v26 = vcombine.low %v5353_v39, %v5369_v10 }
 0x3af   :  { %v3891_v22 = vpop.permute.xlu0 %3890  ;;  %v3855_v29 = vpop.permute.xlu1 %3854 }
 0x3b0   :  { %v3915_v55 = vsel %vm368_vm8, %v3914_v23, %v3891_v22  ;;  %v3906_v14 = vsel %vm364_vm6, %v3905_v38, %v3855_v29  ;;  %v5287_v22 = vcombine.high %v8245_v56, %v8265_v54  ;;  %v5303_v29 = vcombine.high %v5278_v16, %v5294_v21  ;;  %v6182_v56 = vld [vmem:[%s8858_s1 + $0x10] sm:$0xff]  ;;  %v8958_v16 = vld [vmem:[#allocation9_spill] sm:$0xff] }
 0x3b1   :  { %5106 = vrot.lane.b32.xlu1 %v5026_v44, %s6250_s13 }
 0x3b2   :  { %5142 = vrot.lane.b32.xlu0 %v5095_v7, %s6251_s14  ;;  %v5334_v7 = vcombine.high %v8585_v45, %v8899_v19  ;;  %v5301_v54 = vrot.slane %v5287_v22, %v6457_v3  ;;  %v5317_v6 = vrot.slane %v5303_v29, %v6660_v1 }
 0x3b3   :  { %v3895_v57 = vpop.permute.xlu0 %3894  ;;  %v3859_v48 = vpop.permute.xlu1 %3858 }
 0x3b4   :  { %v3916_v25 = vsel %vm370_vm9, %v3915_v55, %v3895_v57  ;;  %v3907_v30 = vsel %vm366_vm7, %v3906_v14, %v3859_v48  ;;  %v5271_v57 = vcombine.high %v8207_v20, %v8219_v28  ;;  %v5647_v20 = vcombine.low %v8276_v32, %v8291_v62  ;;  %v8959_v55 = vld [vmem:[#allocation17_spill] sm:$0xff] }
 0x3b5   :  { %5110 = vrot.lane.b32.xlu1 %v5017_v53, %s6247_s10  ;;  %v5394_v28 = vrot.slane %v5386_v26, %v6660_v1  ;;  %v5648_v26 = vcombine.high %v8276_v32, %v8291_v62 }
 0x3b6   :  { %5146 = vrot.lane.b32.xlu0 %v5092_v24, %s6248_s11  ;;  %v5285_v24 = vrot.slane %v5271_v57, %v6457_v3  ;;  %v5655_v18 = vrot.slane %v5647_v20, %v6457_v3 }
 0x3b7   :  { %v3899_v37 = vpop.permute.xlu0 %3898  ;;  %v3863_v33 = vpop.permute.xlu1 %3862  ;;  %v5404_v23 = vcombine.high %v5394_v28, %v8899_v19 }
 0x3b8   :  { %v3917_v9 = vsel %vm372_vm10, %v3916_v25, %v3899_v37  ;;  %v3908_v63 = vsel %vm368_vm8, %v3907_v30, %v3863_v33  ;;  %v5318_v21 = vcombine.low %v5285_v24, %v5301_v54  ;;  %v5335_v33 = vcombine.high %v5317_v6, %v8899_v19 }
 0x3b9   :  { %5114 = vrot.lane.b32.xlu1 %v5027_v0, %s6251_s14  ;;  %v5387_v0 = vcombine.high %v5353_v39, %v5369_v10  ;;  %v5579_v25 = vcombine.low %v8959_v55, %v8958_v16  ;;  %v5319_v38 = vcombine.high %v5285_v24, %v5301_v54  ;;  %v8963_v54 = vld [vmem:[#allocation14_spill] sm:$0xff]  ;;  %v5662_v24 = vrot.slane %v5648_v26, %v6457_v3 }
 0x3ba   :  { %5150 = vrot.lane.b32.xlu0 %v5096_v27, %s6252_s15  ;;  %v5671_v27 = vrot.slane %v5663_v5, %v6457_v3 }
 0x3bb   :  { %v3903_v52 = vpop.permute.xlu0 %3902  ;;  %v3867_v60 = vpop.permute.xlu1 %3866  ;;  %v5587_v14 = vrot.slane %v5579_v25, %v6457_v3 }
 0x3bc   :  { %v3918_v8 = vsel %vm374_vm11, %v3917_v9, %v3903_v52  ;;  %v3909_v34 = vsel %vm370_vm9, %v3908_v63, %v3867_v60  ;;  %v5326_v52 = vrot.slane %v5318_v21, %v6660_v1  ;;  %v5679_v60 = vcombine.low %v5655_v18, %v5671_v27 }
 0x3bd   :  { %5118 = vrot.lane.b32.xlu1 %v5024_v43, %s6248_s11  ;;  %6083 = vmatprep.subr.msk.mxu1 %vm628_vm12, %v3918_v8  ;;  %v5401_v43 = vrot.slane %v5387_v0, %v6660_v1  ;;  %v5595_v8 = vcombine.low %v8961_v50, %v8960_v13 }
 0x3be   :  { %5435 = vrot.lane.b32.xlu0 %v5402_v42, %s6249_s12  ;;  %v8962_v42 = vld [vmem:[#allocation11_spill] sm:$0xff]  ;;  %v5336_v30 = vcombine.high %v5326_v52, %v8899_v19  ;;  %v8644_v39 = vrot.slane %v5679_v60, %v6660_v1 }
 0x3bf   :  { %v4196_v46 = vpop.permute.xlu0 %4195  ;;  %v3871_v4 = vpop.permute.xlu1 %3870  ;;  %v5405_v63 = vcombine.high %v5401_v43, %v8899_v19 }
 0x3c0   :  { %v3910_v44 = vsel %vm372_vm10, %v3909_v34, %v3871_v4  ;;  %v4229_v49 = vsel %vm362_vm5, %v8962_v42, %v4196_v46  ;;  %v5603_v46 = vrot.slane %v5595_v8, %v6457_v3  ;;  %v5711_v57 = vcombine.high %v8644_v39, %v8899_v19 }
 0x3c1   :  { %5122 = vrot.lane.b32.xlu1 %v5028_v17, %s6252_s15 }
 0x3c2   :  { %5439 = vrot.lane.b32.xlu0 %v5385_v11, %s6246_s9  ;;  %v5611_v29 = vcombine.low %v5587_v14, %v5603_v46 }
 0x3c3   :  { %v4200_v31 = vpop.permute.xlu0 %4199  ;;  %v3875_v61 = vpop.permute.xlu1 %3874 }
 0x3c4   :  { %v3911_v47 = vsel %vm374_vm11, %v3910_v44, %v3875_v61  ;;  %v4230_v4 = vsel %vm364_vm6, %v4229_v49, %v4200_v31 }
 0x3c5   :  { %5407 = vrot.lane.b32.xlu1 %v5334_v7, %s6249_s12  ;;  %6084 = vmatpush1.msk.msra.mxu1 %vm628_vm12, %v3911_v47  ;;  %v5333_v7 = vrot.slane %v5319_v38, %v6660_v1  ;;  %v5680_v47 = vcombine.high %v5655_v18, %v5671_v27 }
 0x3c6   :  { %5443 = vrot.lane.b32.xlu0 %v5403_v15, %s6250_s13  ;;  %6085 = vmatmul.mubr.msk.f32.vlgmr.msra.gmra.mrb[2].mxu1 %vm624_vm13, %v6182_v56  ;;  %v5664_v56 = vcombine.high %v8957_v59, %v8317_v58 }
 0x3c7   :  { %v4204_v48 = vpop.permute.xlu0 %4203  ;;  %v4168_v53 = vpop.permute.xlu1 %4167  ;;  %4306 = vmatprep.mubr.f32.mxu1 %v8899_v19  ;;  %v5337_v20 = vcombine.high %v5333_v7, %v8899_v19  ;;  %v5694_v58 = vrot.slane %v5680_v47, %v6660_v1 }
 0x3c8   :  { %v4231_v11 = vsel %vm366_vm7, %v4230_v4, %v4204_v48  ;;  %v4222_v48 = vsel %vm362_vm5, %v8963_v54, %v4168_v53  ;;  %v5678_v53 = vrot.slane %v5664_v56, %v6457_v3 }
 0x3c9   :  { %5411 = vrot.lane.b32.xlu1 %v5317_v6, %s6246_s9 }
 0x3ca   :  { %5447 = vrot.lane.b32.xlu0 %v5394_v28, %s6247_s10  ;;  %v8668_v28 = vrot.slane %v5611_v29, %v6660_v1  ;;  %v5695_v27 = vcombine.low %v5662_v24, %v5678_v53 }
 0x3cb   :  { %v4208_v2 = vpop.permute.xlu0 %4207  ;;  %v4172_v37 = vpop.permute.xlu1 %4171 }
 0x3cc   :  { %v4232_v34 = vsel %vm368_vm8, %v4231_v11, %v4208_v2  ;;  %v4223_v32 = vsel %vm364_vm6, %v4222_v48, %v4172_v37  ;;  %v5580_v2 = vcombine.high %v8959_v55, %v8958_v16  ;;  %v5612_v37 = vcombine.high %v5587_v14, %v5603_v46  ;;  %v6183_v16 = vld [vmem:[%s8858_s1 + $0x18] sm:$0xff]  ;;  %v8965_v48 = vld [vmem:[#allocation22_spill] sm:$0xff] }
 0x3cd   :  { %5415 = vrot.lane.b32.xlu1 %v5335_v33, %s6250_s13  ;;  %v5696_v14 = vcombine.high %v5662_v24, %v5678_v53  ;;  %v8964_v11 = vld [vmem:[#allocation12_spill] sm:$0xff] }
 0x3ce   :  { %5451 = vrot.lane.b32.xlu0 %v5404_v23, %s6251_s14  ;;  %v5643_v23 = vcombine.high %v8668_v28, %v8899_v19  ;;  %v5594_v55 = vrot.slane %v5580_v2, %v6457_v3 }
 0x3cf   :  { %v4212_v41 = vpop.permute.xlu0 %4211  ;;  %v4176_v9 = vpop.permute.xlu1 %4175 }
 0x3d0   :  { %v4233_v22 = vsel %vm370_vm9, %v4232_v34, %v4212_v41  ;;  %v4224_v5 = vsel %vm366_vm7, %v4223_v32, %v4176_v9  ;;  %v5712_v41 = vcombine.high %v5694_v58, %v8899_v19  ;;  %v5596_v9 = vcombine.high %v8961_v50, %v8960_v13 }
 0x3d1   :  { %5419 = vrot.lane.b32.xlu1 %v5326_v52, %s6247_s10  ;;  %v5703_v13 = vrot.slane %v5695_v27, %v6660_v1 }
 0x3d2   :  { %5455 = vrot.lane.b32.xlu0 %v5401_v43, %s6248_s11  ;;  %v5626_v43 = vrot.slane %v5612_v37, %v6660_v1  ;;  %v5610_v50 = vrot.slane %v5596_v9, %v6457_v3  ;;  %v6184_v37 = vld [vmem:[%s8858_s1 + $0x20] sm:$0xff] }
 0x3d3   :  { %v4216_v17 = vpop.permute.xlu0 %4215  ;;  %v4180_v10 = vpop.permute.xlu1 %4179  ;;  %v5713_v4 = vcombine.high %v5703_v13, %v8899_v19 }
 0x3d4   :  { %v4234_v44 = vsel %vm372_vm10, %v4233_v22, %v4216_v17  ;;  %v4225_v59 = vsel %vm368_vm8, %v4224_v5, %v4180_v10  ;;  %v5627_v8 = vcombine.low %v5594_v55, %v5610_v50  ;;  %v5644_v38 = vcombine.high %v5626_v43, %v8899_v19 }
 0x3d5   :  { %5423 = vrot.lane.b32.xlu1 %v5336_v30, %s6251_s14  ;;  %v5710_v30 = vrot.slane %v5696_v14, %v6660_v1  ;;  %v5628_v46 = vcombine.high %v5594_v55, %v5610_v50 }
 0x3d6   :  { %5459 = vrot.lane.b32.xlu0 %v5405_v63, %s6252_s15  ;;  %v5635_v3 = vrot.slane %v5627_v8, %v6660_v1 }
 0x3d7   :  { %v4220_v31 = vpop.permute.xlu0 %4219  ;;  %v4184_v61 = vpop.permute.xlu1 %4183  ;;  %v5642_v56 = vrot.slane %v5628_v46, %v6660_v1 }
 0x3d8   :  { %v4235_v15 = vsel %vm374_vm11, %v4234_v44, %v4220_v31  ;;  %v4226_v21 = vsel %vm370_vm9, %v4225_v59, %v4184_v61  ;;  %v5645_v44 = vcombine.high %v5635_v3, %v8899_v19  ;;  %v5714_v61 = vcombine.high %v5710_v30, %v8899_v19 }
 0x3d9   :  { %5427 = vrot.lane.b32.xlu1 %v5333_v7, %s6248_s11  ;;  %6086 = vmatprep.subr.msk.mxu1 %vm628_vm12, %v4235_v15 }
 0x3da   :  { %5744 = vrot.lane.b32.xlu0 %v5711_v57, %s6249_s12 }
 0x3db   :  { %v4505_v62 = vpop.permute.xlu0 %4504  ;;  %v4188_v6 = vpop.permute.xlu1 %4187 }
 0x3dc   :  { %v4227_v33 = vsel %vm372_vm10, %v4226_v21, %v4188_v6  ;;  %v4538_v63 = vsel %vm362_vm5, %v8964_v11, %v4505_v62 }
 0x3dd   :  { %5431 = vrot.lane.b32.xlu1 %v5337_v20, %s6252_s15  ;;  %v5646_v20 = vcombine.high %v5642_v56, %v8899_v19 }
 0x3de   :  { %5748 = vrot.lane.b32.xlu0 %v5694_v58, %s6246_s9 }
 0x3df   :  { %v4509_v0 = vpop.permute.xlu0 %4508  ;;  %v4192_v18 = vpop.permute.xlu1 %4191 }
 0x3e0   :  { %v4228_v25 = vsel %vm374_vm11, %v4227_v33, %v4192_v18  ;;  %v4539_v34 = vsel %vm364_vm6, %v4538_v63, %v4509_v0 }
 0x3e1   :  { %5716 = vrot.lane.b32.xlu1 %v5643_v23, %s6249_s12  ;;  %6087 = vmatpush1.msk.msra.mxu1 %vm628_vm12, %v4228_v25 }
 0x3e2   :  { %5752 = vrot.lane.b32.xlu0 %v5712_v41, %s6250_s13  ;;  %6088 = vmatmul.mubr.msk.f32.vlgmr.msra.gmra.mrb[2].mxu1 %vm624_vm13, %v6183_v16 }
 0x3e3   :  { %v4513_v52 = vpop.permute.xlu0 %4512  ;;  %v4477_v60 = vpop.permute.xlu1 %4476  ;;  %4615 = vmatprep.mubr.f32.mxu1 %v8899_v19 }
 0x3e4   :  { %v4540_v31 = vsel %vm366_vm7, %v4539_v34, %v4513_v52  ;;  %v4531_v32 = vsel %vm362_vm5, %v8965_v48, %v4477_v60 }
 0x3e5   :  { %5720 = vrot.lane.b32.xlu1 %v5626_v43, %s6246_s9 }
 0x3e6   :  { %5756 = vrot.lane.b32.xlu0 %v5703_v13, %s6247_s10 }
 0x3e7   :  { %v4517_v42 = vpop.permute.xlu0 %4516  ;;  %v4481_v49 = vpop.permute.xlu1 %4480 }
 0x3e8   :  { %v4541_v7 = vsel %vm368_vm8, %v4540_v31, %v4517_v42  ;;  %v4532_v62 = vsel %vm364_vm6, %v4531_v32, %v4481_v49 }
 0x3e9   :  { %5724 = vrot.lane.b32.xlu1 %v5644_v38, %s6250_s13 }
 0x3ea   :  { %5760 = vrot.lane.b32.xlu0 %v5713_v4, %s6251_s14 }
 0x3eb   :  { %v4521_v17 = vpop.permute.xlu0 %4520  ;;  %v4485_v10 = vpop.permute.xlu1 %4484 }
 0x3ec   :  { %v4542_v26 = vsel %vm370_vm9, %v4541_v7, %v4521_v17  ;;  %v4533_v24 = vsel %vm366_vm7, %v4532_v62, %v4485_v10 }
 0x3ed   :  { %5728 = vrot.lane.b32.xlu1 %v5635_v3, %s6247_s10 }
 0x3ee   :  { %5764 = vrot.lane.b32.xlu0 %v5710_v30, %s6248_s11 }
 0x3ef   :  { %v4525_v22 = vpop.permute.xlu0 %4524  ;;  %v4489_v29 = vpop.permute.xlu1 %4488 }
 0x3f0   :  { %v4543_v47 = vsel %vm372_vm10, %v4542_v26, %v4525_v22  ;;  %v4534_v58 = vsel %vm368_vm8, %v4533_v24, %v4489_v29 }
 0x3f1   :  { %5732 = vrot.lane.b32.xlu1 %v5645_v44, %s6251_s14 }
 0x3f2   :  { %5768 = vrot.lane.b32.xlu0 %v5714_v61, %s6252_s15 }
 0x3f3   :  { %v4529_v15 = vpop.permute.xlu0 %4528  ;;  %v4493_v57 = vpop.permute.xlu1 %4492 }
 0x3f4   :  { %v4544_v54 = vsel %vm374_vm11, %v4543_v47, %v4529_v15  ;;  %v4535_v1 = vsel %vm370_vm9, %v4534_v58, %v4493_v57 }
 0x3f5   :  { %5736 = vrot.lane.b32.xlu1 %v5642_v56, %s6248_s11  ;;  %6089 = vmatprep.subr.msk.mxu1 %vm628_vm12, %v4544_v54 }
 0x3f7   :  { %v4497_v6 = vpop.permute.xlu1 %4496 }
 0x3f8   :  { %v4814_v5 = vpop.permute.xlu0 %4813  ;;  %v4536_v59 = vsel %vm372_vm10, %v4535_v1, %v4497_v6 }
 0x3f9   :  { %5740 = vrot.lane.b32.xlu1 %v5646_v20, %s6252_s15  ;;  %v4847_v41 = vsel %vm362_vm5, %v8395_v35, %v4814_v5 }
 0x3fb   :  { %v4501_v53 = vpop.permute.xlu1 %4500 }
 0x3fc   :  { %v4818_v21 = vpop.permute.xlu0 %4817  ;;  %v4537_v2 = vsel %vm374_vm11, %v4536_v59, %v4501_v53 }
 0x3fd   :  { %6090 = vmatpush1.msk.msra.mxu1 %vm628_vm12, %v4537_v2  ;;  %v4848_v16 = vsel %vm364_vm6, %v4847_v41, %v4818_v21 }
 0x3fe   :  { %6091 = vmatmul.mubr.msk.f32.vlgmr.msra.gmra.mrb[2].mxu1 %vm624_vm13, %v6184_v37 }
 0x3ff   :  { %v4786_v33 = vpop.permute.xlu1 %4785  ;;  %4924 = vmatprep.mubr.f32.mxu1 %v8899_v19 }
 0x400   :  { %v4822_v0 = vpop.permute.xlu0 %4821  ;;  %v4840_v49 = vsel %vm362_vm5, %v8419_v51, %v4786_v33  ;;  %v6185_v51 = vld [vmem:[%s8858_s1 + $0x28] sm:$0xff] }
 0x401   :  { %v4849_v52 = vsel %vm366_vm7, %v4848_v16, %v4822_v0 }
 0x403   :  { %v4790_v18 = vpop.permute.xlu1 %4789 }
 0x404   :  { %v4826_v23 = vpop.permute.xlu0 %4825  ;;  %v4841_v35 = vsel %vm364_vm6, %v4840_v49, %v4790_v18 }
 0x405   :  { %v4850_v60 = vsel %vm368_vm8, %v4849_v52, %v4826_v23 }
 0x407   :  { %v4794_v27 = vpop.permute.xlu1 %4793 }
 0x408   :  { %v4830_v25 = vpop.permute.xlu0 %4829  ;;  %v4842_v14 = vsel %vm366_vm7, %v4841_v35, %v4794_v27 }
 0x409   :  { %v4851_v43 = vsel %vm370_vm9, %v4850_v60, %v4830_v25 }
 0x40b   :  { %v4798_v9 = vpop.permute.xlu1 %4797 }
 0x40c   :  { %v4834_v55 = vpop.permute.xlu0 %4833  ;;  %v4843_v17 = vsel %vm368_vm8, %v4842_v14, %v4798_v9 }
 0x40d   :  { %v4852_v50 = vsel %vm372_vm10, %v4851_v43, %v4834_v55 }
 0x40f   :  { %v4802_v13 = vpop.permute.xlu1 %4801 }
 0x410   :  { %v4838_v8 = vpop.permute.xlu0 %4837  ;;  %v4844_v10 = vsel %vm370_vm9, %v4843_v17, %v4802_v13 }
 0x411   :  { %v4853_v42 = vsel %vm374_vm11, %v4852_v50, %v4838_v8 }
 0x412   :  { %6092 = vmatprep.subr.msk.mxu1 %vm628_vm12, %v4853_v42 }
 0x413   :  { %v4806_v38 = vpop.permute.xlu1 %4805 }
 0x414   :  { %v5127_v4 = vpop.permute.xlu0 %5126  ;;  %v4845_v3 = vsel %vm372_vm10, %v4844_v10, %v4806_v38 }
 0x415   :  { %v5160_v26 = vsel %vm362_vm5, %v8478_v12, %v5127_v4 }
 0x417   :  { %v4810_v30 = vpop.permute.xlu1 %4809 }
 0x418   :  { %v5131_v11 = vpop.permute.xlu0 %5130  ;;  %v4846_v63 = vsel %vm374_vm11, %v4845_v3, %v4810_v30 }
 0x419   :  { %6093 = vmatpush1.msk.msra.mxu1 %vm628_vm12, %v4846_v63  ;;  %v5161_v15 = vsel %vm364_vm6, %v5160_v26, %v5131_v11 }
 0x41a   :  { %6094 = vmatmul.mubr.msk.f32.vlgmr.msra.gmra.mrb[2].mxu1 %vm624_vm13, %v6185_v51 }
 0x41b   :  { %v5099_v46 = vpop.permute.xlu1 %5098  ;;  %5237 = vmatprep.mubr.f32.mxu1 %v8899_v19 }
 0x41c   :  { %v5135_v34 = vpop.permute.xlu0 %5134  ;;  %v5153_v24 = vsel %vm362_vm5, %v8502_v36, %v5099_v46  ;;  %v6186_v36 = vld [vmem:[%s8858_s1 + $0x30] sm:$0xff] }
 0x41d   :  { %v5162_v56 = vsel %vm366_vm7, %v5161_v15, %v5135_v34 }
 0x41f   :  { %v5103_v22 = vpop.permute.xlu1 %5102 }
 0x420   :  { %v5139_v29 = vpop.permute.xlu0 %5138  ;;  %v5154_v12 = vsel %vm364_vm6, %v5153_v24, %v5103_v22 }
 0x421   :  { %v8763_v44 = vpop.f32.mrb[0].mxu1  ;;  %v5163_v54 = vsel %vm368_vm8, %v5162_v56, %v5139_v29 }
 0x422   :  { %v3076_v31 = vpop.f32.mrb[1].mxu1 }
 0x423   :  { %v5107_v61 = vpop.permute.xlu1 %5106 }
 0x424   :  { %v5143_v7 = vpop.permute.xlu0 %5142  ;;  %v5155_v58 = vsel %vm366_vm7, %v5154_v12, %v5107_v61 }
 0x425   :  { %v5164_v48 = vsel %vm370_vm9, %v5163_v54, %v5143_v7 }
 0x427   :  { %v5111_v47 = vpop.permute.xlu1 %5110 }
 0x428   :  { %v5147_v57 = vpop.permute.xlu0 %5146  ;;  %v5156_v59 = vsel %vm368_vm8, %v5155_v58, %v5111_v47 }
 0x429   :  { %v5165_v62 = vsel %vm372_vm10, %v5164_v48, %v5147_v57 }
 0x42b   :  { %v5115_v32 = vpop.permute.xlu1 %5114 }
 0x42c   :  { %v5151_v6 = vpop.permute.xlu0 %5150  ;;  %v5157_v53 = vsel %vm370_vm9, %v5156_v59, %v5115_v32 }
 0x42d   :  { %v5166_v20 = vsel %vm374_vm11, %v5165_v62, %v5151_v6 }
 0x42e   :  { %6095 = vmatprep.subr.msk.mxu1 %vm628_vm12, %v5166_v20 }
 0x42f   :  { %v5119_v5 = vpop.permute.xlu1 %5118 }
 0x430   :  { %v5436_v1 = vpop.permute.xlu0 %5435  ;;  %v5158_v21 = vsel %vm372_vm10, %v5157_v53, %v5119_v5 }
 0x431   :  { %v5469_v9 = vsel %vm362_vm5, %v8561_v40, %v5436_v1 }
 0x433   :  { %v5123_v2 = vpop.permute.xlu1 %5122 }
 0x434   :  { %v5440_v37 = vpop.permute.xlu0 %5439  ;;  %v5159_v33 = vsel %vm374_vm11, %v5158_v21, %v5123_v2  ;;  %v8966_v21 = vld [vmem:[#allocation16_spill] sm:$0xff] }
 0x435   :  { %6096 = vmatpush1.msk.msra.mxu1 %vm628_vm12, %v5159_v33  ;;  %v5470_v55 = vsel %vm364_vm6, %v5469_v9, %v5440_v37 }
 0x436   :  { %6097 = vmatmul.mubr.msk.f32.vlgmr.msra.gmra.mrb[2].mxu1 %vm624_vm13, %v6186_v36 }
 0x437   :  { %v5408_v0 = vpop.permute.xlu1 %5407  ;;  %5546 = vmatprep.mubr.f32.mxu1 %v8899_v19 }
 0x438   :  { %v5444_v18 = vpop.permute.xlu0 %5443  ;;  %v5462_v35 = vsel %vm362_vm5, %v8585_v45, %v5408_v0  ;;  %v6187_v45 = vld [vmem:[%s8858_s1 + $0x38] sm:$0xff] }
 0x439   :  { %v5471_v60 = vsel %vm366_vm7, %v5470_v55, %v5444_v18  ;;  %v8967_v18 = vmov 0.00390625  }
 0x43b   :  { %v5412_v23 = vpop.permute.xlu1 %5411 }
 0x43c   :  { %v5448_v27 = vpop.permute.xlu0 %5447  ;;  %v5463_v40 = vsel %vm364_vm6, %v5462_v35, %v5412_v23  ;;  %v5943_v23 = vld [vmem:[%s8860_s3] sm:$0xff]  ;;  %s6211_s3 = scalar_lea.vmem %s6034_s6, 32 }
 0x43d   :  { %v5472_v43 = vsel %vm368_vm8, %v5471_v60, %v5448_v27  ;;  %p6212_p8 = scmp.ne.s32.totalorder %s6034_s6, %s6211_s3  ;;  %p6217_p10 = scmp.lt.s32.totalorder %s6211_s3, %s6211_s3 }
 0x43f   :  { %v5416_v25 = vpop.permute.xlu1 %5415  ;;  %p6218_p11 = por %p6217_p10, %p6216_p9 }
 0x440   :  { %v5452_v41 = vpop.permute.xlu0 %5451  ;;  %v5464_v14 = vsel %vm366_vm7, %v5463_v40, %v5416_v25 }
 0x441   :  { %v5473_v13 = vsel %vm370_vm9, %v5472_v43, %v5452_v41  ;;  %p6219_p12 = pnand %p6218_p11, %p6212_p8 }
 0x443   :  { %v5420_v16 = vpop.permute.xlu1 %5419 }
 0x444   :  { %v5456_v52 = vpop.permute.xlu0 %5455  ;;  %v5465_v17 = vsel %vm368_vm8, %v5464_v14, %v5420_v16  ;;  %v6104_v16 = vld [vmem:[%s8861_s4] ss:$0 sm:$0xff] }
 0x445   :  { %v5474_v8 = vsel %vm372_vm10, %v5473_v13, %v5456_v52 }
 0x447   :  { %v5424_v50 = vpop.permute.xlu1 %5423 }
 0x448   :  { %v5460_v42 = vpop.permute.xlu0 %5459  ;;  %v5466_v10 = vsel %vm370_vm9, %v5465_v17, %v5424_v50 }
 0x449   :  { %v5475_v49 = vsel %vm374_vm11, %v5474_v8, %v5460_v42 }
 0x44a   :  { %6098 = vmatprep.subr.msk.mxu1 %vm628_vm12, %v5475_v49 }
 0x44b   :  { %v5428_v38 = vpop.permute.xlu1 %5427 }
 0x44c   :  { %v5745_v4 = vpop.permute.xlu0 %5744  ;;  %v5467_v3 = vsel %vm372_vm10, %v5466_v10, %v5428_v38 }
 0x44d   :  { %v5778_v61 = vsel %vm362_vm5, %v8644_v39, %v5745_v4 }
 0x44f   :  { %v5432_v30 = vpop.permute.xlu1 %5431 }
 0x450   :  { %v5749_v11 = vpop.permute.xlu0 %5748  ;;  %v5468_v63 = vsel %vm374_vm11, %v5467_v3, %v5432_v30 }
 0x451   :  { %6099 = vmatpush1.msk.msra.mxu1 %vm628_vm12, %v5468_v63  ;;  %v5779_v26 = vsel %vm364_vm6, %v5778_v61, %v5749_v11 }
 0x452   :  { %6100 = vmatmul.mubr.msk.f32.vlgmr.msra.gmra.mrb[2].mxu1 %vm624_vm13, %v6187_v45 }
 0x453   :  { %v5717_v51 = vpop.permute.xlu1 %5716  ;;  %5855 = vmatprep.mubr.f32.mxu1 %v8899_v19 }
 0x454   :  { %v5753_v46 = vpop.permute.xlu0 %5752  ;;  %v5771_v6 = vsel %vm362_vm5, %v8668_v28, %v5717_v51  ;;  %v6188_v28 = vld [vmem:[%s8858_s1 + $0x40] sm:$0xff] }
 0x455   :  { %v5780_v15 = vsel %vm366_vm7, %v5779_v26, %v5753_v46 }
 0x457   :  { %v5721_v34 = vpop.permute.xlu1 %5720 }
 0x458   :  { %v5757_v22 = vpop.permute.xlu0 %5756  ;;  %v5772_v39 = vsel %vm364_vm6, %v5771_v6, %v5721_v34 }
 0x459   :  { %v5781_v57 = vsel %vm368_vm8, %v5780_v15, %v5757_v22 }
 0x45b   :  { %v5725_v29 = vpop.permute.xlu1 %5724 }
 0x45c   :  { %v5761_v31 = vpop.permute.xlu0 %5760  ;;  %v5773_v24 = vsel %vm366_vm7, %v5772_v39, %v5725_v29 }
 0x45d   :  { %v5782_v56 = vsel %vm370_vm9, %v5781_v57, %v5761_v31 }
 0x45f   :  { %v5729_v7 = vpop.permute.xlu1 %5728 }
 0x460   :  { %v5765_v47 = vpop.permute.xlu0 %5764  ;;  %v5774_v12 = vsel %vm368_vm8, %v5773_v24, %v5729_v7 }
 0x461   :  { %v5783_v48 = vsel %vm372_vm10, %v5782_v56, %v5765_v47 }
 0x463   :  { %v5733_v54 = vpop.permute.xlu1 %5732 }
 0x464   :  { %v5769_v32 = vpop.permute.xlu0 %5768  ;;  %v5775_v5 = vsel %vm370_vm9, %v5774_v12, %v5733_v54 }
 0x465   :  { %v5784_v62 = vsel %vm374_vm11, %v5783_v48, %v5769_v32 }
 0x466   :  { %6101 = vmatprep.subr.msk.mxu1 %vm628_vm12, %v5784_v62 }
 0x467   :  { %v5737_v20 = vpop.permute.xlu1 %5736 }
 0x468   :  { %v5776_v58 = vsel %vm372_vm10, %v5775_v5, %v5737_v20 }
 0x46b   :  { %v5741_v1 = vpop.permute.xlu1 %5740 }
 0x46c   :  { %v5777_v59 = vsel %vm374_vm11, %v5776_v58, %v5741_v1 }
 0x46d   :  { %6102 = vmatpush1.msk.msra.mxu1 %vm628_vm12, %v5777_v59 }
 0x46e   :  { %6103 = vmatmul.mubr.msk.f32.vlgmr.msra.gmra.mrb[2].mxu1 %vm624_vm13, %v6188_v28 }
 0x541   :  { %v5857_v53 = vpop.f32.mrb[2].mxu1 }
 0x542   :  { %v5864_v2 = vadd.f32 %v5857_v53, %v8966_v21  ;;  %v5859_v37 = vpop.f32.mrb[3].mxu1 }
 0x543   :  { %v5865_v33 = vadd.f32 %v5859_v37, %v8966_v21 }
 0x544   :  { %v5866_v0 = vmax.f32 %v5864_v2, 0.0 }
 0x545   :  { %v5867_v36 = vmax.f32 %v5865_v33, 0.0 }
 0x547   :  { %5868 = vmatprep.subr.mxu0 %v5867_v36 }
 0x548   :  { %5869 = vmatpush1.xpose.msra.mxu0 %v5866_v0 }
 0x549   :  { %6108 = vmatprep.subr.mxu0 %v8899_v19 }
 0x54b   :  { %5933 = vmatmul.mubr.f32.vlgmr.msra.gmra.mrb[2].mxu0 %v8967_v18 }
 0x54c   :  { %6109 = vmatpush3.msra.mxu0 %v5943_v23  ;;  %6110 = vmatprep.mubr.msk.f32.mxu0 %vm6255_vm14, %v8899_v19 }
 0x61e   :  { %v5934_v27 = vpop.f32.mrb[2].mxu0 }
 0x61f   :  { %v5939_v25 = vrot.slane %v5934_v27, 7  ;;  %v5936_v41 = vpop.f32.mrb[3].mxu0 }
 0x621   :  { %v5942_v9 = vsel %vm5941_vm15, %v8763_v44, %v5939_v25 }
 0x622   :  { %6111 = vmatmul.mubr.msk.f32.vlgmr.msra.gmra.mrb[4].mxu0 %vm5951_vm0, %v5942_v9 }
 0x6f5   :  { %v6021_v55 = vpop.f32.mrb[4].mxu0 }
 0x6f6   :  { %v6022_v52 = vadd.f32 %v6104_v16, %v6021_v55  ;;  %v6112_v60 = vpop.f32.mrb[5].mxu0 }
 0x6f8   :  { %6026 = vst.msk [vmem:[#allocation6] sm:$0x3] %vm6025_vm1, %v6022_v52 }
 0x6f9   :  { %6222 = shalt.err (!%p6219_p12)
}
 0x6fa   :  { %s6223_s17 = scalar_lea.hbm %s8862_s5, 32 }
 0x6fb   :  { %p6224_p13 = scmp.ne.s32.totalorder %s8862_s5, %s6223_s17  ;;  %p6227_p0 = scmp.lt.u32.totalorder %s6223_s17, %s8862_s5 }
 0x6fd   :  { %p6229_p1 = pnand %p6227_p0, %p6224_p13 }
 0x6ff   :  { %6232 = shalt.err (!%p6229_p1)
}
 0x700   :  { %6036 = dma.vmem_to_hbm [thread:$0]  %s6034_s6, 32, %s8862_s5, [#allocation5]  }
 0x701   :  { %6235 = dma.done.wait [#allocation5], 32  }
 0x702   :  { %6236 = vsyncadd [#allocation5], 4294967264 }
 0x703   :  { %6040 = vsyncpa [#allocation4], 1 }
 0x704   :  { %6041 = vsyncpa [#allocation5], 1 }

</bundles_post_ra>
